<compile_context>
chip_gen: v5e
topology: v5e:2x2
jax: 0.10.0
libtpu: 0.0.40
codegen_flags: <defaults>
</compile_context>

<pallas_src>
import jax
import jax.numpy as jnp
import numpy as np
from jax.experimental import pallas as pl
from jax.experimental.pallas import tpu as pltpu

EPS = 1e-5             # nn.LayerNorm default
DILATIONS = (1, 1, 2)  # layer0, layer1, layer2 of each block


# ---------------------------------------------------------------------------
# Pallas kernel factory: full IDCNN forward for one (F, block_b*S) slab / step.
# ---------------------------------------------------------------------------
def _make_idcnn_kernel(block_b, S, F, T):
    L = block_b * S

    def kernel(emb_ref, wlin_ref, blin_ref,
               w0_ref, b0_ref, w1_ref, b1_ref, w2_ref, b2_ref,
               ln_g_ref, ln_b_ref, wtag_ref, btag_ref, out_ref):
        # ---- hoisted per-grid-step constants --------------------------------
        # Lane position inside its own length-S batch segment; masks are 1-row
        # (broadcast over sublanes in the select) to keep vreg pressure low.
        pos = jax.lax.broadcasted_iota(jnp.int32, (1, L), 1) % S
        masks = {}
        for d in sorted(set(DILATIONS)):
            masks[(d, -1)] = pos >= d        # zero wrapped leading cols of each segment
            masks[(d, +1)] = pos < (S - d)   # zero wrapped trailing cols of each segment

        # Invariant parameter loads, hoisted once per grid step (not per conv).
        wlin = wlin_ref[...]                 # (F, H)   matmul dtype
        w0 = w0_ref[...]                     # (3, F, F) per-tap conv matrices
        w1 = w1_ref[...]
        w2 = w2_ref[...]
        wtag = wtag_ref[...]                 # (T, F)
        mm_dtype = wlin.dtype                # bf16 on v6e/v7x, f32 otherwise
        # Biases pre-broadcast to full lane width once (no per-conv rebroadcast).
        blin = jnp.broadcast_to(blin_ref[...], (F, L))
        b0 = jnp.broadcast_to(b0_ref[...], (F, L))
        b1 = jnp.broadcast_to(b1_ref[...], (F, L))
        b2 = jnp.broadcast_to(b2_ref[...], (F, L))
        btag = jnp.broadcast_to(btag_ref[...], (T, L))
        ln_g = ln_g_ref[...]                 # (1, S) f32
        ln_b = ln_b_ref[...]                 # (1, S) f32

        def shifted(x, sgn, d):
            # xs[f, t] = x[f, t + sgn*d] inside each length-S segment, 0 outside:
            # one whole-slab XLU lane rotate + a (1, L) mask select.  The mask
            # zeroes both the SAME-padding positions and any cross-element leak.
            rolled = pltpu.roll(x, shift=(-sgn * d) % L, axis=1)
            return jnp.where(masks[(d, sgn)], rolled, 0.0)

        def conv1d(x, w, b_full, d):
            # Conv1d(k=3, SAME, dilation=d) as three accumulating MXU matmuls
            # against (F, F) tap matrices; f32 accumulation.
            xm = x.astype(mm_dtype)
            acc = jnp.dot(w[1], xm, preferred_element_type=jnp.float32)
            acc = acc + jnp.dot(w[0], shifted(xm, -1, d),
                                preferred_element_type=jnp.float32)
            acc = acc + jnp.dot(w[2], shifted(xm, +1, d),
                                preferred_element_type=jnp.float32)
            return acc + b_full

        def layer_norm_seq(x):
            # nn.LayerNorm(S) on the slab: per (element, channel) statistics over
            # that element's own length-S lane segment.  Static 128-aligned
            # slices, two-pass variance, always f32.
            outs = []
            for j in range(block_b):
                xj = x[:, j * S:(j + 1) * S]
                mu = jnp.mean(xj, axis=-1, keepdims=True)
                xc = xj - mu
                var = jnp.mean(xc * xc, axis=-1, keepdims=True)
                outs.append(xc * jax.lax.rsqrt(var + EPS) * ln_g + ln_b)
            return outs[0] if block_b == 1 else jnp.concatenate(outs, axis=1)

        def block(x):
            x = conv1d(x, w0, b0, DILATIONS[0])
            x = jnp.maximum(x, 0.0)
            x = layer_norm_seq(x)
            x = conv1d(x, w1, b1, DILATIONS[1])
            x = conv1d(x, w2, b2, DILATIONS[2])
            return x

        emb = emb_ref[0]                     # (H, L) slab, already in matmul dtype
        # input linear, transpose-free: (F, H) @ (H, L) + bias
        x = jnp.dot(wlin, emb, preferred_element_type=jnp.float32) + blin
        # Sequential order: block0, relu, layernorm, block1, block2, block3
        # (all four blocks share weights).
        x = block(x)
        x = jnp.maximum(x, 0.0)
        x = layer_norm_seq(x)
        x = block(x)
        x = block(x)
        x = block(x)
        # hidden2tag, transpose-free & lane-dense: (T, F) @ (F, L) + bias
        out = jnp.dot(wtag, x.astype(mm_dtype),
                      preferred_element_type=jnp.float32) + btag
        out_ref[0] = out.astype(out_ref.dtype)

    return kernel


# ---------------------------------------------------------------------------
# Heuristics
# ---------------------------------------------------------------------------
def _use_bf16_matmuls():
    # bf16 matmul operands halve MXU pushes and operand traffic on v6e/v7x; on
    # v5e (no bf16 VPU) the per-op casts can eat the gain at these small shapes,
    # so keep f32 there and on unknown / non-TPU backends.
    try:
        kind = jax.devices()[0].device_kind.lower()
    except Exception:
        return False
    if "v5 lite" in kind or "v5lite" in kind or "v5e" in kind:
        return False
    return ("v6" in kind) or ("v7" in kind)


def _pick_block_b(B, H, S, T):
    # Largest divisor of B in {8,4,2,1} whose double-buffered input/output blocks
    # fit a conservative VMEM budget (safe under v5e's 16 MiB default scoped
    # VMEM, v7x's 32 MiB), preferring block_b <= B//2 so the grid has >= 2 steps
    # and v7x's two TensorCores both get work.
    budget = 8 << 20
    divs = [c for c in (8, 4, 2, 1)
            if B % c == 0 and 2 * c * (H + T) * S * 4 <= budget]
    if not divs:
        return 1
    for c in divs:                       # divs is descending
        if c <= B // 2:
            return c
    return divs[-1]


# ---------------------------------------------------------------------------
# Wrapper: layout plumbing + weight packing happen here, outside the kernel.
# Params use PyTorch layouts:
#   wlin (F, H), blin (F,), w{0,1,2} (F, F, 3), b{0,1,2} (F,),
#   ln_g/ln_b (S,), wtag (T, F), btag (T,)
# ---------------------------------------------------------------------------
def idcnn_forward(emb, params, *, block_b=None, use_bf16=None):
    B, S, H = emb.shape
    F = params["wlin"].shape[0]
    T = params["wtag"].shape[0]

    if use_bf16 is None:
        use_bf16 = _use_bf16_matmuls()
    mm_dtype = jnp.bfloat16 if use_bf16 else jnp.float32

    if block_b is None:
        block_b = _pick_block_b(B, H, S, T)
    if block_b < 1 or B % block_b != 0:
        block_b = 1
    G = B // block_b
    L = block_b * S

    # Group block_b consecutive batch elements along lanes: (B, S, H) -> (G, H, L)
    # with [g, :, j*S:(j+1)*S] = emb[g*block_b + j].T.  All layout plumbing stays
    # in the wrapper; the kernel never transposes.
    # TODO(synk): folding this transpose into the first matmul (lax.dot_general on
    # the native (B,S,H) layout) is a possible further saving; not done here.
    emb_g = (jnp.asarray(emb, jnp.float32)
             .reshape(G, block_b, S, H)
             .transpose(0, 3, 1, 2)      # (G, H, block_b, S)
             .reshape(G, H, L)
             .astype(mm_dtype))

    def pack_conv(w):
        # PyTorch Conv1d weight (F_out, F_in, 3) -> (3, F_out, F_in) tap matrices.
        # Tap k=0 multiplies x[t-d], k=1 multiplies x[t], k=2 multiplies x[t+d].
        return jnp.transpose(jnp.asarray(w, mm_dtype), (2, 0, 1))

    f32 = jnp.float32
    weights = [
        jnp.asarray(params["wlin"], mm_dtype),                 # (F, H)
        jnp.asarray(params["blin"], f32).reshape(F, 1),
        pack_conv(params["w0"]), jnp.asarray(params["b0"], f32).reshape(F, 1),
        pack_conv(params["w1"]), jnp.asarray(params["b1"], f32).reshape(F, 1),
        pack_conv(params["w2"]), jnp.asarray(params["b2"], f32).reshape(F, 1),
        jnp.asarray(params["ln_g"], f32).reshape(1, S),
        jnp.asarray(params["ln_b"], f32).reshape(1, S),
        jnp.asarray(params["wtag"], mm_dtype),                 # (T, F)
        jnp.asarray(params["btag"], f32).reshape(T, 1),
    ]

    def full_spec(arr):
        nd = arr.ndim
        return pl.BlockSpec(arr.shape, lambda g, _nd=nd: (0,) * _nd)

    kernel = _make_idcnn_kernel(block_b, S, F, T)

    out_g = pl.pallas_call(
        kernel,
        out_shape=jax.ShapeDtypeStruct((G, T, L), jnp.float32),
        grid=(G,),
        in_specs=[pl.BlockSpec((1, H, L), lambda g: (g, 0, 0))]
                 + [full_spec(w) for w in weights],
        out_specs=pl.BlockSpec((1, T, L), lambda g: (g, 0, 0)),
        compiler_params=pltpu.CompilerParams(
            dimension_semantics=("parallel",)),
    )(emb_g, *weights)

    # Un-group: (G, T, L) -> (B, S, T).
    return (out_g.reshape(G, T, block_b, S)
                 .transpose(0, 2, 3, 1)    # (G, block_b, S, T)
                 .reshape(B, S, T))


# ---------------------------------------------------------------------------
# Pure-JAX reference (mirrors the PyTorch module exactly, PyTorch weight layouts)
# ---------------------------------------------------------------------------
def idcnn_reference(emb, params):
    x = emb @ params["wlin"].T + params["blin"]            # (B, S, F)
    x = jnp.transpose(x, (0, 2, 1))                        # (B, F, S)

    def conv(x, w, b, d):
        # w: (F_out, F_in, 3), Conv1d SAME with dilation d, padding d.
        S = x.shape[-1]
        xp = jnp.pad(x, ((0, 0), (0, 0), (d, d)))
        out = jnp.zeros_like(x)
        for k in range(3):
            xs = xp[:, :, k * d:k * d + S]
            out = out + jnp.einsum("oi,bis->bos", w[:, :, k], xs)
        return out + b[None, :, None]

    def ln(x):
        mu = x.mean(-1, keepdims=True)
        var = ((x - mu) ** 2).mean(-1, keepdims=True)
        return (x - mu) / jnp.sqrt(var + EPS) * params["ln_g"] + params["ln_b"]

    def block(x):
        x = conv(x, params["w0"], params["b0"], 1)
        x = jax.nn.relu(x)
        x = ln(x)
        x = conv(x, params["w1"], params["b1"], 1)
        x = conv(x, params["w2"], params["b2"], 2)
        return x

    x = block(x)
    x = jax.nn.relu(x)
    x = ln(x)
    x = block(x)
    x = block(x)
    x = block(x)
    x = jnp.transpose(x, (0, 2, 1))                        # (B, S, F)
    return x @ params["wtag"].T + params["btag"]           # (B, S, T)


if __name__ == "__main__":
    # Small shapes consistent with the module (BERT-style MRC head).
    # B=4 exercises lane batching (block_b=2 -> 256-lane slabs) with a 2-step grid.
    B, S, H, F, T = 4, 128, 64, 32, 8   # batch, seq_len, hidden_size, filters, tag_size

    key = jax.random.PRNGKey(0)
    keys = jax.random.split(key, 13)

    def rnd(k, shape, scale=0.1):
        return scale * jax.random.normal(k, shape, dtype=jnp.float32)

    # Deterministic synthetic parameters (in lieu of `initial_parameter`),
    # stored in PyTorch layouts: Linear (out, in), Conv1d (out, in, k).
    params = {
        "wlin": rnd(keys[0], (F, H)),
        "blin": rnd(keys[1], (F,)),
        "w0":   rnd(keys[2], (F, F, 3)),
        "b0":   rnd(keys[3], (F,)),
        "w1":   rnd(keys[4], (F, F, 3)),
        "b1":   rnd(keys[5], (F,)),
        "w2":   rnd(keys[6], (F, F, 3)),
        "b2":   rnd(keys[7], (F,)),
        "ln_g": 1.0 + rnd(keys[8], (S,), 0.05),
        "ln_b": rnd(keys[9], (S,), 0.05),
        "wtag": rnd(keys[10], (T, F)),
        "btag": rnd(keys[11], (T,)),
    }

    emb = jax.random.normal(keys[12], (B, S, H), dtype=jnp.float32)

    use_bf16 = _use_bf16_matmuls()
    out = idcnn_forward(emb, params, use_bf16=use_bf16)
    out = jax.block_until_ready(out)

    ref = idcnn_reference(emb, params)
    # bf16 matmul operands (v6e/v7x path) keep f32 accumulation and f32 LayerNorm
    # statistics, but 14 chained shared-weight matmuls still accumulate ~1-2%
    # relative error, so that path uses a proportionally looser tolerance.
    tol = 5e-2 if use_bf16 else 2e-2
    np.testing.assert_allclose(np.asarray(out), np.asarray(ref), rtol=tol, atol=tol)
    assert out.shape == (B, S, T)

    print("KERNEL_OK")
</pallas_src>

<mosaic_0001>
module attributes {stable_mosaic.version = 11 : i64} {
  func.func @kernel(%arg0: i32, %arg1: memref<1x64x256xf32, #tpu.memory_space<vmem>>, %arg2: memref<32x64xf32, #tpu.memory_space<vmem>>, %arg3: memref<32x1xf32, #tpu.memory_space<vmem>>, %arg4: memref<3x32x32xf32, #tpu.memory_space<vmem>>, %arg5: memref<32x1xf32, #tpu.memory_space<vmem>>, %arg6: memref<3x32x32xf32, #tpu.memory_space<vmem>>, %arg7: memref<32x1xf32, #tpu.memory_space<vmem>>, %arg8: memref<3x32x32xf32, #tpu.memory_space<vmem>>, %arg9: memref<32x1xf32, #tpu.memory_space<vmem>>, %arg10: memref<1x128xf32, #tpu.memory_space<vmem>>, %arg11: memref<1x128xf32, #tpu.memory_space<vmem>>, %arg12: memref<8x32xf32, #tpu.memory_space<vmem>>, %arg13: memref<8x1xf32, #tpu.memory_space<vmem>>, %arg14: memref<1x8x256xf32, #tpu.memory_space<vmem>>) attributes {dimension_semantics = [#tpu.dimension_semantics<parallel>], iteration_bounds = array<i64: 2>, scalar_prefetch = 0 : i64, scratch_operands = 0 : i64, tpu.core_type = #tpu.core_type<tc>, window_params = [{transform_indices = @transform_0, window_bounds = array<i64: 1, 64, 256>}, {pipeline_mode = #tpu.pipeline_mode<synchronous>, transform_indices = @transform_1, window_bounds = array<i64: 32, 64>}, {pipeline_mode = #tpu.pipeline_mode<synchronous>, transform_indices = @transform_2, window_bounds = array<i64: 32, 1>}, {pipeline_mode = #tpu.pipeline_mode<synchronous>, transform_indices = @transform_3, window_bounds = array<i64: 3, 32, 32>}, {pipeline_mode = #tpu.pipeline_mode<synchronous>, transform_indices = @transform_4, window_bounds = array<i64: 32, 1>}, {pipeline_mode = #tpu.pipeline_mode<synchronous>, transform_indices = @transform_5, window_bounds = array<i64: 3, 32, 32>}, {pipeline_mode = #tpu.pipeline_mode<synchronous>, transform_indices = @transform_6, window_bounds = array<i64: 32, 1>}, {pipeline_mode = #tpu.pipeline_mode<synchronous>, transform_indices = @transform_7, window_bounds = array<i64: 3, 32, 32>}, {pipeline_mode = #tpu.pipeline_mode<synchronous>, transform_indices = @transform_8, window_bounds = array<i64: 32, 1>}, {pipeline_mode = #tpu.pipeline_mode<synchronous>, transform_indices = @transform_9, window_bounds = array<i64: 1, 128>}, {pipeline_mode = #tpu.pipeline_mode<synchronous>, transform_indices = @transform_10, window_bounds = array<i64: 1, 128>}, {pipeline_mode = #tpu.pipeline_mode<synchronous>, transform_indices = @transform_11, window_bounds = array<i64: 8, 32>}, {pipeline_mode = #tpu.pipeline_mode<synchronous>, transform_indices = @transform_12, window_bounds = array<i64: 8, 1>}, {transform_indices = @transform_13, window_bounds = array<i64: 1, 8, 256>}]} {
    %0 = tpu.iota {dimensions = array<i32: 1>} : vector<1x256xi32>
    %c128_i32 = arith.constant 128 : i32
    %c0_i32 = arith.constant 0 : i32
    %1 = arith.cmpi eq, %c128_i32, %c0_i32 : i32
    %c1_i32 = arith.constant 1 : i32
    %2 = arith.select %1, %c1_i32, %c128_i32 : i32
    %3 = vector.broadcast %2 : i32 to vector<1x256xi32>
    %4 = arith.remsi %0, %3 : vector<1x256xi32>
    %c0_i32_0 = arith.constant 0 : i32
    %5 = vector.broadcast %c0_i32_0 : i32 to vector<1x256xi32>
    %6 = arith.cmpi ne, %4, %5 : vector<1x256xi32>
    %c0_i32_1 = arith.constant 0 : i32
    %7 = vector.broadcast %c0_i32_1 : i32 to vector<1x256xi32>
    %8 = arith.cmpi slt, %4, %7 : vector<1x256xi32>
    %c0_i32_2 = arith.constant 0 : i32
    %9 = arith.cmpi slt, %2, %c0_i32_2 : i32
    %10 = vector.broadcast %9 : i1 to vector<1x256xi1>
    %11 = vector.broadcast %10 : vector<1x256xi1> to vector<1x256xi1>
    %12 = arith.xori %8, %11 : vector<1x256xi1>
    %13 = arith.andi %12, %6 : vector<1x256xi1>
    %14 = vector.broadcast %2 : i32 to vector<1x256xi32>
    %15 = arith.addi %4, %14 : vector<1x256xi32>
    %16 = arith.select %13, %15, %4 : vector<1x256xi1>, vector<1x256xi32>
    %c1_i32_3 = arith.constant 1 : i32
    %17 = vector.broadcast %c1_i32_3 : i32 to vector<1x256xi32>
    %18 = arith.cmpi sge, %16, %17 : vector<1x256xi32>
    %c127_i32 = arith.constant 127 : i32
    %19 = vector.broadcast %c127_i32 : i32 to vector<1x256xi32>
    %20 = arith.cmpi slt, %16, %19 : vector<1x256xi32>
    %c2_i32 = arith.constant 2 : i32
    %21 = vector.broadcast %c2_i32 : i32 to vector<1x256xi32>
    %22 = arith.cmpi sge, %16, %21 : vector<1x256xi32>
    %c126_i32 = arith.constant 126 : i32
    %23 = vector.broadcast %c126_i32 : i32 to vector<1x256xi32>
    %24 = arith.cmpi slt, %16, %23 : vector<1x256xi32>
    %c0 = arith.constant 0 : index
    %c0_4 = arith.constant 0 : index
    %25 = vector.load %arg2[%c0, %c0_4] : memref<32x64xf32, #tpu.memory_space<vmem>>, vector<32x64xf32>
    %c0_5 = arith.constant 0 : index
    %c0_6 = arith.constant 0 : index
    %c0_7 = arith.constant 0 : index
    %26 = vector.load %arg4[%c0_5, %c0_6, %c0_7] : memref<3x32x32xf32, #tpu.memory_space<vmem>>, vector<3x32x32xf32>
    %c0_8 = arith.constant 0 : index
    %c0_9 = arith.constant 0 : index
    %c0_10 = arith.constant 0 : index
    %27 = vector.load %arg6[%c0_8, %c0_9, %c0_10] : memref<3x32x32xf32, #tpu.memory_space<vmem>>, vector<3x32x32xf32>
    %c0_11 = arith.constant 0 : index
    %c0_12 = arith.constant 0 : index
    %c0_13 = arith.constant 0 : index
    %28 = vector.load %arg8[%c0_11, %c0_12, %c0_13] : memref<3x32x32xf32, #tpu.memory_space<vmem>>, vector<3x32x32xf32>
    %c0_14 = arith.constant 0 : index
    %c0_15 = arith.constant 0 : index
    %29 = vector.load %arg12[%c0_14, %c0_15] : memref<8x32xf32, #tpu.memory_space<vmem>>, vector<8x32xf32>
    %c0_16 = arith.constant 0 : index
    %c0_17 = arith.constant 0 : index
    %30 = vector.load %arg3[%c0_16, %c0_17] : memref<32x1xf32, #tpu.memory_space<vmem>>, vector<32x1xf32>
    %31 = vector.shape_cast %30 : vector<32x1xf32> to vector<32x1xf32>
    %32 = vector.broadcast %31 : vector<32x1xf32> to vector<32x256xf32>
    %c0_18 = arith.constant 0 : index
    %c0_19 = arith.constant 0 : index
    %33 = vector.load %arg5[%c0_18, %c0_19] : memref<32x1xf32, #tpu.memory_space<vmem>>, vector<32x1xf32>
    %34 = vector.shape_cast %33 : vector<32x1xf32> to vector<32x1xf32>
    %35 = vector.broadcast %34 : vector<32x1xf32> to vector<32x256xf32>
    %c0_20 = arith.constant 0 : index
    %c0_21 = arith.constant 0 : index
    %36 = vector.load %arg7[%c0_20, %c0_21] : memref<32x1xf32, #tpu.memory_space<vmem>>, vector<32x1xf32>
    %37 = vector.shape_cast %36 : vector<32x1xf32> to vector<32x1xf32>
    %38 = vector.broadcast %37 : vector<32x1xf32> to vector<32x256xf32>
    %c0_22 = arith.constant 0 : index
    %c0_23 = arith.constant 0 : index
    %39 = vector.load %arg9[%c0_22, %c0_23] : memref<32x1xf32, #tpu.memory_space<vmem>>, vector<32x1xf32>
    %40 = vector.shape_cast %39 : vector<32x1xf32> to vector<32x1xf32>
    %41 = vector.broadcast %40 : vector<32x1xf32> to vector<32x256xf32>
    %c0_24 = arith.constant 0 : index
    %c0_25 = arith.constant 0 : index
    %42 = vector.load %arg13[%c0_24, %c0_25] : memref<8x1xf32, #tpu.memory_space<vmem>>, vector<8x1xf32>
    %43 = vector.shape_cast %42 : vector<8x1xf32> to vector<8x1xf32>
    %44 = vector.broadcast %43 : vector<8x1xf32> to vector<8x256xf32>
    %c0_26 = arith.constant 0 : index
    %c0_27 = arith.constant 0 : index
    %45 = vector.load %arg10[%c0_26, %c0_27] : memref<1x128xf32, #tpu.memory_space<vmem>>, vector<1x128xf32>
    %c0_28 = arith.constant 0 : index
    %c0_29 = arith.constant 0 : index
    %46 = vector.load %arg11[%c0_28, %c0_29] : memref<1x128xf32, #tpu.memory_space<vmem>>, vector<1x128xf32>
    %c0_30 = arith.constant 0 : index
    %c0_31 = arith.constant 0 : index
    %c0_32 = arith.constant 0 : index
    %47 = vector.load %arg1[%c0_30, %c0_31, %c0_32] : memref<1x64x256xf32, #tpu.memory_space<vmem>>, vector<1x64x256xf32>
    %48 = vector.shape_cast %47 : vector<1x64x256xf32> to vector<64x256xf32>
    %cst = arith.constant dense<0.000000e+00> : vector<32x256xf32>
    %49 = tpu.matmul %25, %48, %cst {dimension_numbers = #tpu.dot_dimension_numbers<[1], [0], [0], [1], [0, 0, 1, 1], [], []>} : vector<32x64xf32>, vector<64x256xf32>, vector<32x256xf32> -> vector<32x256xf32>
    %50 = arith.addf %49, %32 : vector<32x256xf32>
    %51 = vector.extract_strided_slice %26 {offsets = [1, 0, 0], sizes = [1, 32, 32], strides = [1, 1, 1]} : vector<3x32x32xf32> to vector<1x32x32xf32>
    %52 = vector.shape_cast %51 : vector<1x32x32xf32> to vector<32x32xf32>
    %cst_33 = arith.constant dense<0.000000e+00> : vector<32x256xf32>
    %53 = tpu.matmul %52, %50, %cst_33 {dimension_numbers = #tpu.dot_dimension_numbers<[1], [0], [0], [1], [0, 0, 1, 1], [], []>} : vector<32x32xf32>, vector<32x256xf32>, vector<32x256xf32> -> vector<32x256xf32>
    %54 = vector.extract_strided_slice %26 {offsets = [0, 0, 0], sizes = [1, 32, 32], strides = [1, 1, 1]} : vector<3x32x32xf32> to vector<1x32x32xf32>
    %55 = vector.shape_cast %54 : vector<1x32x32xf32> to vector<32x32xf32>
    %c1_i32_34 = arith.constant 1 : i32
    %56 = tpu.dynamic_rotate %50 by %c1_i32_34 dim 1 : vector<32x256xf32>, i32 -> vector<32x256xf32>
    %cst_35 = arith.constant 0.000000e+00 : f32
    %57 = vector.shape_cast %18 : vector<1x256xi1> to vector<1x256xi1>
    %58 = vector.broadcast %57 : vector<1x256xi1> to vector<32x256xi1>
    %59 = vector.broadcast %cst_35 : f32 to vector<32x256xf32>
    %60 = arith.select %58, %56, %59 : vector<32x256xi1>, vector<32x256xf32>
    %cst_36 = arith.constant dense<0.000000e+00> : vector<32x256xf32>
    %61 = tpu.matmul %55, %60, %cst_36 {dimension_numbers = #tpu.dot_dimension_numbers<[1], [0], [0], [1], [0, 0, 1, 1], [], []>} : vector<32x32xf32>, vector<32x256xf32>, vector<32x256xf32> -> vector<32x256xf32>
    %62 = arith.addf %53, %61 : vector<32x256xf32>
    %63 = vector.extract_strided_slice %26 {offsets = [2, 0, 0], sizes = [1, 32, 32], strides = [1, 1, 1]} : vector<3x32x32xf32> to vector<1x32x32xf32>
    %64 = vector.shape_cast %63 : vector<1x32x32xf32> to vector<32x32xf32>
    %c255_i32 = arith.constant 255 : i32
    %65 = tpu.dynamic_rotate %50 by %c255_i32 dim 1 : vector<32x256xf32>, i32 -> vector<32x256xf32>
    %cst_37 = arith.constant 0.000000e+00 : f32
    %66 = vector.shape_cast %20 : vector<1x256xi1> to vector<1x256xi1>
    %67 = vector.broadcast %66 : vector<1x256xi1> to vector<32x256xi1>
    %68 = vector.broadcast %cst_37 : f32 to vector<32x256xf32>
    %69 = arith.select %67, %65, %68 : vector<32x256xi1>, vector<32x256xf32>
    %cst_38 = arith.constant dense<0.000000e+00> : vector<32x256xf32>
    %70 = tpu.matmul %64, %69, %cst_38 {dimension_numbers = #tpu.dot_dimension_numbers<[1], [0], [0], [1], [0, 0, 1, 1], [], []>} : vector<32x32xf32>, vector<32x256xf32>, vector<32x256xf32> -> vector<32x256xf32>
    %71 = arith.addf %62, %70 : vector<32x256xf32>
    %72 = arith.addf %71, %35 : vector<32x256xf32>
    %cst_39 = arith.constant 0.000000e+00 : f32
    %73 = vector.broadcast %cst_39 : f32 to vector<32x256xf32>
    %74 = arith.maximumf %72, %73 : vector<32x256xf32>
    %75 = vector.extract_strided_slice %74 {offsets = [0, 0], sizes = [32, 128], strides = [1, 1]} : vector<32x256xf32> to vector<32x128xf32>
    %cst_40 = arith.constant dense<0.000000e+00> : vector<32xf32>
    %76 = vector.multi_reduction <add>, %75, %cst_40 [1] : vector<32x128xf32> to vector<32xf32>
    %77 = vector.shape_cast %76 : vector<32xf32> to vector<32x1xf32>
    %cst_41 = arith.constant 1.280000e+02 : f32
    %78 = vector.broadcast %cst_41 : f32 to vector<32x1xf32>
    %79 = arith.divf %77, %78 : vector<32x1xf32>
    %80 = vector.broadcast %79 : vector<32x1xf32> to vector<32x128xf32>
    %81 = arith.subf %75, %80 : vector<32x128xf32>
    %82 = arith.mulf %81, %81 : vector<32x128xf32>
    %cst_42 = arith.constant dense<0.000000e+00> : vector<32xf32>
    %83 = vector.multi_reduction <add>, %82, %cst_42 [1] : vector<32x128xf32> to vector<32xf32>
    %84 = vector.shape_cast %83 : vector<32xf32> to vector<32x1xf32>
    %cst_43 = arith.constant 1.280000e+02 : f32
    %85 = vector.broadcast %cst_43 : f32 to vector<32x1xf32>
    %86 = arith.divf %84, %85 : vector<32x1xf32>
    %cst_44 = arith.constant 9.99999974E-6 : f32
    %87 = vector.broadcast %cst_44 : f32 to vector<32x1xf32>
    %88 = arith.addf %86, %87 : vector<32x1xf32>
    %89 = math.rsqrt %88 : vector<32x1xf32>
    %90 = vector.broadcast %89 : vector<32x1xf32> to vector<32x128xf32>
    %91 = arith.mulf %81, %90 : vector<32x128xf32>
    %92 = vector.broadcast %45 : vector<1x128xf32> to vector<32x128xf32>
    %93 = arith.mulf %91, %92 : vector<32x128xf32>
    %94 = vector.broadcast %46 : vector<1x128xf32> to vector<32x128xf32>
    %95 = arith.addf %93, %94 : vector<32x128xf32>
    %96 = vector.extract_strided_slice %74 {offsets = [0, 128], sizes = [32, 128], strides = [1, 1]} : vector<32x256xf32> to vector<32x128xf32>
    %cst_45 = arith.constant dense<0.000000e+00> : vector<32xf32>
    %97 = vector.multi_reduction <add>, %96, %cst_45 [1] : vector<32x128xf32> to vector<32xf32>
    %98 = vector.shape_cast %97 : vector<32xf32> to vector<32x1xf32>
    %cst_46 = arith.constant 1.280000e+02 : f32
    %99 = vector.broadcast %cst_46 : f32 to vector<32x1xf32>
    %100 = arith.divf %98, %99 : vector<32x1xf32>
    %101 = vector.broadcast %100 : vector<32x1xf32> to vector<32x128xf32>
    %102 = arith.subf %96, %101 : vector<32x128xf32>
    %103 = arith.mulf %102, %102 : vector<32x128xf32>
    %cst_47 = arith.constant dense<0.000000e+00> : vector<32xf32>
    %104 = vector.multi_reduction <add>, %103, %cst_47 [1] : vector<32x128xf32> to vector<32xf32>
    %105 = vector.shape_cast %104 : vector<32xf32> to vector<32x1xf32>
    %cst_48 = arith.constant 1.280000e+02 : f32
    %106 = vector.broadcast %cst_48 : f32 to vector<32x1xf32>
    %107 = arith.divf %105, %106 : vector<32x1xf32>
    %cst_49 = arith.constant 9.99999974E-6 : f32
    %108 = vector.broadcast %cst_49 : f32 to vector<32x1xf32>
    %109 = arith.addf %107, %108 : vector<32x1xf32>
    %110 = math.rsqrt %109 : vector<32x1xf32>
    %111 = vector.broadcast %110 : vector<32x1xf32> to vector<32x128xf32>
    %112 = arith.mulf %102, %111 : vector<32x128xf32>
    %113 = vector.broadcast %45 : vector<1x128xf32> to vector<32x128xf32>
    %114 = arith.mulf %112, %113 : vector<32x128xf32>
    %115 = vector.broadcast %46 : vector<1x128xf32> to vector<32x128xf32>
    %116 = arith.addf %114, %115 : vector<32x128xf32>
    %117 = tpu.concatenate %95, %116 in 1 : vector<32x128xf32>, vector<32x128xf32> -> vector<32x256xf32>
    %118 = vector.extract_strided_slice %27 {offsets = [1, 0, 0], sizes = [1, 32, 32], strides = [1, 1, 1]} : vector<3x32x32xf32> to vector<1x32x32xf32>
    %119 = vector.shape_cast %118 : vector<1x32x32xf32> to vector<32x32xf32>
    %cst_50 = arith.constant dense<0.000000e+00> : vector<32x256xf32>
    %120 = tpu.matmul %119, %117, %cst_50 {dimension_numbers = #tpu.dot_dimension_numbers<[1], [0], [0], [1], [0, 0, 1, 1], [], []>} : vector<32x32xf32>, vector<32x256xf32>, vector<32x256xf32> -> vector<32x256xf32>
    %121 = vector.extract_strided_slice %27 {offsets = [0, 0, 0], sizes = [1, 32, 32], strides = [1, 1, 1]} : vector<3x32x32xf32> to vector<1x32x32xf32>
    %122 = vector.shape_cast %121 : vector<1x32x32xf32> to vector<32x32xf32>
    %c1_i32_51 = arith.constant 1 : i32
    %123 = tpu.dynamic_rotate %117 by %c1_i32_51 dim 1 : vector<32x256xf32>, i32 -> vector<32x256xf32>
    %cst_52 = arith.constant 0.000000e+00 : f32
    %124 = vector.shape_cast %18 : vector<1x256xi1> to vector<1x256xi1>
    %125 = vector.broadcast %124 : vector<1x256xi1> to vector<32x256xi1>
    %126 = vector.broadcast %cst_52 : f32 to vector<32x256xf32>
    %127 = arith.select %125, %123, %126 : vector<32x256xi1>, vector<32x256xf32>
    %cst_53 = arith.constant dense<0.000000e+00> : vector<32x256xf32>
    %128 = tpu.matmul %122, %127, %cst_53 {dimension_numbers = #tpu.dot_dimension_numbers<[1], [0], [0], [1], [0, 0, 1, 1], [], []>} : vector<32x32xf32>, vector<32x256xf32>, vector<32x256xf32> -> vector<32x256xf32>
    %129 = arith.addf %120, %128 : vector<32x256xf32>
    %130 = vector.extract_strided_slice %27 {offsets = [2, 0, 0], sizes = [1, 32, 32], strides = [1, 1, 1]} : vector<3x32x32xf32> to vector<1x32x32xf32>
    %131 = vector.shape_cast %130 : vector<1x32x32xf32> to vector<32x32xf32>
    %c255_i32_54 = arith.constant 255 : i32
    %132 = tpu.dynamic_rotate %117 by %c255_i32_54 dim 1 : vector<32x256xf32>, i32 -> vector<32x256xf32>
    %cst_55 = arith.constant 0.000000e+00 : f32
    %133 = vector.shape_cast %20 : vector<1x256xi1> to vector<1x256xi1>
    %134 = vector.broadcast %133 : vector<1x256xi1> to vector<32x256xi1>
    %135 = vector.broadcast %cst_55 : f32 to vector<32x256xf32>
    %136 = arith.select %134, %132, %135 : vector<32x256xi1>, vector<32x256xf32>
    %cst_56 = arith.constant dense<0.000000e+00> : vector<32x256xf32>
    %137 = tpu.matmul %131, %136, %cst_56 {dimension_numbers = #tpu.dot_dimension_numbers<[1], [0], [0], [1], [0, 0, 1, 1], [], []>} : vector<32x32xf32>, vector<32x256xf32>, vector<32x256xf32> -> vector<32x256xf32>
    %138 = arith.addf %129, %137 : vector<32x256xf32>
    %139 = arith.addf %138, %38 : vector<32x256xf32>
    %140 = vector.extract_strided_slice %28 {offsets = [1, 0, 0], sizes = [1, 32, 32], strides = [1, 1, 1]} : vector<3x32x32xf32> to vector<1x32x32xf32>
    %141 = vector.shape_cast %140 : vector<1x32x32xf32> to vector<32x32xf32>
    %cst_57 = arith.constant dense<0.000000e+00> : vector<32x256xf32>
    %142 = tpu.matmul %141, %139, %cst_57 {dimension_numbers = #tpu.dot_dimension_numbers<[1], [0], [0], [1], [0, 0, 1, 1], [], []>} : vector<32x32xf32>, vector<32x256xf32>, vector<32x256xf32> -> vector<32x256xf32>
    %143 = vector.extract_strided_slice %28 {offsets = [0, 0, 0], sizes = [1, 32, 32], strides = [1, 1, 1]} : vector<3x32x32xf32> to vector<1x32x32xf32>
    %144 = vector.shape_cast %143 : vector<1x32x32xf32> to vector<32x32xf32>
    %c2_i32_58 = arith.constant 2 : i32
    %145 = tpu.dynamic_rotate %139 by %c2_i32_58 dim 1 : vector<32x256xf32>, i32 -> vector<32x256xf32>
    %cst_59 = arith.constant 0.000000e+00 : f32
    %146 = vector.shape_cast %22 : vector<1x256xi1> to vector<1x256xi1>
    %147 = vector.broadcast %146 : vector<1x256xi1> to vector<32x256xi1>
    %148 = vector.broadcast %cst_59 : f32 to vector<32x256xf32>
    %149 = arith.select %147, %145, %148 : vector<32x256xi1>, vector<32x256xf32>
    %cst_60 = arith.constant dense<0.000000e+00> : vector<32x256xf32>
    %150 = tpu.matmul %144, %149, %cst_60 {dimension_numbers = #tpu.dot_dimension_numbers<[1], [0], [0], [1], [0, 0, 1, 1], [], []>} : vector<32x32xf32>, vector<32x256xf32>, vector<32x256xf32> -> vector<32x256xf32>
    %151 = arith.addf %142, %150 : vector<32x256xf32>
    %152 = vector.extract_strided_slice %28 {offsets = [2, 0, 0], sizes = [1, 32, 32], strides = [1, 1, 1]} : vector<3x32x32xf32> to vector<1x32x32xf32>
    %153 = vector.shape_cast %152 : vector<1x32x32xf32> to vector<32x32xf32>
    %c254_i32 = arith.constant 254 : i32
    %154 = tpu.dynamic_rotate %139 by %c254_i32 dim 1 : vector<32x256xf32>, i32 -> vector<32x256xf32>
    %cst_61 = arith.constant 0.000000e+00 : f32
    %155 = vector.shape_cast %24 : vector<1x256xi1> to vector<1x256xi1>
    %156 = vector.broadcast %155 : vector<1x256xi1> to vector<32x256xi1>
    %157 = vector.broadcast %cst_61 : f32 to vector<32x256xf32>
    %158 = arith.select %156, %154, %157 : vector<32x256xi1>, vector<32x256xf32>
    %cst_62 = arith.constant dense<0.000000e+00> : vector<32x256xf32>
    %159 = tpu.matmul %153, %158, %cst_62 {dimension_numbers = #tpu.dot_dimension_numbers<[1], [0], [0], [1], [0, 0, 1, 1], [], []>} : vector<32x32xf32>, vector<32x256xf32>, vector<32x256xf32> -> vector<32x256xf32>
    %160 = arith.addf %151, %159 : vector<32x256xf32>
    %161 = arith.addf %160, %41 : vector<32x256xf32>
    %cst_63 = arith.constant 0.000000e+00 : f32
    %162 = vector.broadcast %cst_63 : f32 to vector<32x256xf32>
    %163 = arith.maximumf %161, %162 : vector<32x256xf32>
    %164 = vector.extract_strided_slice %163 {offsets = [0, 0], sizes = [32, 128], strides = [1, 1]} : vector<32x256xf32> to vector<32x128xf32>
    %cst_64 = arith.constant dense<0.000000e+00> : vector<32xf32>
    %165 = vector.multi_reduction <add>, %164, %cst_64 [1] : vector<32x128xf32> to vector<32xf32>
    %166 = vector.shape_cast %165 : vector<32xf32> to vector<32x1xf32>
    %cst_65 = arith.constant 1.280000e+02 : f32
    %167 = vector.broadcast %cst_65 : f32 to vector<32x1xf32>
    %168 = arith.divf %166, %167 : vector<32x1xf32>
    %169 = vector.broadcast %168 : vector<32x1xf32> to vector<32x128xf32>
    %170 = arith.subf %164, %169 : vector<32x128xf32>
    %171 = arith.mulf %170, %170 : vector<32x128xf32>
    %cst_66 = arith.constant dense<0.000000e+00> : vector<32xf32>
    %172 = vector.multi_reduction <add>, %171, %cst_66 [1] : vector<32x128xf32> to vector<32xf32>
    %173 = vector.shape_cast %172 : vector<32xf32> to vector<32x1xf32>
    %cst_67 = arith.constant 1.280000e+02 : f32
    %174 = vector.broadcast %cst_67 : f32 to vector<32x1xf32>
    %175 = arith.divf %173, %174 : vector<32x1xf32>
    %cst_68 = arith.constant 9.99999974E-6 : f32
    %176 = vector.broadcast %cst_68 : f32 to vector<32x1xf32>
    %177 = arith.addf %175, %176 : vector<32x1xf32>
    %178 = math.rsqrt %177 : vector<32x1xf32>
    %179 = vector.broadcast %178 : vector<32x1xf32> to vector<32x128xf32>
    %180 = arith.mulf %170, %179 : vector<32x128xf32>
    %181 = vector.broadcast %45 : vector<1x128xf32> to vector<32x128xf32>
    %182 = arith.mulf %180, %181 : vector<32x128xf32>
    %183 = vector.broadcast %46 : vector<1x128xf32> to vector<32x128xf32>
    %184 = arith.addf %182, %183 : vector<32x128xf32>
    %185 = vector.extract_strided_slice %163 {offsets = [0, 128], sizes = [32, 128], strides = [1, 1]} : vector<32x256xf32> to vector<32x128xf32>
    %cst_69 = arith.constant dense<0.000000e+00> : vector<32xf32>
    %186 = vector.multi_reduction <add>, %185, %cst_69 [1] : vector<32x128xf32> to vector<32xf32>
    %187 = vector.shape_cast %186 : vector<32xf32> to vector<32x1xf32>
    %cst_70 = arith.constant 1.280000e+02 : f32
    %188 = vector.broadcast %cst_70 : f32 to vector<32x1xf32>
    %189 = arith.divf %187, %188 : vector<32x1xf32>
    %190 = vector.broadcast %189 : vector<32x1xf32> to vector<32x128xf32>
    %191 = arith.subf %185, %190 : vector<32x128xf32>
    %192 = arith.mulf %191, %191 : vector<32x128xf32>
    %cst_71 = arith.constant dense<0.000000e+00> : vector<32xf32>
    %193 = vector.multi_reduction <add>, %192, %cst_71 [1] : vector<32x128xf32> to vector<32xf32>
    %194 = vector.shape_cast %193 : vector<32xf32> to vector<32x1xf32>
    %cst_72 = arith.constant 1.280000e+02 : f32
    %195 = vector.broadcast %cst_72 : f32 to vector<32x1xf32>
    %196 = arith.divf %194, %195 : vector<32x1xf32>
    %cst_73 = arith.constant 9.99999974E-6 : f32
    %197 = vector.broadcast %cst_73 : f32 to vector<32x1xf32>
    %198 = arith.addf %196, %197 : vector<32x1xf32>
    %199 = math.rsqrt %198 : vector<32x1xf32>
    %200 = vector.broadcast %199 : vector<32x1xf32> to vector<32x128xf32>
    %201 = arith.mulf %191, %200 : vector<32x128xf32>
    %202 = vector.broadcast %45 : vector<1x128xf32> to vector<32x128xf32>
    %203 = arith.mulf %201, %202 : vector<32x128xf32>
    %204 = vector.broadcast %46 : vector<1x128xf32> to vector<32x128xf32>
    %205 = arith.addf %203, %204 : vector<32x128xf32>
    %206 = tpu.concatenate %184, %205 in 1 : vector<32x128xf32>, vector<32x128xf32> -> vector<32x256xf32>
    %207 = vector.extract_strided_slice %26 {offsets = [1, 0, 0], sizes = [1, 32, 32], strides = [1, 1, 1]} : vector<3x32x32xf32> to vector<1x32x32xf32>
    %208 = vector.shape_cast %207 : vector<1x32x32xf32> to vector<32x32xf32>
    %cst_74 = arith.constant dense<0.000000e+00> : vector<32x256xf32>
    %209 = tpu.matmul %208, %206, %cst_74 {dimension_numbers = #tpu.dot_dimension_numbers<[1], [0], [0], [1], [0, 0, 1, 1], [], []>} : vector<32x32xf32>, vector<32x256xf32>, vector<32x256xf32> -> vector<32x256xf32>
    %210 = vector.extract_strided_slice %26 {offsets = [0, 0, 0], sizes = [1, 32, 32], strides = [1, 1, 1]} : vector<3x32x32xf32> to vector<1x32x32xf32>
    %211 = vector.shape_cast %210 : vector<1x32x32xf32> to vector<32x32xf32>
    %c1_i32_75 = arith.constant 1 : i32
    %212 = tpu.dynamic_rotate %206 by %c1_i32_75 dim 1 : vector<32x256xf32>, i32 -> vector<32x256xf32>
    %cst_76 = arith.constant 0.000000e+00 : f32
    %213 = vector.shape_cast %18 : vector<1x256xi1> to vector<1x256xi1>
    %214 = vector.broadcast %213 : vector<1x256xi1> to vector<32x256xi1>
    %215 = vector.broadcast %cst_76 : f32 to vector<32x256xf32>
    %216 = arith.select %214, %212, %215 : vector<32x256xi1>, vector<32x256xf32>
    %cst_77 = arith.constant dense<0.000000e+00> : vector<32x256xf32>
    %217 = tpu.matmul %211, %216, %cst_77 {dimension_numbers = #tpu.dot_dimension_numbers<[1], [0], [0], [1], [0, 0, 1, 1], [], []>} : vector<32x32xf32>, vector<32x256xf32>, vector<32x256xf32> -> vector<32x256xf32>
    %218 = arith.addf %209, %217 : vector<32x256xf32>
    %219 = vector.extract_strided_slice %26 {offsets = [2, 0, 0], sizes = [1, 32, 32], strides = [1, 1, 1]} : vector<3x32x32xf32> to vector<1x32x32xf32>
    %220 = vector.shape_cast %219 : vector<1x32x32xf32> to vector<32x32xf32>
    %c255_i32_78 = arith.constant 255 : i32
    %221 = tpu.dynamic_rotate %206 by %c255_i32_78 dim 1 : vector<32x256xf32>, i32 -> vector<32x256xf32>
    %cst_79 = arith.constant 0.000000e+00 : f32
    %222 = vector.shape_cast %20 : vector<1x256xi1> to vector<1x256xi1>
    %223 = vector.broadcast %222 : vector<1x256xi1> to vector<32x256xi1>
    %224 = vector.broadcast %cst_79 : f32 to vector<32x256xf32>
    %225 = arith.select %223, %221, %224 : vector<32x256xi1>, vector<32x256xf32>
    %cst_80 = arith.constant dense<0.000000e+00> : vector<32x256xf32>
    %226 = tpu.matmul %220, %225, %cst_80 {dimension_numbers = #tpu.dot_dimension_numbers<[1], [0], [0], [1], [0, 0, 1, 1], [], []>} : vector<32x32xf32>, vector<32x256xf32>, vector<32x256xf32> -> vector<32x256xf32>
    %227 = arith.addf %218, %226 : vector<32x256xf32>
    %228 = arith.addf %227, %35 : vector<32x256xf32>
    %cst_81 = arith.constant 0.000000e+00 : f32
    %229 = vector.broadcast %cst_81 : f32 to vector<32x256xf32>
    %230 = arith.maximumf %228, %229 : vector<32x256xf32>
    %231 = vector.extract_strided_slice %230 {offsets = [0, 0], sizes = [32, 128], strides = [1, 1]} : vector<32x256xf32> to vector<32x128xf32>
    %cst_82 = arith.constant dense<0.000000e+00> : vector<32xf32>
    %232 = vector.multi_reduction <add>, %231, %cst_82 [1] : vector<32x128xf32> to vector<32xf32>
    %233 = vector.shape_cast %232 : vector<32xf32> to vector<32x1xf32>
    %cst_83 = arith.constant 1.280000e+02 : f32
    %234 = vector.broadcast %cst_83 : f32 to vector<32x1xf32>
    %235 = arith.divf %233, %234 : vector<32x1xf32>
    %236 = vector.broadcast %235 : vector<32x1xf32> to vector<32x128xf32>
    %237 = arith.subf %231, %236 : vector<32x128xf32>
    %238 = arith.mulf %237, %237 : vector<32x128xf32>
    %cst_84 = arith.constant dense<0.000000e+00> : vector<32xf32>
    %239 = vector.multi_reduction <add>, %238, %cst_84 [1] : vector<32x128xf32> to vector<32xf32>
    %240 = vector.shape_cast %239 : vector<32xf32> to vector<32x1xf32>
    %cst_85 = arith.constant 1.280000e+02 : f32
    %241 = vector.broadcast %cst_85 : f32 to vector<32x1xf32>
    %242 = arith.divf %240, %241 : vector<32x1xf32>
    %cst_86 = arith.constant 9.99999974E-6 : f32
    %243 = vector.broadcast %cst_86 : f32 to vector<32x1xf32>
    %244 = arith.addf %242, %243 : vector<32x1xf32>
    %245 = math.rsqrt %244 : vector<32x1xf32>
    %246 = vector.broadcast %245 : vector<32x1xf32> to vector<32x128xf32>
    %247 = arith.mulf %237, %246 : vector<32x128xf32>
    %248 = vector.broadcast %45 : vector<1x128xf32> to vector<32x128xf32>
    %249 = arith.mulf %247, %248 : vector<32x128xf32>
    %250 = vector.broadcast %46 : vector<1x128xf32> to vector<32x128xf32>
    %251 = arith.addf %249, %250 : vector<32x128xf32>
    %252 = vector.extract_strided_slice %230 {offsets = [0, 128], sizes = [32, 128], strides = [1, 1]} : vector<32x256xf32> to vector<32x128xf32>
    %cst_87 = arith.constant dense<0.000000e+00> : vector<32xf32>
    %253 = vector.multi_reduction <add>, %252, %cst_87 [1] : vector<32x128xf32> to vector<32xf32>
    %254 = vector.shape_cast %253 : vector<32xf32> to vector<32x1xf32>
    %cst_88 = arith.constant 1.280000e+02 : f32
    %255 = vector.broadcast %cst_88 : f32 to vector<32x1xf32>
    %256 = arith.divf %254, %255 : vector<32x1xf32>
    %257 = vector.broadcast %256 : vector<32x1xf32> to vector<32x128xf32>
    %258 = arith.subf %252, %257 : vector<32x128xf32>
    %259 = arith.mulf %258, %258 : vector<32x128xf32>
    %cst_89 = arith.constant dense<0.000000e+00> : vector<32xf32>
    %260 = vector.multi_reduction <add>, %259, %cst_89 [1] : vector<32x128xf32> to vector<32xf32>
    %261 = vector.shape_cast %260 : vector<32xf32> to vector<32x1xf32>
    %cst_90 = arith.constant 1.280000e+02 : f32
    %262 = vector.broadcast %cst_90 : f32 to vector<32x1xf32>
    %263 = arith.divf %261, %262 : vector<32x1xf32>
    %cst_91 = arith.constant 9.99999974E-6 : f32
    %264 = vector.broadcast %cst_91 : f32 to vector<32x1xf32>
    %265 = arith.addf %263, %264 : vector<32x1xf32>
    %266 = math.rsqrt %265 : vector<32x1xf32>
    %267 = vector.broadcast %266 : vector<32x1xf32> to vector<32x128xf32>
    %268 = arith.mulf %258, %267 : vector<32x128xf32>
    %269 = vector.broadcast %45 : vector<1x128xf32> to vector<32x128xf32>
    %270 = arith.mulf %268, %269 : vector<32x128xf32>
    %271 = vector.broadcast %46 : vector<1x128xf32> to vector<32x128xf32>
    %272 = arith.addf %270, %271 : vector<32x128xf32>
    %273 = tpu.concatenate %251, %272 in 1 : vector<32x128xf32>, vector<32x128xf32> -> vector<32x256xf32>
    %274 = vector.extract_strided_slice %27 {offsets = [1, 0, 0], sizes = [1, 32, 32], strides = [1, 1, 1]} : vector<3x32x32xf32> to vector<1x32x32xf32>
    %275 = vector.shape_cast %274 : vector<1x32x32xf32> to vector<32x32xf32>
    %cst_92 = arith.constant dense<0.000000e+00> : vector<32x256xf32>
    %276 = tpu.matmul %275, %273, %cst_92 {dimension_numbers = #tpu.dot_dimension_numbers<[1], [0], [0], [1], [0, 0, 1, 1], [], []>} : vector<32x32xf32>, vector<32x256xf32>, vector<32x256xf32> -> vector<32x256xf32>
    %277 = vector.extract_strided_slice %27 {offsets = [0, 0, 0], sizes = [1, 32, 32], strides = [1, 1, 1]} : vector<3x32x32xf32> to vector<1x32x32xf32>
    %278 = vector.shape_cast %277 : vector<1x32x32xf32> to vector<32x32xf32>
    %c1_i32_93 = arith.constant 1 : i32
    %279 = tpu.dynamic_rotate %273 by %c1_i32_93 dim 1 : vector<32x256xf32>, i32 -> vector<32x256xf32>
    %cst_94 = arith.constant 0.000000e+00 : f32
    %280 = vector.shape_cast %18 : vector<1x256xi1> to vector<1x256xi1>
    %281 = vector.broadcast %280 : vector<1x256xi1> to vector<32x256xi1>
    %282 = vector.broadcast %cst_94 : f32 to vector<32x256xf32>
    %283 = arith.select %281, %279, %282 : vector<32x256xi1>, vector<32x256xf32>
    %cst_95 = arith.constant dense<0.000000e+00> : vector<32x256xf32>
    %284 = tpu.matmul %278, %283, %cst_95 {dimension_numbers = #tpu.dot_dimension_numbers<[1], [0], [0], [1], [0, 0, 1, 1], [], []>} : vector<32x32xf32>, vector<32x256xf32>, vector<32x256xf32> -> vector<32x256xf32>
    %285 = arith.addf %276, %284 : vector<32x256xf32>
    %286 = vector.extract_strided_slice %27 {offsets = [2, 0, 0], sizes = [1, 32, 32], strides = [1, 1, 1]} : vector<3x32x32xf32> to vector<1x32x32xf32>
    %287 = vector.shape_cast %286 : vector<1x32x32xf32> to vector<32x32xf32>
    %c255_i32_96 = arith.constant 255 : i32
    %288 = tpu.dynamic_rotate %273 by %c255_i32_96 dim 1 : vector<32x256xf32>, i32 -> vector<32x256xf32>
    %cst_97 = arith.constant 0.000000e+00 : f32
    %289 = vector.shape_cast %20 : vector<1x256xi1> to vector<1x256xi1>
    %290 = vector.broadcast %289 : vector<1x256xi1> to vector<32x256xi1>
    %291 = vector.broadcast %cst_97 : f32 to vector<32x256xf32>
    %292 = arith.select %290, %288, %291 : vector<32x256xi1>, vector<32x256xf32>
    %cst_98 = arith.constant dense<0.000000e+00> : vector<32x256xf32>
    %293 = tpu.matmul %287, %292, %cst_98 {dimension_numbers = #tpu.dot_dimension_numbers<[1], [0], [0], [1], [0, 0, 1, 1], [], []>} : vector<32x32xf32>, vector<32x256xf32>, vector<32x256xf32> -> vector<32x256xf32>
    %294 = arith.addf %285, %293 : vector<32x256xf32>
    %295 = arith.addf %294, %38 : vector<32x256xf32>
    %296 = vector.extract_strided_slice %28 {offsets = [1, 0, 0], sizes = [1, 32, 32], strides = [1, 1, 1]} : vector<3x32x32xf32> to vector<1x32x32xf32>
    %297 = vector.shape_cast %296 : vector<1x32x32xf32> to vector<32x32xf32>
    %cst_99 = arith.constant dense<0.000000e+00> : vector<32x256xf32>
    %298 = tpu.matmul %297, %295, %cst_99 {dimension_numbers = #tpu.dot_dimension_numbers<[1], [0], [0], [1], [0, 0, 1, 1], [], []>} : vector<32x32xf32>, vector<32x256xf32>, vector<32x256xf32> -> vector<32x256xf32>
    %299 = vector.extract_strided_slice %28 {offsets = [0, 0, 0], sizes = [1, 32, 32], strides = [1, 1, 1]} : vector<3x32x32xf32> to vector<1x32x32xf32>
    %300 = vector.shape_cast %299 : vector<1x32x32xf32> to vector<32x32xf32>
    %c2_i32_100 = arith.constant 2 : i32
    %301 = tpu.dynamic_rotate %295 by %c2_i32_100 dim 1 : vector<32x256xf32>, i32 -> vector<32x256xf32>
    %cst_101 = arith.constant 0.000000e+00 : f32
    %302 = vector.shape_cast %22 : vector<1x256xi1> to vector<1x256xi1>
    %303 = vector.broadcast %302 : vector<1x256xi1> to vector<32x256xi1>
    %304 = vector.broadcast %cst_101 : f32 to vector<32x256xf32>
    %305 = arith.select %303, %301, %304 : vector<32x256xi1>, vector<32x256xf32>
    %cst_102 = arith.constant dense<0.000000e+00> : vector<32x256xf32>
    %306 = tpu.matmul %300, %305, %cst_102 {dimension_numbers = #tpu.dot_dimension_numbers<[1], [0], [0], [1], [0, 0, 1, 1], [], []>} : vector<32x32xf32>, vector<32x256xf32>, vector<32x256xf32> -> vector<32x256xf32>
    %307 = arith.addf %298, %306 : vector<32x256xf32>
    %308 = vector.extract_strided_slice %28 {offsets = [2, 0, 0], sizes = [1, 32, 32], strides = [1, 1, 1]} : vector<3x32x32xf32> to vector<1x32x32xf32>
    %309 = vector.shape_cast %308 : vector<1x32x32xf32> to vector<32x32xf32>
    %c254_i32_103 = arith.constant 254 : i32
    %310 = tpu.dynamic_rotate %295 by %c254_i32_103 dim 1 : vector<32x256xf32>, i32 -> vector<32x256xf32>
    %cst_104 = arith.constant 0.000000e+00 : f32
    %311 = vector.shape_cast %24 : vector<1x256xi1> to vector<1x256xi1>
    %312 = vector.broadcast %311 : vector<1x256xi1> to vector<32x256xi1>
    %313 = vector.broadcast %cst_104 : f32 to vector<32x256xf32>
    %314 = arith.select %312, %310, %313 : vector<32x256xi1>, vector<32x256xf32>
    %cst_105 = arith.constant dense<0.000000e+00> : vector<32x256xf32>
    %315 = tpu.matmul %309, %314, %cst_105 {dimension_numbers = #tpu.dot_dimension_numbers<[1], [0], [0], [1], [0, 0, 1, 1], [], []>} : vector<32x32xf32>, vector<32x256xf32>, vector<32x256xf32> -> vector<32x256xf32>
    %316 = arith.addf %307, %315 : vector<32x256xf32>
    %317 = arith.addf %316, %41 : vector<32x256xf32>
    %318 = vector.extract_strided_slice %26 {offsets = [1, 0, 0], sizes = [1, 32, 32], strides = [1, 1, 1]} : vector<3x32x32xf32> to vector<1x32x32xf32>
    %319 = vector.shape_cast %318 : vector<1x32x32xf32> to vector<32x32xf32>
    %cst_106 = arith.constant dense<0.000000e+00> : vector<32x256xf32>
    %320 = tpu.matmul %319, %317, %cst_106 {dimension_numbers = #tpu.dot_dimension_numbers<[1], [0], [0], [1], [0, 0, 1, 1], [], []>} : vector<32x32xf32>, vector<32x256xf32>, vector<32x256xf32> -> vector<32x256xf32>
    %321 = vector.extract_strided_slice %26 {offsets = [0, 0, 0], sizes = [1, 32, 32], strides = [1, 1, 1]} : vector<3x32x32xf32> to vector<1x32x32xf32>
    %322 = vector.shape_cast %321 : vector<1x32x32xf32> to vector<32x32xf32>
    %c1_i32_107 = arith.constant 1 : i32
    %323 = tpu.dynamic_rotate %317 by %c1_i32_107 dim 1 : vector<32x256xf32>, i32 -> vector<32x256xf32>
    %cst_108 = arith.constant 0.000000e+00 : f32
    %324 = vector.shape_cast %18 : vector<1x256xi1> to vector<1x256xi1>
    %325 = vector.broadcast %324 : vector<1x256xi1> to vector<32x256xi1>
    %326 = vector.broadcast %cst_108 : f32 to vector<32x256xf32>
    %327 = arith.select %325, %323, %326 : vector<32x256xi1>, vector<32x256xf32>
    %cst_109 = arith.constant dense<0.000000e+00> : vector<32x256xf32>
    %328 = tpu.matmul %322, %327, %cst_109 {dimension_numbers = #tpu.dot_dimension_numbers<[1], [0], [0], [1], [0, 0, 1, 1], [], []>} : vector<32x32xf32>, vector<32x256xf32>, vector<32x256xf32> -> vector<32x256xf32>
    %329 = arith.addf %320, %328 : vector<32x256xf32>
    %330 = vector.extract_strided_slice %26 {offsets = [2, 0, 0], sizes = [1, 32, 32], strides = [1, 1, 1]} : vector<3x32x32xf32> to vector<1x32x32xf32>
    %331 = vector.shape_cast %330 : vector<1x32x32xf32> to vector<32x32xf32>
    %c255_i32_110 = arith.constant 255 : i32
    %332 = tpu.dynamic_rotate %317 by %c255_i32_110 dim 1 : vector<32x256xf32>, i32 -> vector<32x256xf32>
    %cst_111 = arith.constant 0.000000e+00 : f32
    %333 = vector.shape_cast %20 : vector<1x256xi1> to vector<1x256xi1>
    %334 = vector.broadcast %333 : vector<1x256xi1> to vector<32x256xi1>
    %335 = vector.broadcast %cst_111 : f32 to vector<32x256xf32>
    %336 = arith.select %334, %332, %335 : vector<32x256xi1>, vector<32x256xf32>
    %cst_112 = arith.constant dense<0.000000e+00> : vector<32x256xf32>
    %337 = tpu.matmul %331, %336, %cst_112 {dimension_numbers = #tpu.dot_dimension_numbers<[1], [0], [0], [1], [0, 0, 1, 1], [], []>} : vector<32x32xf32>, vector<32x256xf32>, vector<32x256xf32> -> vector<32x256xf32>
    %338 = arith.addf %329, %337 : vector<32x256xf32>
    %339 = arith.addf %338, %35 : vector<32x256xf32>
    %cst_113 = arith.constant 0.000000e+00 : f32
    %340 = vector.broadcast %cst_113 : f32 to vector<32x256xf32>
    %341 = arith.maximumf %339, %340 : vector<32x256xf32>
    %342 = vector.extract_strided_slice %341 {offsets = [0, 0], sizes = [32, 128], strides = [1, 1]} : vector<32x256xf32> to vector<32x128xf32>
    %cst_114 = arith.constant dense<0.000000e+00> : vector<32xf32>
    %343 = vector.multi_reduction <add>, %342, %cst_114 [1] : vector<32x128xf32> to vector<32xf32>
    %344 = vector.shape_cast %343 : vector<32xf32> to vector<32x1xf32>
    %cst_115 = arith.constant 1.280000e+02 : f32
    %345 = vector.broadcast %cst_115 : f32 to vector<32x1xf32>
    %346 = arith.divf %344, %345 : vector<32x1xf32>
    %347 = vector.broadcast %346 : vector<32x1xf32> to vector<32x128xf32>
    %348 = arith.subf %342, %347 : vector<32x128xf32>
    %349 = arith.mulf %348, %348 : vector<32x128xf32>
    %cst_116 = arith.constant dense<0.000000e+00> : vector<32xf32>
    %350 = vector.multi_reduction <add>, %349, %cst_116 [1] : vector<32x128xf32> to vector<32xf32>
    %351 = vector.shape_cast %350 : vector<32xf32> to vector<32x1xf32>
    %cst_117 = arith.constant 1.280000e+02 : f32
    %352 = vector.broadcast %cst_117 : f32 to vector<32x1xf32>
    %353 = arith.divf %351, %352 : vector<32x1xf32>
    %cst_118 = arith.constant 9.99999974E-6 : f32
    %354 = vector.broadcast %cst_118 : f32 to vector<32x1xf32>
    %355 = arith.addf %353, %354 : vector<32x1xf32>
    %356 = math.rsqrt %355 : vector<32x1xf32>
    %357 = vector.broadcast %356 : vector<32x1xf32> to vector<32x128xf32>
    %358 = arith.mulf %348, %357 : vector<32x128xf32>
    %359 = vector.broadcast %45 : vector<1x128xf32> to vector<32x128xf32>
    %360 = arith.mulf %358, %359 : vector<32x128xf32>
    %361 = vector.broadcast %46 : vector<1x128xf32> to vector<32x128xf32>
    %362 = arith.addf %360, %361 : vector<32x128xf32>
    %363 = vector.extract_strided_slice %341 {offsets = [0, 128], sizes = [32, 128], strides = [1, 1]} : vector<32x256xf32> to vector<32x128xf32>
    %cst_119 = arith.constant dense<0.000000e+00> : vector<32xf32>
    %364 = vector.multi_reduction <add>, %363, %cst_119 [1] : vector<32x128xf32> to vector<32xf32>
    %365 = vector.shape_cast %364 : vector<32xf32> to vector<32x1xf32>
    %cst_120 = arith.constant 1.280000e+02 : f32
    %366 = vector.broadcast %cst_120 : f32 to vector<32x1xf32>
    %367 = arith.divf %365, %366 : vector<32x1xf32>
    %368 = vector.broadcast %367 : vector<32x1xf32> to vector<32x128xf32>
    %369 = arith.subf %363, %368 : vector<32x128xf32>
    %370 = arith.mulf %369, %369 : vector<32x128xf32>
    %cst_121 = arith.constant dense<0.000000e+00> : vector<32xf32>
    %371 = vector.multi_reduction <add>, %370, %cst_121 [1] : vector<32x128xf32> to vector<32xf32>
    %372 = vector.shape_cast %371 : vector<32xf32> to vector<32x1xf32>
    %cst_122 = arith.constant 1.280000e+02 : f32
    %373 = vector.broadcast %cst_122 : f32 to vector<32x1xf32>
    %374 = arith.divf %372, %373 : vector<32x1xf32>
    %cst_123 = arith.constant 9.99999974E-6 : f32
    %375 = vector.broadcast %cst_123 : f32 to vector<32x1xf32>
    %376 = arith.addf %374, %375 : vector<32x1xf32>
    %377 = math.rsqrt %376 : vector<32x1xf32>
    %378 = vector.broadcast %377 : vector<32x1xf32> to vector<32x128xf32>
    %379 = arith.mulf %369, %378 : vector<32x128xf32>
    %380 = vector.broadcast %45 : vector<1x128xf32> to vector<32x128xf32>
    %381 = arith.mulf %379, %380 : vector<32x128xf32>
    %382 = vector.broadcast %46 : vector<1x128xf32> to vector<32x128xf32>
    %383 = arith.addf %381, %382 : vector<32x128xf32>
    %384 = tpu.concatenate %362, %383 in 1 : vector<32x128xf32>, vector<32x128xf32> -> vector<32x256xf32>
    %385 = vector.extract_strided_slice %27 {offsets = [1, 0, 0], sizes = [1, 32, 32], strides = [1, 1, 1]} : vector<3x32x32xf32> to vector<1x32x32xf32>
    %386 = vector.shape_cast %385 : vector<1x32x32xf32> to vector<32x32xf32>
    %cst_124 = arith.constant dense<0.000000e+00> : vector<32x256xf32>
    %387 = tpu.matmul %386, %384, %cst_124 {dimension_numbers = #tpu.dot_dimension_numbers<[1], [0], [0], [1], [0, 0, 1, 1], [], []>} : vector<32x32xf32>, vector<32x256xf32>, vector<32x256xf32> -> vector<32x256xf32>
    %388 = vector.extract_strided_slice %27 {offsets = [0, 0, 0], sizes = [1, 32, 32], strides = [1, 1, 1]} : vector<3x32x32xf32> to vector<1x32x32xf32>
    %389 = vector.shape_cast %388 : vector<1x32x32xf32> to vector<32x32xf32>
    %c1_i32_125 = arith.constant 1 : i32
    %390 = tpu.dynamic_rotate %384 by %c1_i32_125 dim 1 : vector<32x256xf32>, i32 -> vector<32x256xf32>
    %cst_126 = arith.constant 0.000000e+00 : f32
    %391 = vector.shape_cast %18 : vector<1x256xi1> to vector<1x256xi1>
    %392 = vector.broadcast %391 : vector<1x256xi1> to vector<32x256xi1>
    %393 = vector.broadcast %cst_126 : f32 to vector<32x256xf32>
    %394 = arith.select %392, %390, %393 : vector<32x256xi1>, vector<32x256xf32>
    %cst_127 = arith.constant dense<0.000000e+00> : vector<32x256xf32>
    %395 = tpu.matmul %389, %394, %cst_127 {dimension_numbers = #tpu.dot_dimension_numbers<[1], [0], [0], [1], [0, 0, 1, 1], [], []>} : vector<32x32xf32>, vector<32x256xf32>, vector<32x256xf32> -> vector<32x256xf32>
    %396 = arith.addf %387, %395 : vector<32x256xf32>
    %397 = vector.extract_strided_slice %27 {offsets = [2, 0, 0], sizes = [1, 32, 32], strides = [1, 1, 1]} : vector<3x32x32xf32> to vector<1x32x32xf32>
    %398 = vector.shape_cast %397 : vector<1x32x32xf32> to vector<32x32xf32>
    %c255_i32_128 = arith.constant 255 : i32
    %399 = tpu.dynamic_rotate %384 by %c255_i32_128 dim 1 : vector<32x256xf32>, i32 -> vector<32x256xf32>
    %cst_129 = arith.constant 0.000000e+00 : f32
    %400 = vector.shape_cast %20 : vector<1x256xi1> to vector<1x256xi1>
    %401 = vector.broadcast %400 : vector<1x256xi1> to vector<32x256xi1>
    %402 = vector.broadcast %cst_129 : f32 to vector<32x256xf32>
    %403 = arith.select %401, %399, %402 : vector<32x256xi1>, vector<32x256xf32>
    %cst_130 = arith.constant dense<0.000000e+00> : vector<32x256xf32>
    %404 = tpu.matmul %398, %403, %cst_130 {dimension_numbers = #tpu.dot_dimension_numbers<[1], [0], [0], [1], [0, 0, 1, 1], [], []>} : vector<32x32xf32>, vector<32x256xf32>, vector<32x256xf32> -> vector<32x256xf32>
    %405 = arith.addf %396, %404 : vector<32x256xf32>
    %406 = arith.addf %405, %38 : vector<32x256xf32>
    %407 = vector.extract_strided_slice %28 {offsets = [1, 0, 0], sizes = [1, 32, 32], strides = [1, 1, 1]} : vector<3x32x32xf32> to vector<1x32x32xf32>
    %408 = vector.shape_cast %407 : vector<1x32x32xf32> to vector<32x32xf32>
    %cst_131 = arith.constant dense<0.000000e+00> : vector<32x256xf32>
    %409 = tpu.matmul %408, %406, %cst_131 {dimension_numbers = #tpu.dot_dimension_numbers<[1], [0], [0], [1], [0, 0, 1, 1], [], []>} : vector<32x32xf32>, vector<32x256xf32>, vector<32x256xf32> -> vector<32x256xf32>
    %410 = vector.extract_strided_slice %28 {offsets = [0, 0, 0], sizes = [1, 32, 32], strides = [1, 1, 1]} : vector<3x32x32xf32> to vector<1x32x32xf32>
    %411 = vector.shape_cast %410 : vector<1x32x32xf32> to vector<32x32xf32>
    %c2_i32_132 = arith.constant 2 : i32
    %412 = tpu.dynamic_rotate %406 by %c2_i32_132 dim 1 : vector<32x256xf32>, i32 -> vector<32x256xf32>
    %cst_133 = arith.constant 0.000000e+00 : f32
    %413 = vector.shape_cast %22 : vector<1x256xi1> to vector<1x256xi1>
    %414 = vector.broadcast %413 : vector<1x256xi1> to vector<32x256xi1>
    %415 = vector.broadcast %cst_133 : f32 to vector<32x256xf32>
    %416 = arith.select %414, %412, %415 : vector<32x256xi1>, vector<32x256xf32>
    %cst_134 = arith.constant dense<0.000000e+00> : vector<32x256xf32>
    %417 = tpu.matmul %411, %416, %cst_134 {dimension_numbers = #tpu.dot_dimension_numbers<[1], [0], [0], [1], [0, 0, 1, 1], [], []>} : vector<32x32xf32>, vector<32x256xf32>, vector<32x256xf32> -> vector<32x256xf32>
    %418 = arith.addf %409, %417 : vector<32x256xf32>
    %419 = vector.extract_strided_slice %28 {offsets = [2, 0, 0], sizes = [1, 32, 32], strides = [1, 1, 1]} : vector<3x32x32xf32> to vector<1x32x32xf32>
    %420 = vector.shape_cast %419 : vector<1x32x32xf32> to vector<32x32xf32>
    %c254_i32_135 = arith.constant 254 : i32
    %421 = tpu.dynamic_rotate %406 by %c254_i32_135 dim 1 : vector<32x256xf32>, i32 -> vector<32x256xf32>
    %cst_136 = arith.constant 0.000000e+00 : f32
    %422 = vector.shape_cast %24 : vector<1x256xi1> to vector<1x256xi1>
    %423 = vector.broadcast %422 : vector<1x256xi1> to vector<32x256xi1>
    %424 = vector.broadcast %cst_136 : f32 to vector<32x256xf32>
    %425 = arith.select %423, %421, %424 : vector<32x256xi1>, vector<32x256xf32>
    %cst_137 = arith.constant dense<0.000000e+00> : vector<32x256xf32>
    %426 = tpu.matmul %420, %425, %cst_137 {dimension_numbers = #tpu.dot_dimension_numbers<[1], [0], [0], [1], [0, 0, 1, 1], [], []>} : vector<32x32xf32>, vector<32x256xf32>, vector<32x256xf32> -> vector<32x256xf32>
    %427 = arith.addf %418, %426 : vector<32x256xf32>
    %428 = arith.addf %427, %41 : vector<32x256xf32>
    %429 = vector.extract_strided_slice %26 {offsets = [1, 0, 0], sizes = [1, 32, 32], strides = [1, 1, 1]} : vector<3x32x32xf32> to vector<1x32x32xf32>
    %430 = vector.shape_cast %429 : vector<1x32x32xf32> to vector<32x32xf32>
    %cst_138 = arith.constant dense<0.000000e+00> : vector<32x256xf32>
    %431 = tpu.matmul %430, %428, %cst_138 {dimension_numbers = #tpu.dot_dimension_numbers<[1], [0], [0], [1], [0, 0, 1, 1], [], []>} : vector<32x32xf32>, vector<32x256xf32>, vector<32x256xf32> -> vector<32x256xf32>
    %432 = vector.extract_strided_slice %26 {offsets = [0, 0, 0], sizes = [1, 32, 32], strides = [1, 1, 1]} : vector<3x32x32xf32> to vector<1x32x32xf32>
    %433 = vector.shape_cast %432 : vector<1x32x32xf32> to vector<32x32xf32>
    %c1_i32_139 = arith.constant 1 : i32
    %434 = tpu.dynamic_rotate %428 by %c1_i32_139 dim 1 : vector<32x256xf32>, i32 -> vector<32x256xf32>
    %cst_140 = arith.constant 0.000000e+00 : f32
    %435 = vector.shape_cast %18 : vector<1x256xi1> to vector<1x256xi1>
    %436 = vector.broadcast %435 : vector<1x256xi1> to vector<32x256xi1>
    %437 = vector.broadcast %cst_140 : f32 to vector<32x256xf32>
    %438 = arith.select %436, %434, %437 : vector<32x256xi1>, vector<32x256xf32>
    %cst_141 = arith.constant dense<0.000000e+00> : vector<32x256xf32>
    %439 = tpu.matmul %433, %438, %cst_141 {dimension_numbers = #tpu.dot_dimension_numbers<[1], [0], [0], [1], [0, 0, 1, 1], [], []>} : vector<32x32xf32>, vector<32x256xf32>, vector<32x256xf32> -> vector<32x256xf32>
    %440 = arith.addf %431, %439 : vector<32x256xf32>
    %441 = vector.extract_strided_slice %26 {offsets = [2, 0, 0], sizes = [1, 32, 32], strides = [1, 1, 1]} : vector<3x32x32xf32> to vector<1x32x32xf32>
    %442 = vector.shape_cast %441 : vector<1x32x32xf32> to vector<32x32xf32>
    %c255_i32_142 = arith.constant 255 : i32
    %443 = tpu.dynamic_rotate %428 by %c255_i32_142 dim 1 : vector<32x256xf32>, i32 -> vector<32x256xf32>
    %cst_143 = arith.constant 0.000000e+00 : f32
    %444 = vector.shape_cast %20 : vector<1x256xi1> to vector<1x256xi1>
    %445 = vector.broadcast %444 : vector<1x256xi1> to vector<32x256xi1>
    %446 = vector.broadcast %cst_143 : f32 to vector<32x256xf32>
    %447 = arith.select %445, %443, %446 : vector<32x256xi1>, vector<32x256xf32>
    %cst_144 = arith.constant dense<0.000000e+00> : vector<32x256xf32>
    %448 = tpu.matmul %442, %447, %cst_144 {dimension_numbers = #tpu.dot_dimension_numbers<[1], [0], [0], [1], [0, 0, 1, 1], [], []>} : vector<32x32xf32>, vector<32x256xf32>, vector<32x256xf32> -> vector<32x256xf32>
    %449 = arith.addf %440, %448 : vector<32x256xf32>
    %450 = arith.addf %449, %35 : vector<32x256xf32>
    %cst_145 = arith.constant 0.000000e+00 : f32
    %451 = vector.broadcast %cst_145 : f32 to vector<32x256xf32>
    %452 = arith.maximumf %450, %451 : vector<32x256xf32>
    %453 = vector.extract_strided_slice %452 {offsets = [0, 0], sizes = [32, 128], strides = [1, 1]} : vector<32x256xf32> to vector<32x128xf32>
    %cst_146 = arith.constant dense<0.000000e+00> : vector<32xf32>
    %454 = vector.multi_reduction <add>, %453, %cst_146 [1] : vector<32x128xf32> to vector<32xf32>
    %455 = vector.shape_cast %454 : vector<32xf32> to vector<32x1xf32>
    %cst_147 = arith.constant 1.280000e+02 : f32
    %456 = vector.broadcast %cst_147 : f32 to vector<32x1xf32>
    %457 = arith.divf %455, %456 : vector<32x1xf32>
    %458 = vector.broadcast %457 : vector<32x1xf32> to vector<32x128xf32>
    %459 = arith.subf %453, %458 : vector<32x128xf32>
    %460 = arith.mulf %459, %459 : vector<32x128xf32>
    %cst_148 = arith.constant dense<0.000000e+00> : vector<32xf32>
    %461 = vector.multi_reduction <add>, %460, %cst_148 [1] : vector<32x128xf32> to vector<32xf32>
    %462 = vector.shape_cast %461 : vector<32xf32> to vector<32x1xf32>
    %cst_149 = arith.constant 1.280000e+02 : f32
    %463 = vector.broadcast %cst_149 : f32 to vector<32x1xf32>
    %464 = arith.divf %462, %463 : vector<32x1xf32>
    %cst_150 = arith.constant 9.99999974E-6 : f32
    %465 = vector.broadcast %cst_150 : f32 to vector<32x1xf32>
    %466 = arith.addf %464, %465 : vector<32x1xf32>
    %467 = math.rsqrt %466 : vector<32x1xf32>
    %468 = vector.broadcast %467 : vector<32x1xf32> to vector<32x128xf32>
    %469 = arith.mulf %459, %468 : vector<32x128xf32>
    %470 = vector.broadcast %45 : vector<1x128xf32> to vector<32x128xf32>
    %471 = arith.mulf %469, %470 : vector<32x128xf32>
    %472 = vector.broadcast %46 : vector<1x128xf32> to vector<32x128xf32>
    %473 = arith.addf %471, %472 : vector<32x128xf32>
    %474 = vector.extract_strided_slice %452 {offsets = [0, 128], sizes = [32, 128], strides = [1, 1]} : vector<32x256xf32> to vector<32x128xf32>
    %cst_151 = arith.constant dense<0.000000e+00> : vector<32xf32>
    %475 = vector.multi_reduction <add>, %474, %cst_151 [1] : vector<32x128xf32> to vector<32xf32>
    %476 = vector.shape_cast %475 : vector<32xf32> to vector<32x1xf32>
    %cst_152 = arith.constant 1.280000e+02 : f32
    %477 = vector.broadcast %cst_152 : f32 to vector<32x1xf32>
    %478 = arith.divf %476, %477 : vector<32x1xf32>
    %479 = vector.broadcast %478 : vector<32x1xf32> to vector<32x128xf32>
    %480 = arith.subf %474, %479 : vector<32x128xf32>
    %481 = arith.mulf %480, %480 : vector<32x128xf32>
    %cst_153 = arith.constant dense<0.000000e+00> : vector<32xf32>
    %482 = vector.multi_reduction <add>, %481, %cst_153 [1] : vector<32x128xf32> to vector<32xf32>
    %483 = vector.shape_cast %482 : vector<32xf32> to vector<32x1xf32>
    %cst_154 = arith.constant 1.280000e+02 : f32
    %484 = vector.broadcast %cst_154 : f32 to vector<32x1xf32>
    %485 = arith.divf %483, %484 : vector<32x1xf32>
    %cst_155 = arith.constant 9.99999974E-6 : f32
    %486 = vector.broadcast %cst_155 : f32 to vector<32x1xf32>
    %487 = arith.addf %485, %486 : vector<32x1xf32>
    %488 = math.rsqrt %487 : vector<32x1xf32>
    %489 = vector.broadcast %488 : vector<32x1xf32> to vector<32x128xf32>
    %490 = arith.mulf %480, %489 : vector<32x128xf32>
    %491 = vector.broadcast %45 : vector<1x128xf32> to vector<32x128xf32>
    %492 = arith.mulf %490, %491 : vector<32x128xf32>
    %493 = vector.broadcast %46 : vector<1x128xf32> to vector<32x128xf32>
    %494 = arith.addf %492, %493 : vector<32x128xf32>
    %495 = tpu.concatenate %473, %494 in 1 : vector<32x128xf32>, vector<32x128xf32> -> vector<32x256xf32>
    %496 = vector.extract_strided_slice %27 {offsets = [1, 0, 0], sizes = [1, 32, 32], strides = [1, 1, 1]} : vector<3x32x32xf32> to vector<1x32x32xf32>
    %497 = vector.shape_cast %496 : vector<1x32x32xf32> to vector<32x32xf32>
    %cst_156 = arith.constant dense<0.000000e+00> : vector<32x256xf32>
    %498 = tpu.matmul %497, %495, %cst_156 {dimension_numbers = #tpu.dot_dimension_numbers<[1], [0], [0], [1], [0, 0, 1, 1], [], []>} : vector<32x32xf32>, vector<32x256xf32>, vector<32x256xf32> -> vector<32x256xf32>
    %499 = vector.extract_strided_slice %27 {offsets = [0, 0, 0], sizes = [1, 32, 32], strides = [1, 1, 1]} : vector<3x32x32xf32> to vector<1x32x32xf32>
    %500 = vector.shape_cast %499 : vector<1x32x32xf32> to vector<32x32xf32>
    %c1_i32_157 = arith.constant 1 : i32
    %501 = tpu.dynamic_rotate %495 by %c1_i32_157 dim 1 : vector<32x256xf32>, i32 -> vector<32x256xf32>
    %cst_158 = arith.constant 0.000000e+00 : f32
    %502 = vector.shape_cast %18 : vector<1x256xi1> to vector<1x256xi1>
    %503 = vector.broadcast %502 : vector<1x256xi1> to vector<32x256xi1>
    %504 = vector.broadcast %cst_158 : f32 to vector<32x256xf32>
    %505 = arith.select %503, %501, %504 : vector<32x256xi1>, vector<32x256xf32>
    %cst_159 = arith.constant dense<0.000000e+00> : vector<32x256xf32>
    %506 = tpu.matmul %500, %505, %cst_159 {dimension_numbers = #tpu.dot_dimension_numbers<[1], [0], [0], [1], [0, 0, 1, 1], [], []>} : vector<32x32xf32>, vector<32x256xf32>, vector<32x256xf32> -> vector<32x256xf32>
    %507 = arith.addf %498, %506 : vector<32x256xf32>
    %508 = vector.extract_strided_slice %27 {offsets = [2, 0, 0], sizes = [1, 32, 32], strides = [1, 1, 1]} : vector<3x32x32xf32> to vector<1x32x32xf32>
    %509 = vector.shape_cast %508 : vector<1x32x32xf32> to vector<32x32xf32>
    %c255_i32_160 = arith.constant 255 : i32
    %510 = tpu.dynamic_rotate %495 by %c255_i32_160 dim 1 : vector<32x256xf32>, i32 -> vector<32x256xf32>
    %cst_161 = arith.constant 0.000000e+00 : f32
    %511 = vector.shape_cast %20 : vector<1x256xi1> to vector<1x256xi1>
    %512 = vector.broadcast %511 : vector<1x256xi1> to vector<32x256xi1>
    %513 = vector.broadcast %cst_161 : f32 to vector<32x256xf32>
    %514 = arith.select %512, %510, %513 : vector<32x256xi1>, vector<32x256xf32>
    %cst_162 = arith.constant dense<0.000000e+00> : vector<32x256xf32>
    %515 = tpu.matmul %509, %514, %cst_162 {dimension_numbers = #tpu.dot_dimension_numbers<[1], [0], [0], [1], [0, 0, 1, 1], [], []>} : vector<32x32xf32>, vector<32x256xf32>, vector<32x256xf32> -> vector<32x256xf32>
    %516 = arith.addf %507, %515 : vector<32x256xf32>
    %517 = arith.addf %516, %38 : vector<32x256xf32>
    %518 = vector.extract_strided_slice %28 {offsets = [1, 0, 0], sizes = [1, 32, 32], strides = [1, 1, 1]} : vector<3x32x32xf32> to vector<1x32x32xf32>
    %519 = vector.shape_cast %518 : vector<1x32x32xf32> to vector<32x32xf32>
    %cst_163 = arith.constant dense<0.000000e+00> : vector<32x256xf32>
    %520 = tpu.matmul %519, %517, %cst_163 {dimension_numbers = #tpu.dot_dimension_numbers<[1], [0], [0], [1], [0, 0, 1, 1], [], []>} : vector<32x32xf32>, vector<32x256xf32>, vector<32x256xf32> -> vector<32x256xf32>
    %521 = vector.extract_strided_slice %28 {offsets = [0, 0, 0], sizes = [1, 32, 32], strides = [1, 1, 1]} : vector<3x32x32xf32> to vector<1x32x32xf32>
    %522 = vector.shape_cast %521 : vector<1x32x32xf32> to vector<32x32xf32>
    %c2_i32_164 = arith.constant 2 : i32
    %523 = tpu.dynamic_rotate %517 by %c2_i32_164 dim 1 : vector<32x256xf32>, i32 -> vector<32x256xf32>
    %cst_165 = arith.constant 0.000000e+00 : f32
    %524 = vector.shape_cast %22 : vector<1x256xi1> to vector<1x256xi1>
    %525 = vector.broadcast %524 : vector<1x256xi1> to vector<32x256xi1>
    %526 = vector.broadcast %cst_165 : f32 to vector<32x256xf32>
    %527 = arith.select %525, %523, %526 : vector<32x256xi1>, vector<32x256xf32>
    %cst_166 = arith.constant dense<0.000000e+00> : vector<32x256xf32>
    %528 = tpu.matmul %522, %527, %cst_166 {dimension_numbers = #tpu.dot_dimension_numbers<[1], [0], [0], [1], [0, 0, 1, 1], [], []>} : vector<32x32xf32>, vector<32x256xf32>, vector<32x256xf32> -> vector<32x256xf32>
    %529 = arith.addf %520, %528 : vector<32x256xf32>
    %530 = vector.extract_strided_slice %28 {offsets = [2, 0, 0], sizes = [1, 32, 32], strides = [1, 1, 1]} : vector<3x32x32xf32> to vector<1x32x32xf32>
    %531 = vector.shape_cast %530 : vector<1x32x32xf32> to vector<32x32xf32>
    %c254_i32_167 = arith.constant 254 : i32
    %532 = tpu.dynamic_rotate %517 by %c254_i32_167 dim 1 : vector<32x256xf32>, i32 -> vector<32x256xf32>
    %cst_168 = arith.constant 0.000000e+00 : f32
    %533 = vector.shape_cast %24 : vector<1x256xi1> to vector<1x256xi1>
    %534 = vector.broadcast %533 : vector<1x256xi1> to vector<32x256xi1>
    %535 = vector.broadcast %cst_168 : f32 to vector<32x256xf32>
    %536 = arith.select %534, %532, %535 : vector<32x256xi1>, vector<32x256xf32>
    %cst_169 = arith.constant dense<0.000000e+00> : vector<32x256xf32>
    %537 = tpu.matmul %531, %536, %cst_169 {dimension_numbers = #tpu.dot_dimension_numbers<[1], [0], [0], [1], [0, 0, 1, 1], [], []>} : vector<32x32xf32>, vector<32x256xf32>, vector<32x256xf32> -> vector<32x256xf32>
    %538 = arith.addf %529, %537 : vector<32x256xf32>
    %539 = arith.addf %538, %41 : vector<32x256xf32>
    %cst_170 = arith.constant dense<0.000000e+00> : vector<8x256xf32>
    %540 = tpu.matmul %29, %539, %cst_170 {dimension_numbers = #tpu.dot_dimension_numbers<[1], [0], [0], [1], [0, 0, 1, 1], [], []>} : vector<8x32xf32>, vector<32x256xf32>, vector<8x256xf32> -> vector<8x256xf32>
    %541 = arith.addf %540, %44 : vector<8x256xf32>
    %c0_171 = arith.constant 0 : index
    %c0_172 = arith.constant 0 : index
    %c0_173 = arith.constant 0 : index
    %542 = vector.load %arg14[%c0_171, %c0_172, %c0_173] : memref<1x8x256xf32, #tpu.memory_space<vmem>>, vector<1x8x256xf32>
    %543 = vector.shape_cast %542 : vector<1x8x256xf32> to vector<8x256xf32>
    %544 = vector.shape_cast %541 : vector<8x256xf32> to vector<1x8x256xf32>
    tpu.vector_store %arg14[%c0_171, %c0_172, %c0_173], %544 {strides = array<i32>} : memref<1x8x256xf32, #tpu.memory_space<vmem>>, vector<1x8x256xf32>,
    return
  }
  func.func @transform_0(%arg0: i32) -> (i32, i32, i32) {
    %c0_i32 = arith.constant 0 : i32
    %c0_i32_0 = arith.constant 0 : i32
    %c0_i32_1 = arith.constant 0 : i32
    return %arg0, %c0_i32, %c0_i32_0 : i32, i32, i32
  }
  func.func @transform_1(%arg0: i32) -> (i32, i32) {
    %c0_i32 = arith.constant 0 : i32
    %c0_i32_0 = arith.constant 0 : i32
    %c0_i32_1 = arith.constant 0 : i32
    return %c0_i32, %c0_i32_0 : i32, i32
  }
  func.func @transform_2(%arg0: i32) -> (i32, i32) {
    %c0_i32 = arith.constant 0 : i32
    %c0_i32_0 = arith.constant 0 : i32
    %c0_i32_1 = arith.constant 0 : i32
    return %c0_i32, %c0_i32_0 : i32, i32
  }
  func.func @transform_3(%arg0: i32) -> (i32, i32, i32) {
    %c0_i32 = arith.constant 0 : i32
    %c0_i32_0 = arith.constant 0 : i32
    %c0_i32_1 = arith.constant 0 : i32
    %c0_i32_2 = arith.constant 0 : i32
    return %c0_i32, %c0_i32_0, %c0_i32_1 : i32, i32, i32
  }
  func.func @transform_4(%arg0: i32) -> (i32, i32) {
    %c0_i32 = arith.constant 0 : i32
    %c0_i32_0 = arith.constant 0 : i32
    %c0_i32_1 = arith.constant 0 : i32
    return %c0_i32, %c0_i32_0 : i32, i32
  }
  func.func @transform_5(%arg0: i32) -> (i32, i32, i32) {
    %c0_i32 = arith.constant 0 : i32
    %c0_i32_0 = arith.constant 0 : i32
    %c0_i32_1 = arith.constant 0 : i32
    %c0_i32_2 = arith.constant 0 : i32
    return %c0_i32, %c0_i32_0, %c0_i32_1 : i32, i32, i32
  }
  func.func @transform_6(%arg0: i32) -> (i32, i32) {
    %c0_i32 = arith.constant 0 : i32
    %c0_i32_0 = arith.constant 0 : i32
    %c0_i32_1 = arith.constant 0 : i32
    return %c0_i32, %c0_i32_0 : i32, i32
  }
  func.func @transform_7(%arg0: i32) -> (i32, i32, i32) {
    %c0_i32 = arith.constant 0 : i32
    %c0_i32_0 = arith.constant 0 : i32
    %c0_i32_1 = arith.constant 0 : i32
    %c0_i32_2 = arith.constant 0 : i32
    return %c0_i32, %c0_i32_0, %c0_i32_1 : i32, i32, i32
  }
  func.func @transform_8(%arg0: i32) -> (i32, i32) {
    %c0_i32 = arith.constant 0 : i32
    %c0_i32_0 = arith.constant 0 : i32
    %c0_i32_1 = arith.constant 0 : i32
    return %c0_i32, %c0_i32_0 : i32, i32
  }
  func.func @transform_9(%arg0: i32) -> (i32, i32) {
    %c0_i32 = arith.constant 0 : i32
    %c0_i32_0 = arith.constant 0 : i32
    %c0_i32_1 = arith.constant 0 : i32
    return %c0_i32, %c0_i32_0 : i32, i32
  }
  func.func @transform_10(%arg0: i32) -> (i32, i32) {
    %c0_i32 = arith.constant 0 : i32
    %c0_i32_0 = arith.constant 0 : i32
    %c0_i32_1 = arith.constant 0 : i32
    return %c0_i32, %c0_i32_0 : i32, i32
  }
  func.func @transform_11(%arg0: i32) -> (i32, i32) {
    %c0_i32 = arith.constant 0 : i32
    %c0_i32_0 = arith.constant 0 : i32
    %c0_i32_1 = arith.constant 0 : i32
    return %c0_i32, %c0_i32_0 : i32, i32
  }
  func.func @transform_12(%arg0: i32) -> (i32, i32) {
    %c0_i32 = arith.constant 0 : i32
    %c0_i32_0 = arith.constant 0 : i32
    %c0_i32_1 = arith.constant 0 : i32
    return %c0_i32, %c0_i32_0 : i32, i32
  }
  func.func @transform_13(%arg0: i32) -> (i32, i32, i32) {
    %c0_i32 = arith.constant 0 : i32
    %c0_i32_0 = arith.constant 0 : i32
    %c0_i32_1 = arith.constant 0 : i32
    return %arg0, %c0_i32, %c0_i32_0 : i32, i32, i32
  }
}

</mosaic_0001>

<bundles_post_ra>
// kernel: tpu_custom_call.1
= control target key start
LH: loop header
LB: loop body
LE: loop exit
PB: predicated region body
PF: predicated region fallthrough
CT: control target
= control target key end

     0   :  { %s8422_s0 = inlined_call_operand.hbm [shape: f32[2,64,256], index: 0, kind: input, shape index: {}]   ;;  %s8423_s1 = inlined_call_operand.vmem [shape: f32[32,64], index: 1, kind: input, shape index: {}]   ;;  %s8424_s2 = inlined_call_operand.vmem [shape: f32[32,1], index: 2, kind: input, shape index: {}]   ;;  %s8425_s3 = inlined_call_operand.hbm [shape: f32[3,32,32], index: 3, kind: input, shape index: {}]   ;;  %s8426_s4 = inlined_call_operand.vmem [shape: f32[32,1], index: 4, kind: input, shape index: {}]   ;;  %s8427_s5 = inlined_call_operand.hbm [shape: f32[3,32,32], index: 5, kind: input, shape index: {}]   ;;  %s8428_s6 = inlined_call_operand.vmem [shape: f32[32,1], index: 6, kind: input, shape index: {}]   ;;  %s8429_s7 = inlined_call_operand.hbm [shape: f32[3,32,32], index: 7, kind: input, shape index: {}]   ;;  %s8430_s8 = inlined_call_operand.vmem [shape: f32[32,1], index: 8, kind: input, shape index: {}]   ;;  %s8431_s9 = inlined_call_operand.vmem [shape: f32[1,128], index: 9, kind: input, shape index: {}]   ;;  %s8432_s10 = inlined_call_operand.vmem [shape: f32[1,128], index: 10, kind: input, shape index: {}]   ;;  %s8433_s11 = inlined_call_operand.vmem [shape: f32[8,32], index: 11, kind: input, shape index: {}]   ;;  %s8434_s12 = inlined_call_operand.vmem [shape: f32[8,1], index: 12, kind: input, shape index: {}]   ;;  %s8435_s13 = inlined_call_operand.hbm [shape: f32[2,8,256], index: 13, kind: output, shape index: {}]  }
   0x1   :  { %8443 = sst [smem:[#allocation19_spill]] %s8425_s3 }
   0x2   :  { %8444 = sst [smem:[#allocation20_spill]] %s8427_s5 }
   0x3   :  { %8445 = sst [smem:[#allocation21_spill]] %s8429_s7 }
   0x4   :  { %18 = vsyncpa [#allocation3], 0 }
   0x5   :  { %20 = vsyncpa [#allocation3 + $0x1], 0 }
   0x6   :  { %21 = vsyncpa [#allocation6], 0 }
   0x7   :  { %22 = vsyncpa [#allocation9], 0 }
   0x8   :  { %23 = vsyncpa [#allocation4], 0 }
   0x9   :  { %25 = vsyncpa [#allocation4 + $0x1], 0  ;;  %s6136_s25 = smov 0   ;;  %s6138_s26 = smov 0  }
   0xa   :  { %s6140_s27 = smov 0   ;;  %s6142_s28 = smov 0  }
   0xb LB: > { %8446 = sst [smem:[#allocation15_spill]] %s6039_s25  ;;  %s6157_s29 = sadd.s32 4294967295, %s6051_s28   ;;  %s6051_s28 = sphi %s6142_s28, %s8539_s28   ;;  %s6047_s27 = sphi %s6140_s27, %s8536_s27   ;;  %s6043_s26 = sphi %s6138_s26, %s8538_s26   ;;  %s6039_s25 = sphi %s6136_s25, %s8537_s25  }
   0xc   : > { %8447 = sst [smem:[#allocation16_spill]] %s6047_s27  ;;  %s5049_s30 = sadd.s32 4294967294, %s6051_s28  }
   0xd   : > { %p51_p0 = scmp.ne.s32.totalorder %s6043_s26, %s6039_s25  ;;  %p52_p1 = scmp.eq.s32.totalorder %s6157_s29, 0 }
   0xe   : > { %p327_p2 = scmp.eq.s32.totalorder %s6157_s29, 1  ;;  %p333_p3 = scmp.eq.s32.totalorder %s5049_s30, 1 }
   0xf   : > { %p6166_p4 = por %p52_p1, %p51_p0  ;;  %p5050_p5 = scmp.ge.s32.totalorder %s6051_s28, 1 }
  0x10   : > { %p6171_p6 = por %p333_p3, %p51_p0  ;;  %p340_p7 = scmp.lt.s32.totalorder %s6051_s28, 3 }
  0x11   : > { %s8451_s3 = sld [smem:[#allocation19_spill]]  ;;  %s6053_s20 = smov [#allocation5]  }
  0x12   : > { %s8449_s15 = scalar_select %p6171_p6, 1, 0 }
  0x13   : > { %p6179_p8 = pnand %p5050_p5, %p340_p7  ;;  %s359_s21 = sshll.u32 %s6053_s20, 4  ;;  %s360_s21 = int_to_ptr.vmem [resolvable:$true] %s359_s21 }
  0x14   : > { %8450 = sst [smem:[#allocation17_spill]] %s8449_s15  ;;  %s6054_s16 = smov 128  }
  0x15   : > { %p5585_p9 = pneg %p6179_p8  ;;  %s8454_s5 = sld [smem:[#allocation20_spill]] }
  0x16   : > { %s6055_s17 = smov 8   ;;  %s6056_s20 = smov [#allocation7]  }
  0x17   : > { %s357_s18 = sshll.u32 %s8451_s3, 4  ;;  %p6187_p10 = pnand %p5585_p9, %p52_p1  ;;  %s358_s18 = int_to_ptr.hbm [resolvable:$true] %s357_s18 }
  0x18   : > { %s376_s3 = sshll.u32 %s6056_s20, 4  ;;  %s8455_s7 = sld [smem:[#allocation21_spill]]  ;;  %s377_s3 = int_to_ptr.vmem [resolvable:$true] %s376_s3 }
  0x19   : > { %5588 = dma.hbm_to_vmem [thread:$0]  (!%p6187_p10), %s358_s18, 1536, %s360_s21, [#allocation6], %s6054_s16, %s6054_s16, %s6055_s17  }
  0x1a   : > { %s6057_s24 = smov [#allocation8]   ;;  %s6203_s18 = sadd.s32 1, %s6051_s28  }
  0x1b   : > { %s374_s30 = sshll.u32 %s8454_s5, 4  ;;  %s393_s5 = sshll.u32 %s6057_s24, 4  ;;  %s375_s30 = int_to_ptr.hbm [resolvable:$true] %s374_s30  ;;  %s394_s5 = int_to_ptr.vmem [resolvable:$true] %s393_s5 }
  0x1c   : > { %5591 = dma.hbm_to_vmem [thread:$0]  (!%p6187_p10), %s375_s30, 1536, %s377_s3, [#allocation6], %s6054_s16, %s6054_s16, %s6055_s17  }
  0x1d   : > { %s35_s21 = ssub.s32 %s6051_s28, %s6203_s18  ;;  %s38_s20 = sadd.s32 1, %s6047_s27 }
  0x1e   : > { %s391_s23 = sshll.u32 %s8455_s7, 4  ;;  %p36_p12 = scmp.eq.s32.totalorder %s35_s21, 0  ;;  %s392_s23 = int_to_ptr.hbm [resolvable:$true] %s391_s23 }
  0x1f   : > { %5594 = dma.hbm_to_vmem [thread:$0]  (!%p6187_p10), %s392_s23, 1536, %s394_s5, [#allocation9], %s6054_s16, %s6054_s16, %s6055_s17  }
  0x20   : > { %p45_p13 = scmp.ne.s32.totalorder %s6047_s27, %s6043_s26  ;;  %p46_p0 = scmp.eq.s32.totalorder %s6051_s28, 0 }
  0x21   : > { %p5606_p3 = scmp.lt.s32.totalorder %s6051_s28, 2  ;;  %s422_s15 = sand.u32 1, %s6047_s27  }
  0x22   : > { %s6215_s25 = scalar_select %p36_p12, %s6047_s27, %s38_s20  }
  0x23   : > { %p47_p5 = por %p46_p0, %p45_p13  ;;  %p6219_p7 = por %p327_p2, %p45_p13 }
  0x24   : > { %8456 = sst [smem:[#allocation18_spill]] %s6215_s25  ;;  %s5559_s30 = sshll.u32 %s6051_s28, 7 }
  0x25   : > { %s5055_s22 = sshll.u32 %s422_s15, 7  ;;  %s431_s16 = scalar_lea.hbm %s8422_s0, %s5559_s30 }
  0x26   : > { %s432_s17 = sshll.u32 %s431_s16, 4  ;;  %s426_s23 = scalar_lea.vmem [#allocation2], %s5055_s22  ;;  %s433_s17 = int_to_ptr.hbm [resolvable:$true] %s432_s17 }
  0x27   : > { %s434_s21 = sshll.u32 %s426_s23, 4  ;;  %p6230_p9 = pnand %p5606_p3, %p47_p5  ;;  %s435_s21 = int_to_ptr.vmem [resolvable:$true] %s434_s21 }
  0x28   : > { %s423_s7 = scalar_lea.sflag [#allocation3], %s422_s15  ;;  %s5947_s25 = sshra.s32 %s433_s17, 4  ;;  %s5948_s25 = int_to_ptr.hbm [resolvable:$true] %s5947_s25 }
  0x29   : > { %s5949_s27 = scalar_lea.hbm %s5948_s25, 128  ;;  %p5951_p10 = pneg %p6230_p9 }
  0x2a   : > { %p5950_p2 = scmp.ne.s32.totalorder %s5948_s25, %s5949_s27  ;;  %s5954_s24 = scalar_lea.hbm %s8422_s0, 256 }
  0x2b   : > { %p5955_p0 = scmp.lt.s32.totalorder %s5948_s25, %s8422_s0  ;;  %p5956_p3 = scmp.lt.s32.totalorder %s5954_s24, %s5949_s27 }
  0x2c   : > { %p5952_p12 = pnand %p5951_p10, %p5950_p2 }
  0x2d   : > { %p5957_p5 = por %p5956_p3, %p5955_p0 }
  0x2e   : > { %p5953_p13 = pneg %p5952_p12 }
  0x30   : > { %p5958_p11 = pnand %p5957_p5, %p5953_p13 }
  0x32   : > { %5961 = shalt.err (!%p5958_p11)
}
  0x33   : > { %s6058_s15 = smov 256   ;;  %s6059_s23 = smov 16  }
  0x34   : > { %5598 = dma.hbm_to_vmem [thread:$0]  (!%p6230_p9), %s433_s17, 2048, %s435_s21, %s423_s7, %s6058_s15, %s6058_s15, %s6059_s23  }
  0x35   : > { %446 = sbr.rel (%p6179_p8) target bundleno = 5506 (0x1582), region = 72  ;;  %s6247_s30 = sand.u32 (!%p6179_p8), 1, %s6043_s26  }
  0x36   : > { %s5059_s22 = sshll.u32 (!%p6179_p8), %s6247_s30, 7  ;;  %s449_s25 = scalar_lea.sflag (!%p6179_p8), [#allocation3], %s6247_s30 }
  0x37   : > { %s6251_s27 = scalar_lea.vmem (!%p6179_p8), [#allocation2], %s5059_s22 }
  0x3a   : > { %6022 = dma.done.wait (%p6166_p4), %s449_s25, 2048  }
  0x3b   : > { %6024 = vsyncadd (%p6166_p4), %s449_s25, 4294965248 }
  0x3c   : > { %6026 = dma.done.wait (%p52_p1), [#allocation6], 3072  }
  0x3d   : > { %6028 = vsyncadd (%p52_p1), [#allocation6], 4294964224 }
  0x3e   : > { %6030 = dma.done.wait (%p52_p1), [#allocation9], 1536  }
  0x3f   : > { %6032 = vsyncadd (%p52_p1), [#allocation9], 4294965760  ;;  %v6060_v0 = vmov 0   ;;  %v705_v1 = vld [vmem:[%s6251_s27 + $0x70] sm:$0xff]  ;;  %v706_v2 = vld [vmem:[%s6251_s27 + $0x78] sm:$0xff]  ;;  %vm707_vm0 = vcmask 523264   ;;  %v511_v48 = vlaneseq }
  0x40   : > { %5657 = vset.pattern.permute.xlu1 %v6060_v0  ;;  %5656 = vset.pattern.permute.xlu0 %v6060_v0  ;;  %v703_v3 = vld [vmem:[%s6251_s27 + $0x60] sm:$0xff]  ;;  %v704_v4 = vld [vmem:[%s6251_s27 + $0x68] sm:$0xff]  ;;  %v701_v5 = vld [vmem:[%s6251_s27 + $0x50] sm:$0xff]  ;;  %s6061_s19 = smov 1   ;;  %s6062_s17 = smov 127   ;;  %vm815_vm4 = vcmask 261120  }
  0x41   : > { %5658 = vset.pattern.permute.xlu2 %v6060_v0  ;;  %728 = vmatpush.msra.mxu0 %v705_v1  ;;  %v702_v6 = vld [vmem:[%s6251_s27 + $0x58] sm:$0xff]  ;;  %v699_v7 = vld [vmem:[%s6251_s27 + $0x40] sm:$0xff]  ;;  %v700_v8 = vld [vmem:[%s6251_s27 + $0x48] sm:$0xff]  ;;  %v6363_v49 = vand.u32 127, %v511_v48  ;;  %s6064_s25 = smov 2   ;;  %s5063_s7 = sshll.u32 %s6247_s30, 4 }
  0x42   : > { %757 = vmatpush.msra.mxu1 %v706_v2  ;;  %v588_v9 = vld [vmem:[%s8424_s2 + $0x8] sm:$0xff]  ;;  %v697_v10 = vld [vmem:[%s6251_s27 + $0x30] sm:$0xff]  ;;  %v698_v11 = vld [vmem:[%s6251_s27 + $0x38] sm:$0xff]  ;;  %s5560_s14 = sshll.u32 %s6157_s29, 4  ;;  %s510_s5 = scalar_lea.vmem [#allocation10], %s5063_s7 }
  0x43   : > { %729 = vmatpush.msra.mxu0 %v703_v3  ;;  %598 = vperm.xlu1 %5657, %v588_v9   ;;  %v590_v12 = vld [vmem:[%s8424_s2 + $0x18] sm:$0xff]  ;;  %v695_v13 = vld [vmem:[%s6251_s27 + $0x20] sm:$0xff]  ;;  %v696_v14 = vld [vmem:[%s6251_s27 + $0x28] sm:$0xff]  ;;  %v513_v51 = vadd.s32 128, %v6363_v49  ;;  %vm794_vm1 = vcmp.lt.s32.totalorder %v6363_v49, 1  ;;  %vm538_vm2 = vcmp.ge.s32.totalorder %v6363_v49, 1  ;;  %s4945_s24 = scalar_lea.hbm %s8435_s13, %s5560_s14 }
  0x44   : > { %758 = vmatpush.msra.mxu1 %v704_v4  ;;  %608 = vperm.xlu0 %5656, %v590_v12   ;;  %v693_v15 = vld [vmem:[%s6251_s27 + $0x10] sm:$0xff]  ;;  %v694_v16 = vld [vmem:[%s6251_s27 + $0x18] sm:$0xff]  ;;  %v587_v17 = vld [vmem:[%s8424_s2] sm:$0xff]  ;;  %vm540_vm6 = vcmp.lt.s32.totalorder %v6363_v49, 127  ;;  %s4947_s16 = sshll.u32 %s510_s5, 4  ;;  %s4949_s15 = sshll.u32 %s4945_s24, 4  ;;  %s4948_s16 = int_to_ptr.vmem [resolvable:$true] %s4947_s16  ;;  %s4950_s15 = int_to_ptr.hbm [resolvable:$true] %s4949_s15 }
  0x45   : > { %730 = vmatpush.msra.mxu0 %v701_v5  ;;  %v691_v18 = vld [vmem:[%s6251_s27] sm:$0xff]  ;;  %v692_v19 = vld [vmem:[%s6251_s27 + $0x8] sm:$0xff]  ;;  %v589_v21 = vld [vmem:[%s8424_s2 + $0x10] sm:$0xff]  ;;  %v6366_v52 = vand.u32 127, %v513_v51  ;;  %s6065_s27 = smov 126   ;;  %s4934_s23 = scalar_lea.sflag [#allocation4], %s6247_s30 }
  0x46   : > { %759 = vmatpush.msra.mxu1 %v702_v6  ;;  %v546_v20 = vld [vmem:[%s8423_s1] sm:$0xff]  ;;  %v547_v22 = vld [vmem:[%s8423_s1 + $0x8] sm:$0xff]  ;;  %v548_v23 = vld [vmem:[%s8423_s1 + $0x10] sm:$0xff]  ;;  %s5991_s22 = sshra.s32 %s4950_s15, 4  ;;  %s5992_s22 = int_to_ptr.hbm [resolvable:$true] %s5991_s22 }
  0x47   : > { %731 = vmatpush.msra.mxu0 %v699_v7  ;;  %v549_v24 = vld [vmem:[%s8423_s1 + $0x18] sm:$0xff]  ;;  %v613_v45 = vld [vmem:[%s8426_s4 + $0x10] sm:$0xff]  ;;  %v612_v46 = vld [vmem:[%s8426_s4 + $0x8] sm:$0xff]  ;;  %vm539_vm3 = vcmp.ge.s32.totalorder %v6366_v52, 1  ;;  %vm541_vm5 = vcmp.lt.s32.totalorder %v6366_v52, 127  ;;  %s5993_s29 = scalar_lea.hbm %s5992_s22, 16  ;;  %p5998_p11 = scmp.lt.s32.totalorder %s5992_s22, %s8435_s13 }
  0x48   : > { %760 = vmatpush.msra.mxu1 %v700_v8  ;;  %v551_v2 = vld [vmem:[#allocation5 + $0x8] sm:$0xff]  ;;  %v550_v4 = vld [vmem:[#allocation5] sm:$0xff]  ;;  %v552_v8 = vld [vmem:[#allocation5 + $0x10] sm:$0xff]  ;;  %p5994_p1 = scmp.ne.s32.totalorder %s5992_s22, %s5993_s29 }
  0x49   : > { %732 = vmatpush.msra.mxu0 %v697_v10 }
  0x4a   : > { %761 = vmatpush.msra.mxu1 %v698_v11  ;;  %p5995_p4 = pnand %p5994_p1, %p6219_p7 }
  0x4b   : > { %733 = vmatpush.msra.mxu0 %v695_v13  ;;  %593 = vperm.xlu1 %5657, %v587_v17  }
  0x4c   : > { %762 = vmatpush.msra.mxu1 %v696_v14  ;;  %603 = vperm.xlu0 %5656, %v589_v21   ;;  %v553_v14 = vld [vmem:[#allocation5 + $0x18] sm:$0xff]  ;;  %p5996_p8 = pneg %p5995_p4 }
  0x4d   : > { %734 = vmatpush.msra.mxu0 %v693_v15 }
  0x4e   : > { %763 = vmatpush.msra.mxu1 %v694_v16 }
  0x4f   : > { %735 = vmatpush.msra.mxu0 %v691_v18 }
  0x50   : > { %764 = vmatpush.msra.mxu1 %v692_v19  ;;  %5064 = vmatmul.msk.f32.vlgmr.msra.gmra.mxu0 %vm707_vm0, %v546_v20  ;;  %v614_v19 = vld [vmem:[%s8426_s4 + $0x18] sm:$0xff] }
  0x51   : > { %5068 = vmatmul.msk.f32.vlgmr.msra.gmra.mxu1 %vm707_vm0, %v546_v20 }
  0x58   : > { %5065 = vmatmul.msk.f32.gmra.mxu0 %vm707_vm0, %v547_v22 }
  0x59   : > { %5069 = vmatmul.msk.f32.gmra.mxu1 %vm707_vm0, %v547_v22  ;;  %v558_v22 = vld [vmem:[#allocation5 + $0x40] sm:$0xff] }
  0x60   : > { %5066 = vmatmul.msk.f32.gmra.mxu0 %vm707_vm0, %v548_v23 }
  0x61   : > { %5070 = vmatmul.msk.f32.gmra.mxu1 %vm707_vm0, %v548_v23 }
  0x68   : > { %5067 = vmatmul.msk.f32.gmra.mxu0 %vm707_vm0, %v549_v24 }
  0x69   : > { %5071 = vmatmul.msk.f32.gmra.mxu1 %vm707_vm0, %v549_v24 }
  0xb5   : > { %v599_v28 = vpop.permute.xlu1 %598 }
  0xb6   : > { %v609_v27 = vpop.permute.xlu0 %608 }
  0xbd   : > { %v594_v37 = vpop.permute.xlu1 %593 }
  0xbe   : > { %v604_v32 = vpop.permute.xlu0 %603 }
  0xcd   : > { %v737_v25 = vpop.f32.mrf.mxu0 }
  0xce   : > { %v766_v26 = vpop.f32.mrf.mxu1  ;;  %v6329_v41 = vadd.f32 %v737_v25, %v594_v37  ;;  %v554_v25 = vld [vmem:[#allocation5 + $0x20] sm:$0xff] }
  0xcf   : > { %v6342_v44 = vadd.f32 %v766_v26, %v594_v37  ;;  %v611_v26 = vld [vmem:[%s8426_s4] sm:$0xff] }
  0xd5   : > { %v740_v29 = vpop.f32.mrf.mxu0 }
  0xd6   : > { %v769_v30 = vpop.f32.mrf.mxu1  ;;  %v6313_v31 = vadd.f32 %v740_v29, %v599_v28  ;;  %v560_v29 = vld [vmem:[#allocation5 + $0x50] sm:$0xff] }
  0xd7   : > { %v6325_v39 = vadd.f32 %v769_v30, %v599_v28  ;;  %v555_v28 = vld [vmem:[#allocation5 + $0x28] sm:$0xff]  ;;  %v556_v30 = vld [vmem:[#allocation5 + $0x30] sm:$0xff] }
  0xd8   : > { %780 = vrot.lane.b32.xlu2 %v6313_v31, %s6061_s19 }
  0xdd   : > { %v743_v33 = vpop.f32.mrf.mxu0 }
  0xde   : > { %v772_v34 = vpop.f32.mrf.mxu1  ;;  %v6317_v35 = vadd.f32 %v743_v33, %v604_v32 }
  0xdf   : > { %v6319_v36 = vadd.f32 %v772_v34, %v604_v32  ;;  %v557_v32 = vld [vmem:[#allocation5 + $0x38] sm:$0xff] }
  0xe0   : > { %782 = vrot.lane.b32.xlu0 %v6317_v35, %s6061_s19 }
  0xe1   : > { %790 = vrot.lane.b32.xlu1 %v6319_v36, %s6061_s19 }
  0xe5   : > { %v746_v38 = vpop.f32.mrf.mxu0 }
  0xe6   : > { %v6327_v40 = vadd.f32 %v746_v38, %v609_v27  ;;  %v775_v42 = vpop.f32.mrf.mxu1 }
  0xe7   : > { %v776_v43 = vadd.f32 %v775_v42, %v609_v27  ;;  %v559_v27 = vld [vmem:[#allocation5 + $0x48] sm:$0xff] }
  0xe8   : > { %788 = vrot.lane.b32.xlu0 %v6325_v39, %s6061_s19  ;;  %784 = vrot.lane.b32.xlu2 %v6327_v40, %s6061_s19 }
  0xe9   : > { %778 = vrot.lane.b32.xlu1 %v6329_v41, %s6061_s19 }
  0xf0   : > { %968 = vrot.lane.b32.xlu0 %v6319_v36, %s6062_s17  ;;  %792 = vrot.lane.b32.xlu2 %v776_v43, %s6061_s19 }
  0xf1   : > { %958 = vrot.lane.b32.xlu1 %v6313_v31, %s6062_s17 }
  0xf8   : > { %962 = vrot.lane.b32.xlu0 %v6327_v40, %s6062_s17  ;;  %786 = vrot.lane.b32.xlu2 %v6342_v44, %s6061_s19 }
  0xf9   : > { %970 = vrot.lane.b32.xlu1 %v776_v43, %s6062_s17 }
 0x100   : > { %960 = vrot.lane.b32.xlu2 %v6317_v35, %s6062_s17  ;;  %956 = vrot.lane.b32.xlu0 %v6329_v41, %s6062_s17 }
 0x101   : > { %964 = vrot.lane.b32.xlu1 %v6342_v44, %s6062_s17 }
 0x108   : > { %966 = vrot.lane.b32.xlu2 %v6325_v39, %s6062_s17  ;;  %627 = vperm.xlu0 %5656, %v613_v45  }
 0x109   : > { %622 = vperm.xlu1 %5657, %v612_v46  }
 0x110   : > { %632 = vperm.xlu2 %5658, %v614_v19  }
 0x118   : > { %617 = vperm.xlu2 %5658, %v611_v26  }
 0x132   : > { %v781_v47 = vpop.permute.xlu2 %780 }
 0x142   : > { %v785_v50 = vpop.permute.xlu2 %784 }
 0x14a   : > { %v793_v53 = vpop.permute.xlu2 %792 }
 0x14b   : > { %v802_v54 = vsel %vm794_vm1, %v793_v53, %v785_v50  ;;  %v798_v55 = vsel %vm794_vm1, %v785_v50, %v793_v53 }
 0x14c   : > { %5072 = vmatpush.msk.msrb.mxu0 %vm538_vm2, %v802_v54  ;;  %5561 = vmatpush.msk.msra.mxu2 %vm538_vm2, %v802_v54 }
 0x14d   : > { %5080 = vmatpush.msk.msrb.mxu1 %vm539_vm3, %v798_v55  ;;  %5565 = vmatpush.msk.msra.mxu3 %vm539_vm3, %v798_v55 }
 0x152   : > { %v783_v57 = vpop.permute.xlu0 %782  ;;  %v787_v60 = vpop.permute.xlu2 %786 }
 0x153   : > { %v791_v56 = vpop.permute.xlu1 %790 }
 0x154   : > { %v801_v58 = vsel %vm794_vm1, %v791_v56, %v783_v57  ;;  %v797_v59 = vsel %vm794_vm1, %v783_v57, %v791_v56 }
 0x155   : > { %5073 = vmatpush.msk.msrb.mxu0 %vm538_vm2, %v801_v58  ;;  %5562 = vmatpush.msk.msra.mxu2 %vm538_vm2, %v801_v58 }
 0x156   : > { %5081 = vmatpush.msk.msrb.mxu1 %vm539_vm3, %v797_v59  ;;  %5566 = vmatpush.msk.msra.mxu3 %vm539_vm3, %v797_v59 }
 0x15a   : > { %v789_v61 = vpop.permute.xlu0 %788  ;;  %v961_v6 = vpop.permute.xlu2 %960 }
 0x15b   : > { %v779_v62 = vpop.permute.xlu1 %778  ;;  %v800_v63 = vsel %vm794_vm1, %v789_v61, %v781_v47  ;;  %v796_v0 = vsel %vm794_vm1, %v781_v47, %v789_v61 }
 0x15c   : > { %5074 = vmatpush.msk.msrb.mxu0 %vm538_vm2, %v800_v63  ;;  %5563 = vmatpush.msk.msra.mxu2 %vm538_vm2, %v800_v63  ;;  %v799_v1 = vsel %vm794_vm1, %v787_v60, %v779_v62  ;;  %v795_v3 = vsel %vm794_vm1, %v779_v62, %v787_v60 }
 0x15d   : > { %5082 = vmatpush.msk.msrb.mxu1 %vm539_vm3, %v796_v0  ;;  %5567 = vmatpush.msk.msra.mxu3 %vm539_vm3, %v796_v0 }
 0x15e   : > { %5075 = vmatpush.msk.msrb.mxu0 %vm538_vm2, %v799_v1  ;;  %5564 = vmatpush.msk.msra.mxu2 %vm538_vm2, %v799_v1 }
 0x15f   : > { %5083 = vmatpush.msk.msrb.mxu1 %vm539_vm3, %v795_v3  ;;  %5568 = vmatpush.msk.msra.mxu3 %vm539_vm3, %v795_v3 }
 0x160   : > { %5077 = vmatmul.msk.f32.vlgmr.msra.gmra.mxu2 %vm815_vm4, %v551_v2  ;;  %5085 = vmatmul.msk.f32.vlgmr.msra.gmra.mxu3 %vm815_vm4, %v551_v2 }
 0x161   : > { %910 = vmatpush.msrb.mxu2 %v6327_v40  ;;  %939 = vmatpush.msrb.mxu3 %v776_v43 }
 0x162   : > { %v969_v5 = vpop.permute.xlu0 %968  ;;  %5076 = vmatmul.msk.f32.vlgmr.msrb.gmra.mxu0 %vm815_vm4, %v550_v4  ;;  %5084 = vmatmul.msk.f32.vlgmr.msrb.gmra.mxu1 %vm815_vm4, %v550_v4  ;;  %v967_v13 = vpop.permute.xlu2 %966 }
 0x163   : > { %911 = vmatpush.msrb.mxu2 %v6317_v35  ;;  %940 = vmatpush.msrb.mxu3 %v6319_v36  ;;  %v959_v7 = vpop.permute.xlu1 %958  ;;  %v975_v15 = vsel %vm540_vm6, %v961_v6, %v969_v5  ;;  %v979_v16 = vsel %vm540_vm6, %v969_v5, %v961_v6 }
 0x164   : > { %v974_v17 = vsel %vm540_vm6, %v959_v7, %v967_v13  ;;  %v978_v18 = vsel %vm540_vm6, %v967_v13, %v959_v7 }
 0x165   : > { %912 = vmatpush.msrb.mxu2 %v6313_v31  ;;  %941 = vmatpush.msrb.mxu3 %v6325_v39  ;;  %v561_v31 = vld [vmem:[#allocation5 + $0x58] sm:$0xff] }
 0x167   : > { %913 = vmatpush.msrb.mxu2 %v6329_v41  ;;  %942 = vmatpush.msrb.mxu3 %v6342_v44 }
 0x168   : > { %5078 = vmatmul.msk.f32.gmra.mxu2 %vm815_vm4, %v552_v8  ;;  %5086 = vmatmul.msk.f32.gmra.mxu3 %vm815_vm4, %v552_v8 }
 0x16a   : > { %v963_v9 = vpop.permute.xlu0 %962  ;;  %v6496_v1 = vpop.permute.xlu2 %632 }
 0x16b   : > { %v971_v10 = vpop.permute.xlu1 %970 }
 0x16c   : > { %v976_v11 = vsel %vm540_vm6, %v963_v9, %v971_v10  ;;  %v980_v12 = vsel %vm540_vm6, %v971_v10, %v963_v9 }
 0x16d   : > { %5096 = vmatpush.msk.msra.mxu0 %vm540_vm6, %v976_v11  ;;  %5104 = vmatpush.msk.msra.mxu1 %vm541_vm5, %v980_v12 }
 0x16f   : > { %5097 = vmatpush.msk.msra.mxu0 %vm540_vm6, %v975_v15  ;;  %5105 = vmatpush.msk.msra.mxu1 %vm541_vm5, %v979_v16 }
 0x170   : > { %5079 = vmatmul.msk.f32.gmra.mxu2 %vm815_vm4, %v553_v14  ;;  %5087 = vmatmul.msk.f32.gmra.mxu3 %vm815_vm4, %v553_v14 }
 0x171   : > { %5098 = vmatpush.msk.msra.mxu0 %vm540_vm6, %v974_v17  ;;  %5106 = vmatpush.msk.msra.mxu1 %vm541_vm5, %v978_v18 }
 0x172   : > { %v957_v20 = vpop.permute.xlu0 %956 }
 0x173   : > { %v965_v21 = vpop.permute.xlu1 %964 }
 0x174   : > { %v973_v23 = vsel %vm540_vm6, %v957_v20, %v965_v21  ;;  %v977_v24 = vsel %vm540_vm6, %v965_v21, %v957_v20 }
 0x175   : > { %5099 = vmatpush.msk.msra.mxu0 %vm540_vm6, %v973_v23  ;;  %5107 = vmatpush.msk.msra.mxu1 %vm541_vm5, %v977_v24  ;;  %v6501_v24 = vpop.permute.xlu2 %617 }
 0x176   : > { %5100 = vmatmul.msk.f32.vlgmr.msra.gmra.mxu0 %vm815_vm4, %v558_v22  ;;  %5108 = vmatmul.msk.f32.vlgmr.msra.gmra.mxu1 %vm815_vm4, %v558_v22 }
 0x178   : > { %5088 = vmatmul.msk.f32.vlgmr.msrb.gmra.mxu2 %vm815_vm4, %v554_v25  ;;  %5092 = vmatmul.msk.f32.vlgmr.msrb.gmra.mxu3 %vm815_vm4, %v554_v25 }
 0x17a   : > { %v6493_v63 = vpop.permute.xlu0 %627 }
 0x17b   : > { %v6490_v53 = vpop.permute.xlu1 %622 }
 0x17e   : > { %5101 = vmatmul.msk.f32.gmra.mxu0 %vm815_vm4, %v559_v27  ;;  %5109 = vmatmul.msk.f32.gmra.mxu1 %vm815_vm4, %v559_v27 }
 0x180   : > { %5089 = vmatmul.msk.f32.gmra.mxu2 %vm815_vm4, %v555_v28  ;;  %5093 = vmatmul.msk.f32.gmra.mxu3 %vm815_vm4, %v555_v28 }
 0x186   : > { %5102 = vmatmul.msk.f32.gmra.mxu0 %vm815_vm4, %v560_v29  ;;  %5110 = vmatmul.msk.f32.gmra.mxu1 %vm815_vm4, %v560_v29 }
 0x188   : > { %5090 = vmatmul.msk.f32.gmra.mxu2 %vm815_vm4, %v556_v30  ;;  %5094 = vmatmul.msk.f32.gmra.mxu3 %vm815_vm4, %v556_v30 }
 0x18e   : > { %5103 = vmatmul.msk.f32.gmra.mxu0 %vm815_vm4, %v561_v31  ;;  %5111 = vmatmul.msk.f32.gmra.mxu1 %vm815_vm4, %v561_v31  ;;  %v6063_v31 = vmov 128.0  }
 0x18f   : > { %5661 = vrcp.f32 %v6063_v31 }
 0x190   : > { %5091 = vmatmul.msk.f32.gmra.mxu2 %vm815_vm4, %v557_v32  ;;  %5095 = vmatmul.msk.f32.gmra.mxu3 %vm815_vm4, %v557_v32 }
 0x195   : > { %v5662_v32 = vpop.eup %5661 }
 0x196   : > { %vm1100_vm7 = vweird.f32 %v5662_v32 }
 0x1df   : > { %v845_v35 = vpop.f32.mrf.mxu0  ;;  %v874_v36 = vpop.f32.mrf.mxu1 }
 0x1e3   : > { %v848_v33 = vpop.f32.mrf.mxu2  ;;  %v877_v34 = vpop.f32.mrf.mxu3 }
 0x1eb   : > { %v851_v37 = vpop.f32.mrf.mxu2  ;;  %v880_v38 = vpop.f32.mrf.mxu3 }
 0x1f3   : > { %v854_v39 = vpop.f32.mrf.mxu2  ;;  %v883_v40 = vpop.f32.mrf.mxu3 }
 0x1f4   : > { %v1022_v41 = vpop.f32.mrf.mxu0  ;;  %v1051_v42 = vpop.f32.mrf.mxu1 }
 0x1fb   : > { %v915_v43 = vpop.f32.mrf.mxu2  ;;  %v944_v44 = vpop.f32.mrf.mxu3 }
 0x1fc   : > { %v1025_v45 = vpop.f32.mrf.mxu0  ;;  %v1054_v46 = vpop.f32.mrf.mxu1  ;;  %v916_v10 = vadd.f32 %v915_v43, %v845_v35  ;;  %v945_v15 = vadd.f32 %v944_v44, %v874_v36 }
 0x1fe   : > { %v1063_v18 = vadd.f32 %v1022_v41, %v916_v10  ;;  %v1064_v23 = vadd.f32 %v1051_v42, %v945_v15 }
 0x200   : > { %v1071_v25 = vadd.f32 %v1063_v18, %v6501_v24  ;;  %v1072_v27 = vadd.f32 %v1064_v23, %v6501_v24 }
 0x202   : > { %v1079_v28 = vmax.f32 %v1071_v25, 0.0  ;;  %v1080_v30 = vmax.f32 %v1072_v27, 0.0 }
 0x203   : > { %v918_v47 = vpop.f32.mrf.mxu2  ;;  %v947_v48 = vpop.f32.mrf.mxu3 }
 0x204   : > { %v919_v50 = vadd.f32 %v918_v47, %v848_v33  ;;  %v1028_v55 = vpop.f32.mrf.mxu0  ;;  %v1057_v56 = vpop.f32.mrf.mxu1  ;;  %v948_v11 = vadd.f32 %v947_v48, %v877_v34  ;;  %v1096_v33 = vmul.f32 128.0, %v5662_v32 }
 0x206   : > { %v1065_v51 = vadd.f32 %v1025_v45, %v919_v50  ;;  %v1066_v19 = vadd.f32 %v1054_v46, %v948_v11  ;;  %v1097_v34 = vsub.f32 1.0, %v1096_v33 }
 0x208   : > { %v1073_v54 = vadd.f32 %v1065_v51, %v6490_v53  ;;  %v1074_v26 = vadd.f32 %v1066_v19, %v6490_v53  ;;  %v1098_v35 = vmul.f32 %v5662_v32, %v1097_v34 }
 0x20a   : > { %v1081_v57 = vmax.f32 %v1073_v54, 0.0  ;;  %v1082_v29 = vmax.f32 %v1074_v26, 0.0  ;;  %v1099_v36 = vadd.f32 %v5662_v32, %v1098_v35 }
 0x20b   : > { %v921_v58 = vpop.f32.mrf.mxu2  ;;  %v950_v59 = vpop.f32.mrf.mxu3 }
 0x20c   : > { %v922_v60 = vadd.f32 %v921_v58, %v851_v37  ;;  %1089 = vadd.xlane.f32.xlu0 %v1081_v57  ;;  %v951_v61 = vadd.f32 %v950_v59, %v880_v38  ;;  %v1031_v4 = vpop.f32.mrf.mxu0  ;;  %v1060_v5 = vpop.f32.mrf.mxu1  ;;  %v6506_v37 = vsel %vm1100_vm7, %v5662_v32, %v1099_v36  ;;  %v6557_v32 = vld [vmem:[%s8431_s9] ss:$0 sm:$0xff] }
 0x20d   : > { %v6564_v36 = vld [vmem:[%s8432_s10] ss:$0 sm:$0xff] }
 0x20e   : > { %v1067_v62 = vadd.f32 %v1028_v55, %v922_v60  ;;  %v1068_v2 = vadd.f32 %v1057_v56, %v951_v61 }
 0x210   : > { %v1075_v0 = vadd.f32 %v1067_v62, %v6493_v63  ;;  %v1076_v14 = vadd.f32 %v1068_v2, %v6493_v63 }
 0x212   : > { %v1083_v3 = vmax.f32 %v1075_v0, 0.0  ;;  %v1084_v21 = vmax.f32 %v1076_v14, 0.0 }
 0x213   : > { %v924_v6 = vpop.f32.mrf.mxu2  ;;  %v953_v7 = vpop.f32.mrf.mxu3 }
 0x214   : > { %v925_v8 = vadd.f32 %v924_v6, %v854_v39  ;;  %v954_v9 = vadd.f32 %v953_v7, %v883_v40  ;;  %1091 = vadd.xlane.f32.xlu2 %v1083_v3 }
 0x216   : > { %v1069_v12 = vadd.f32 %v1031_v4, %v925_v8  ;;  %v1070_v13 = vadd.f32 %v1060_v5, %v954_v9 }
 0x218   : > { %v1078_v16 = vadd.f32 %v1070_v13, %v6496_v1  ;;  %v1077_v17 = vadd.f32 %v1069_v12, %v6496_v1 }
 0x21a   : > { %v1086_v20 = vmax.f32 %v1078_v16, 0.0  ;;  %v1085_v22 = vmax.f32 %v1077_v17, 0.0 }
 0x21c   : > { %1194 = vadd.xlane.f32.xlu1 %v1086_v20  ;;  %1192 = vadd.xlane.f32.xlu2 %v1084_v21 }
 0x21d   : > { %1093 = vadd.xlane.f32.xlu0 %v1085_v22 }
 0x224   : > { %1087 = vadd.xlane.f32.xlu2 %v1079_v28  ;;  %1190 = vadd.xlane.f32.xlu1 %v1082_v29 }
 0x225   : > { %1188 = vadd.xlane.f32.xlu0 %v1080_v30 }
 0x27f   : > { %v1090_v38 = vpop.xlane.xlu0 %1089 }
 0x280   : > { %v1103_v39 = vmul.f32 %v6506_v37, %v1090_v38 }
 0x282   : > { %v6509_v40 = vsub.f32 %v1081_v57, %v1103_v39 }
 0x284   : > { %v1111_v41 = vmul.f32 %v6509_v40, %v6509_v40 }
 0x286   : > { %1116 = vadd.xlane.f32.xlu2 %v1111_v41 }
 0x287   : > { %v1092_v42 = vpop.xlane.xlu2 %1091 }
 0x288   : > { %v1104_v43 = vmul.f32 %v6506_v37, %v1092_v42 }
 0x28a   : > { %v6514_v44 = vsub.f32 %v1083_v3, %v1104_v43 }
 0x28c   : > { %v1112_v45 = vmul.f32 %v6514_v44, %v6514_v44 }
 0x28e   : > { %1118 = vadd.xlane.f32.xlu0 %v1112_v45 }
 0x28f   : > { %v1193_v46 = vpop.xlane.xlu2 %1192  ;;  %v1195_v47 = vpop.xlane.xlu1 %1194 }
 0x290   : > { %v1198_v48 = vmul.f32 %v1193_v46, %v6506_v37  ;;  %v1094_v50 = vpop.xlane.xlu0 %1093  ;;  %v1199_v51 = vmul.f32 %v1195_v47, %v6506_v37 }
 0x291   : > { %v1105_v56 = vmul.f32 %v6506_v37, %v1094_v50 }
 0x292   : > { %v6520_v54 = vsub.f32 %v1084_v21, %v1198_v48  ;;  %v6522_v55 = vsub.f32 %v1086_v20, %v1199_v51 }
 0x293   : > { %v6530_v62 = vsub.f32 %v1085_v22, %v1105_v56 }
 0x294   : > { %v1206_v57 = vmul.f32 %v6520_v54, %v6520_v54  ;;  %v1207_v58 = vmul.f32 %v6522_v55, %v6522_v55 }
 0x295   : > { %v1113_v6 = vmul.f32 %v6530_v62, %v6530_v62 }
 0x296   : > { %1212 = vadd.xlane.f32.xlu1 %v1206_v57  ;;  %1214 = vadd.xlane.f32.xlu2 %v1207_v58 }
 0x297   : > { %v1191_v59 = vpop.xlane.xlu1 %1190  ;;  %v1088_v0 = vpop.xlane.xlu2 %1087 }
 0x298   : > { %v1189_v60 = vpop.xlane.xlu0 %1188  ;;  %v1197_v61 = vmul.f32 %v1191_v59, %v6506_v37  ;;  %v1102_v5 = vmul.f32 %v6506_v37, %v1088_v0 }
 0x299   : > { %v1196_v2 = vmul.f32 %v1189_v60, %v6506_v37 }
 0x29a   : > { %v6533_v3 = vsub.f32 %v1082_v29, %v1197_v61  ;;  %v6544_v9 = vsub.f32 %v1079_v28, %v1102_v5 }
 0x29b   : > { %v6535_v4 = vsub.f32 %v1080_v30, %v1196_v2 }
 0x29c   : > { %v1205_v7 = vmul.f32 %v6533_v3, %v6533_v3  ;;  %v1110_v10 = vmul.f32 %v6544_v9, %v6544_v9 }
 0x29d   : > { %v1204_v8 = vmul.f32 %v6535_v4, %v6535_v4 }
 0x29e   : > { %1120 = vadd.xlane.f32.xlu1 %v1113_v6  ;;  %1210 = vadd.xlane.f32.xlu0 %v1205_v7 }
 0x29f   : > { %1208 = vadd.xlane.f32.xlu2 %v1204_v8 }
 0x2a6   : > { %1114 = vadd.xlane.f32.xlu1 %v1110_v10 }
 0x2f9   : > { %v1117_v11 = vpop.xlane.xlu2 %1116 }
 0x2fa   : > { %v1123_v12 = vmul.f32 %v1117_v11, %v6506_v37 }
 0x2fc   : > { %v1127_v13 = vadd.f32 1e-05, %v1123_v12 }
 0x2fe   : > { %5663 = vrsqrt.f32 %v1127_v13  ;;  %vm1146_vm9 = vweird.f32 %v1127_v13 }
 0x301   : > { %v1119_v14 = vpop.xlane.xlu0 %1118 }
 0x302   : > { %v1124_v15 = vmul.f32 %v1119_v14, %v6506_v37 }
 0x304   : > { %v5664_v16 = vpop.eup %5663  ;;  %v1128_v17 = vadd.f32 1e-05, %v1124_v15 }
 0x305   : > { %v1141_v18 = vmul.f32 %v5664_v16, %v1127_v13  ;;  %vm1147_vm8 = vweird.f32 %v5664_v16 }
 0x306   : > { %5665 = vrsqrt.f32 %v1128_v17  ;;  %vm1148_vm10 = vmor %vm1146_vm9, %vm1147_vm8  ;;  %vm1156_vm12 = vweird.f32 %v1128_v17 }
 0x307   : > { %v1142_v19 = vmul.f32 %v5664_v16, %v1141_v18 }
 0x309   : > { %v1143_v20 = vmul.f32 0.5, %v1142_v19  ;;  %v1215_v21 = vpop.xlane.xlu2 %1214  ;;  %v1213_v22 = vpop.xlane.xlu1 %1212 }
 0x30a   : > { %v1219_v23 = vmul.f32 %v1215_v21, %v6506_v37  ;;  %v1218_v25 = vmul.f32 %v1213_v22, %v6506_v37 }
 0x30b   : > { %v1144_v26 = vsub.f32 1.5, %v1143_v20 }
 0x30c   : > { %v5666_v27 = vpop.eup %5665  ;;  %v1223_v28 = vadd.f32 1e-05, %v1219_v23  ;;  %v6552_v29 = vadd.f32 1e-05, %v1218_v25 }
 0x30d   : > { %v1145_v30 = vmul.f32 %v5664_v16, %v1144_v26  ;;  %v1151_v31 = vmul.f32 %v5666_v27, %v1128_v17  ;;  %vm1157_vm11 = vweird.f32 %v5666_v27 }
 0x30e   : > { %5667 = vrsqrt.f32 %v1223_v28  ;;  %vm1158_vm13 = vmor %vm1156_vm12, %vm1157_vm11  ;;  %vm1260_vm0 = vweird.f32 %v1223_v28  ;;  %vm1250_vm8 = vweird.f32 %v6552_v29 }
 0x30f   : > { %v1152_v33 = vmul.f32 %v5666_v27, %v1151_v31  ;;  %5669 = vrsqrt.f32 %v6552_v29  ;;  %v1149_v34 = vsel %vm1148_vm10, %v5664_v16, %v1145_v30 }
 0x310   : > { %v1171_v35 = vmul.f32 %v1149_v34, %v6509_v40 }
 0x311   : > { %v1153_v38 = vmul.f32 0.5, %v1152_v33  ;;  %v1211_v39 = vpop.xlane.xlu0 %1210  ;;  %v1121_v41 = vpop.xlane.xlu1 %1120 }
 0x312   : > { %v1209_v42 = vpop.xlane.xlu2 %1208  ;;  %v1217_v43 = vmul.f32 %v1211_v39, %v6506_v37  ;;  %v1125_v45 = vmul.f32 %v1121_v41, %v6506_v37  ;;  %v1178_v46 = vmul.f32 %v6557_v32, %v1171_v35 }
 0x313   : > { %v1154_v47 = vsub.f32 1.5, %v1153_v38  ;;  %v1216_v48 = vmul.f32 %v1209_v42, %v6506_v37 }
 0x314   : > { %v5668_v50 = vpop.eup %5667  ;;  %v6570_v40 = vadd.f32 1e-05, %v1217_v43  ;;  %v6572_v51 = vadd.f32 1e-05, %v1125_v45  ;;  %v6575_v56 = vadd.f32 %v6564_v36, %v1178_v46 }
 0x315   : > { %v5670_v57 = vpop.eup %5669  ;;  %v1155_v58 = vmul.f32 %v5666_v27, %v1154_v47  ;;  %v1255_v59 = vmul.f32 %v5668_v50, %v1223_v28  ;;  %v6577_v60 = vadd.f32 1e-05, %v1216_v48  ;;  %vm1261_vm14 = vweird.f32 %v5668_v50 }
 0x316   : > { %v1245_v61 = vmul.f32 %v5670_v57, %v6552_v29  ;;  %5671 = vrsqrt.f32 %v6570_v40  ;;  %1278 = vrot.lane.b32.xlu1 %v6575_v56, %s6061_s19  ;;  %vm1251_vm15 = vweird.f32 %v5670_v57  ;;  %vm1262_vm7 = vmor %vm1260_vm0, %vm1261_vm14  ;;  %vm1240_vm12 = vweird.f32 %v6570_v40 }
 0x317   : > { %v1256_v0 = vmul.f32 %v5668_v50, %v1255_v59  ;;  %5673 = vrsqrt.f32 %v6577_v60  ;;  %v1159_v5 = vsel %vm1158_vm13, %v5666_v27, %v1155_v58  ;;  %vm1252_vm9 = vmor %vm1250_vm8, %vm1251_vm15  ;;  %vm1230_vm14 = vweird.f32 %v6577_v60 }
 0x318   : > { %v1246_v2 = vmul.f32 %v5670_v57, %v1245_v61  ;;  %5675 = vrsqrt.f32 %v6572_v51  ;;  %v1172_v8 = vmul.f32 %v1159_v5, %v6514_v44 }
 0x319   : > { %v1257_v6 = vmul.f32 0.5, %v1256_v0  ;;  %v1115_v7 = vpop.xlane.xlu1 %1114 }
 0x31a   : > { %v1247_v10 = vmul.f32 0.5, %v1246_v2  ;;  %v1122_v11 = vmul.f32 %v1115_v7, %v6506_v37  ;;  %v1179_v13 = vmul.f32 %v6557_v32, %v1172_v8 }
 0x31b   : > { %v1258_v12 = vsub.f32 1.5, %v1257_v6 }
 0x31c   : > { %v5672_v14 = vpop.eup %5671  ;;  %v1248_v15 = vsub.f32 1.5, %v1247_v10  ;;  %v6588_v16 = vadd.f32 1e-05, %v1122_v11  ;;  %v6592_v20 = vadd.f32 %v6564_v36, %v1179_v13 }
 0x31d   : > { %v5674_v17 = vpop.eup %5673  ;;  %v1259_v18 = vmul.f32 %v5668_v50, %v1258_v12  ;;  %v1235_v19 = vmul.f32 %v5672_v14, %v6570_v40  ;;  %vm1241_vm10 = vweird.f32 %v5672_v14 }
 0x31e   : > { %v5676_v44 = vpop.eup %5675  ;;  %v1249_v21 = vmul.f32 %v5670_v57, %v1248_v15  ;;  %v1225_v22 = vmul.f32 %v5674_v17, %v6577_v60  ;;  %5677 = vrsqrt.f32 %v6588_v16  ;;  %1280 = vrot.lane.b32.xlu2 %v6592_v20, %s6061_s19  ;;  %vm1231_vm11 = vweird.f32 %v5674_v17  ;;  %vm1242_vm15 = vmor %vm1240_vm12, %vm1241_vm10 }
 0x31f   : > { %v1236_v23 = vmul.f32 %v5672_v14, %v1235_v19  ;;  %v1161_v25 = vmul.f32 %v5676_v44, %v6572_v51  ;;  %v1263_v27 = vsel %vm1262_vm7, %v5668_v50, %v1259_v18  ;;  %vm1167_vm13 = vweird.f32 %v5676_v44  ;;  %vm1232_vm0 = vmor %vm1230_vm14, %vm1231_vm11  ;;  %v567_v18 = vld [vmem:[#allocation7 + $0x28] sm:$0xff] }
 0x320   : > { %v1226_v26 = vmul.f32 %v5674_v17, %v1225_v22  ;;  %v1253_v28 = vsel %vm1252_vm9, %v5670_v57, %v1249_v21  ;;  %v1267_v33 = vmul.f32 %v1263_v27, %v6522_v55  ;;  %vm1166_vm7 = vweird.f32 %v6572_v51 }
 0x321   : > { %v1237_v30 = vmul.f32 0.5, %v1236_v23  ;;  %v1162_v31 = vmul.f32 %v5676_v44, %v1161_v25  ;;  %v1266_v29 = vmul.f32 %v1253_v28, %v6520_v54  ;;  %vm1168_vm8 = vmor %vm1166_vm7, %vm1167_vm13  ;;  %vm1136_vm10 = vweird.f32 %v6588_v16  ;;  %v568_v23 = vld [vmem:[#allocation7 + $0x30] sm:$0xff] }
 0x322   : > { %v1227_v34 = vmul.f32 0.5, %v1226_v26  ;;  %v1271_v39 = vmul.f32 %v6557_v32, %v1267_v33  ;;  %vm8442_vm12 = vcmp.ge.s32.totalorder %v6363_v49, 2  ;;  %vm8441_vm13 = vcmp.ge.s32.totalorder %v6366_v52, 2 }
 0x323   : > { %v1238_v35 = vsub.f32 1.5, %v1237_v30  ;;  %v1163_v38 = vmul.f32 0.5, %v1162_v31  ;;  %v1270_v41 = vmul.f32 %v6557_v32, %v1266_v29  ;;  %v569_v30 = vld [vmem:[#allocation7 + $0x38] sm:$0xff]  ;;  %v562_v29 = vld [vmem:[#allocation7] sm:$0xff]  ;;  %vm1582_vm14 = vcmp.lt.s32.totalorder %v6363_v49, 2 }
 0x324   : > { %v5678_v42 = vpop.eup %5677  ;;  %v1228_v43 = vsub.f32 1.5, %v1227_v34  ;;  %v1275_v54 = vadd.f32 %v6564_v36, %v1271_v39 }
 0x325   : > { %v1239_v45 = vmul.f32 %v5672_v14, %v1238_v35  ;;  %v1164_v46 = vsub.f32 1.5, %v1163_v38  ;;  %v1131_v55 = vmul.f32 %v5678_v42, %v6588_v16  ;;  %v1274_v48 = vadd.f32 %v6564_v36, %v1270_v41 }
 0x326   : > { %v1229_v47 = vmul.f32 %v5674_v17, %v1228_v43  ;;  %1290 = vrot.lane.b32.xlu1 %v1275_v54, %s6061_s19  ;;  %1431 = vmatpush.msrb.mxu1 %v1275_v54  ;;  %vm1137_vm9 = vweird.f32 %v5678_v42 }
 0x327   : > { %v1165_v50 = vmul.f32 %v5676_v44, %v1164_v46  ;;  %v1132_v57 = vmul.f32 %v5678_v42, %v1131_v55  ;;  %v1243_v40 = vsel %vm1242_vm15, %v5672_v14, %v1239_v45  ;;  %1288 = vrot.lane.b32.xlu0 %v1274_v48, %s6061_s19  ;;  %vm1138_vm11 = vmor %vm1136_vm10, %vm1137_vm9  ;;  %v566_v14 = vld [vmem:[#allocation7 + $0x20] sm:$0xff]  ;;  %vm8439_vm15 = vcmp.lt.s32.totalorder %v6366_v52, 126 }
 0x328   : > { %v1233_v58 = vsel %vm1232_vm0, %v5674_v17, %v1229_v47  ;;  %v1265_v59 = vmul.f32 %v1243_v40, %v6533_v3  ;;  %1432 = vmatpush.msrb.mxu1 %v1274_v48  ;;  %vm8440_vm0 = vcmp.lt.s32.totalorder %v6363_v49, 126 }
 0x329   : > { %v1133_v60 = vmul.f32 0.5, %v1132_v57  ;;  %v1264_v61 = vmul.f32 %v1233_v58, %v6535_v4  ;;  %v1169_v0 = vsel %vm1168_vm8, %v5676_v44, %v1165_v50 }
 0x32a   : > { %v1269_v2 = vmul.f32 %v6557_v32, %v1265_v59  ;;  %v1173_v51 = vmul.f32 %v1169_v0, %v6530_v62  ;;  %v565_v0 = vld [vmem:[#allocation7 + $0x18] sm:$0xff] }
 0x32b   : > { %v1134_v5 = vsub.f32 1.5, %v1133_v60  ;;  %v1268_v6 = vmul.f32 %v6557_v32, %v1264_v61 }
 0x32c   : > { %v1273_v7 = vadd.f32 %v6564_v36, %v1269_v2  ;;  %v1180_v8 = vmul.f32 %v6557_v32, %v1173_v51  ;;  %v570_v2 = vld [vmem:[#allocation7 + $0x40] sm:$0xff]  ;;  %v571_v51 = vld [vmem:[#allocation7 + $0x48] sm:$0xff] }
 0x32d   : > { %v1135_v3 = vmul.f32 %v5678_v42, %v1134_v5  ;;  %v1272_v10 = vadd.f32 %v6564_v36, %v1268_v6  ;;  %v572_v5 = vld [vmem:[#allocation7 + $0x50] sm:$0xff]  ;;  %v573_v6 = vld [vmem:[#allocation7 + $0x58] sm:$0xff] }
 0x32e   : > { %1433 = vmatpush.msrb.mxu1 %v1273_v7  ;;  %v1187_v4 = vadd.f32 %v6564_v36, %v1180_v8 }
 0x32f   : > { %v1139_v11 = vsel %vm1138_vm11, %v5678_v42, %v1135_v3  ;;  %1284 = vrot.lane.b32.xlu1 %v1272_v10, %s6061_s19  ;;  %v563_v42 = vld [vmem:[#allocation7 + $0x8] sm:$0xff] }
 0x330   : > { %1402 = vmatpush.msrb.mxu0 %v1187_v4  ;;  %v1170_v62 = vmul.f32 %v1139_v11, %v6544_v9  ;;  %1282 = vrot.lane.b32.xlu0 %v1187_v4, %s6061_s19  ;;  %v638_v9 = vld [vmem:[%s8428_s6 + $0x18] sm:$0xff] }
 0x331   : > { %1434 = vmatpush.msrb.mxu1 %v1272_v10 }
 0x332   : > { %1403 = vmatpush.msrb.mxu0 %v6592_v20  ;;  %v1177_v12 = vmul.f32 %v6557_v32, %v1170_v62  ;;  %v635_v32 = vld [vmem:[%s8428_s6] sm:$0xff]  ;;  %5132 = vmatmul.msk.f32.vlgmr.msrb.gmra.mxu1 %vm815_vm4, %v566_v14 }
 0x334   : > { %1404 = vmatpush.msrb.mxu0 %v6575_v56  ;;  %v1184_v13 = vadd.f32 %v6564_v36, %v1177_v12  ;;  %v636_v36 = vld [vmem:[%s8428_s6 + $0x8] sm:$0xff] }
 0x336   : > { %1276 = vrot.lane.b32.xlu2 %v1184_v13, %s6061_s19  ;;  %1405 = vmatpush.msrb.mxu0 %v1184_v13 }
 0x337   : > { %1452 = vrot.lane.b32.xlu1 %v6592_v20, %s6062_s17  ;;  %5128 = vmatmul.msk.f32.vlgmr.msrb.gmra.mxu0 %vm815_vm4, %v566_v14 }
 0x338   : > { %1286 = vrot.lane.b32.xlu0 %v1273_v7, %s6061_s19 }
 0x33a   : > { %5133 = vmatmul.msk.f32.gmra.mxu1 %vm815_vm4, %v567_v18 }
 0x33e   : > { %1450 = vrot.lane.b32.xlu2 %v6575_v56, %s6062_s17  ;;  %v637_v56 = vld [vmem:[%s8428_s6 + $0x10] sm:$0xff] }
 0x33f   : > { %1458 = vrot.lane.b32.xlu1 %v1273_v7, %s6062_s17  ;;  %5129 = vmatmul.msk.f32.gmra.mxu0 %vm815_vm4, %v567_v18 }
 0x340   : > { %1460 = vrot.lane.b32.xlu0 %v1274_v48, %s6062_s17 }
 0x342   : > { %5134 = vmatmul.msk.f32.gmra.mxu1 %vm815_vm4, %v568_v23 }
 0x346   : > { %1462 = vrot.lane.b32.xlu2 %v1275_v54, %s6062_s17  ;;  %v564_v54 = vld [vmem:[#allocation7 + $0x10] sm:$0xff] }
 0x347   : > { %656 = vperm.xlu1 %5657, %v638_v9   ;;  %5130 = vmatmul.msk.f32.gmra.mxu0 %vm815_vm4, %v568_v23 }
 0x348   : > { %1454 = vrot.lane.b32.xlu0 %v1187_v4, %s6062_s17 }
 0x34a   : > { %5135 = vmatmul.msk.f32.gmra.mxu1 %vm815_vm4, %v569_v30 }
 0x34e   : > { %1456 = vrot.lane.b32.xlu2 %v1272_v10, %s6062_s17 }
 0x34f   : > { %641 = vperm.xlu1 %5657, %v635_v32   ;;  %5131 = vmatmul.msk.f32.gmra.mxu0 %vm815_vm4, %v569_v30 }
 0x350   : > { %1448 = vrot.lane.b32.xlu0 %v1184_v13, %s6062_s17 }
 0x356   : > { %646 = vperm.xlu2 %5658, %v636_v36  }
 0x358   : > { %651 = vperm.xlu0 %5656, %v637_v56  }
 0x378   : > { %v1281_v17 = vpop.permute.xlu2 %1280 }
 0x388   : > { %v1279_v15 = vpop.permute.xlu1 %1278 }
 0x390   : > { %v1277_v22 = vpop.permute.xlu2 %1276 }
 0x398   : > { %v1291_v19 = vpop.permute.xlu1 %1290  ;;  %v1451_v38 = vpop.permute.xlu2 %1450 }
 0x399   : > { %v1289_v16 = vpop.permute.xlu0 %1288 }
 0x39a   : > { %v1298_v25 = vsel %vm794_vm1, %v1289_v16, %v1281_v17  ;;  %v1294_v26 = vsel %vm794_vm1, %v1281_v17, %v1289_v16 }
 0x3a0   : > { %v1463_v43 = vpop.permute.xlu2 %1462 }
 0x3a1   : > { %v1285_v27 = vpop.permute.xlu1 %1284 }
 0x3a2   : > { %v1283_v20 = vpop.permute.xlu0 %1282  ;;  %v1296_v34 = vsel %vm794_vm1, %v1285_v27, %v1277_v22  ;;  %v1292_v35 = vsel %vm794_vm1, %v1277_v22, %v1285_v27 }
 0x3a3   : > { %v1295_v44 = vsel %vm794_vm1, %v1283_v20, %v1291_v19  ;;  %v1299_v21 = vsel %vm794_vm1, %v1291_v19, %v1283_v20 }
 0x3a4   : > { %5112 = vmatpush.msk.msra.mxu2 %vm538_vm2, %v1299_v21  ;;  %5120 = vmatpush.msk.msra.mxu3 %vm539_vm3, %v1295_v44 }
 0x3a6   : > { %5113 = vmatpush.msk.msra.mxu2 %vm538_vm2, %v1298_v25  ;;  %5121 = vmatpush.msk.msra.mxu3 %vm539_vm3, %v1294_v26 }
 0x3a8   : > { %v1457_v58 = vpop.permute.xlu2 %1456 }
 0x3a9   : > { %v1453_v39 = vpop.permute.xlu1 %1452 }
 0x3aa   : > { %v1287_v28 = vpop.permute.xlu0 %1286 }
 0x3ab   : > { %v1297_v31 = vsel %vm794_vm1, %v1287_v28, %v1279_v15  ;;  %v1293_v33 = vsel %vm794_vm1, %v1279_v15, %v1287_v28 }
 0x3ac   : > { %5114 = vmatpush.msk.msra.mxu2 %vm538_vm2, %v1297_v31  ;;  %5122 = vmatpush.msk.msra.mxu3 %vm539_vm3, %v1293_v33 }
 0x3ae   : > { %5115 = vmatpush.msk.msra.mxu2 %vm538_vm2, %v1296_v34  ;;  %5123 = vmatpush.msk.msra.mxu3 %vm539_vm3, %v1292_v35 }
 0x3af   : > { %5116 = vmatmul.msk.f32.vlgmr.msra.gmra.mxu2 %vm815_vm4, %v562_v29  ;;  %5124 = vmatmul.msk.f32.vlgmr.msra.gmra.mxu3 %vm815_vm4, %v562_v29  ;;  %v1436_v12 = vpop.f32.mrf.mxu1 }
 0x3b0   : > { %v6742_v18 = vpop.permute.xlu2 %646 }
 0x3b1   : > { %v1459_v47 = vpop.permute.xlu1 %1458 }
 0x3b2   : > { %v1461_v41 = vpop.permute.xlu0 %1460  ;;  %v1465_v57 = vsel %vm540_vm6, %v1451_v38, %v1459_v47  ;;  %v1469_v40 = vsel %vm540_vm6, %v1459_v47, %v1451_v38 }
 0x3b3   : > { %v1466_v48 = vsel %vm540_vm6, %v1453_v39, %v1461_v41  ;;  %v1470_v50 = vsel %vm540_vm6, %v1461_v41, %v1453_v39 }
 0x3b4   : > { %v1407_v62 = vpop.f32.mrf.mxu0 }
 0x3b7   : > { %5117 = vmatmul.msk.f32.gmra.mxu2 %vm815_vm4, %v563_v42  ;;  %5125 = vmatmul.msk.f32.gmra.mxu3 %vm815_vm4, %v563_v42  ;;  %v1439_v36 = vpop.f32.mrf.mxu1 }
 0x3b9   : > { %v6752_v38 = vpop.permute.xlu1 %656 }
 0x3ba   : > { %v1455_v45 = vpop.permute.xlu0 %1454 }
 0x3bb   : > { %v1467_v46 = vsel %vm540_vm6, %v1455_v45, %v1463_v43  ;;  %v1471_v55 = vsel %vm540_vm6, %v1463_v43, %v1455_v45 }
 0x3bc   : > { %5136 = vmatpush.msk.msrb.mxu2 %vm540_vm6, %v1467_v46  ;;  %5144 = vmatpush.msk.msrb.mxu3 %vm541_vm5, %v1471_v55  ;;  %v1410_v32 = vpop.f32.mrf.mxu0 }
 0x3be   : > { %5137 = vmatpush.msk.msrb.mxu2 %vm540_vm6, %v1466_v48  ;;  %5145 = vmatpush.msk.msrb.mxu3 %vm541_vm5, %v1470_v50 }
 0x3bf   : > { %5118 = vmatmul.msk.f32.gmra.mxu2 %vm815_vm4, %v564_v54  ;;  %5126 = vmatmul.msk.f32.gmra.mxu3 %vm815_vm4, %v564_v54  ;;  %v1442_v44 = vpop.f32.mrf.mxu1 }
 0x3c0   : > { %5138 = vmatpush.msk.msrb.mxu2 %vm540_vm6, %v1465_v57  ;;  %5146 = vmatpush.msk.msrb.mxu3 %vm541_vm5, %v1469_v40 }
 0x3c2   : > { %v1449_v59 = vpop.permute.xlu0 %1448 }
 0x3c3   : > { %v1464_v60 = vsel %vm540_vm6, %v1449_v59, %v1457_v58  ;;  %v1468_v61 = vsel %vm540_vm6, %v1457_v58, %v1449_v59  ;;  %v6760_v59 = vpop.permute.xlu1 %641 }
 0x3c4   : > { %5139 = vmatpush.msk.msrb.mxu2 %vm540_vm6, %v1464_v60  ;;  %5147 = vmatpush.msk.msrb.mxu3 %vm541_vm5, %v1468_v61  ;;  %v1413_v20 = vpop.f32.mrf.mxu0 }
 0x3c7   : > { %5119 = vmatmul.msk.f32.gmra.mxu2 %vm815_vm4, %v565_v0  ;;  %5127 = vmatmul.msk.f32.gmra.mxu3 %vm815_vm4, %v565_v0  ;;  %v1445_v34 = vpop.f32.mrf.mxu1  ;;  %v661_v0 = vld [vmem:[%s8430_s8 + $0x10] sm:$0xff] }
 0x3ca   : > { %v6746_v30 = vpop.permute.xlu0 %651 }
 0x3cc   : > { %v1416_v29 = vpop.f32.mrf.mxu0 }
 0x3cf   : > { %5140 = vmatmul.msk.f32.vlgmr.msrb.gmra.mxu2 %vm815_vm4, %v570_v2  ;;  %5148 = vmatmul.msk.f32.vlgmr.msrb.gmra.mxu3 %vm815_vm4, %v570_v2  ;;  %v662_v2 = vld [vmem:[%s8430_s8 + $0x18] sm:$0xff] }
 0x3d7   : > { %5141 = vmatmul.msk.f32.gmra.mxu2 %vm815_vm4, %v571_v51  ;;  %5149 = vmatmul.msk.f32.gmra.mxu3 %vm815_vm4, %v571_v51  ;;  %v659_v51 = vld [vmem:[%s8430_s8] sm:$0xff] }
 0x3df   : > { %5142 = vmatmul.msk.f32.gmra.mxu2 %vm815_vm4, %v572_v5  ;;  %5150 = vmatmul.msk.f32.gmra.mxu3 %vm815_vm4, %v572_v5  ;;  %v660_v5 = vld [vmem:[%s8430_s8 + $0x8] sm:$0xff] }
 0x3e7   : > { %5143 = vmatmul.msk.f32.gmra.mxu2 %vm815_vm4, %v573_v6  ;;  %5151 = vmatmul.msk.f32.gmra.mxu3 %vm815_vm4, %v573_v6  ;;  %v578_v6 = vld [vmem:[#allocation8 + $0x20] sm:$0xff] }
 0x432   : > { %v1337_v7 = vpop.f32.mrf.mxu2  ;;  %v1366_v8 = vpop.f32.mrf.mxu3 }
 0x433   : > { %v1437_v50 = vadd.f32 %v1436_v12, %v1366_v8  ;;  %v1408_v57 = vadd.f32 %v1407_v62, %v1337_v7  ;;  %v579_v7 = vld [vmem:[#allocation8 + $0x28] sm:$0xff]  ;;  %v580_v8 = vld [vmem:[#allocation8 + $0x30] sm:$0xff] }
 0x43a   : > { %v1340_v3 = vpop.f32.mrf.mxu2  ;;  %v1369_v10 = vpop.f32.mrf.mxu3 }
 0x43b   : > { %v1411_v15 = vadd.f32 %v1410_v32, %v1340_v3  ;;  %v1440_v35 = vadd.f32 %v1439_v36, %v1369_v10 }
 0x442   : > { %v1343_v4 = vpop.f32.mrf.mxu2  ;;  %v1372_v11 = vpop.f32.mrf.mxu3 }
 0x443   : > { %v1414_v22 = vadd.f32 %v1413_v20, %v1343_v4  ;;  %v1443_v23 = vadd.f32 %v1442_v44, %v1372_v11  ;;  %v581_v11 = vld [vmem:[#allocation8 + $0x38] sm:$0xff] }
 0x44a   : > { %v1346_v13 = vpop.f32.mrf.mxu2  ;;  %v1375_v9 = vpop.f32.mrf.mxu3 }
 0x44b   : > { %v1417_v39 = vadd.f32 %v1416_v29, %v1346_v13  ;;  %v1446_v41 = vadd.f32 %v1445_v34, %v1375_v9 }
 0x452   : > { %v1509_v56 = vpop.f32.mrf.mxu2  ;;  %v1538_v14 = vpop.f32.mrf.mxu3 }
 0x453   : > { %v1551_v40 = vadd.f32 %v1538_v14, %v1437_v50  ;;  %v1550_v58 = vadd.f32 %v1509_v56, %v1408_v57  ;;  %v585_v50 = vld [vmem:[#allocation8 + $0x58] sm:$0xff] }
 0x455   : > { %v1559_v60 = vadd.f32 %v1551_v40, %v6760_v59  ;;  %v1558_v61 = vadd.f32 %v1550_v58, %v6760_v59 }
 0x45a   : > { %v1512_v16 = vpop.f32.mrf.mxu2  ;;  %v1541_v17 = vpop.f32.mrf.mxu3 }
 0x45b   : > { %v1552_v19 = vadd.f32 %v1512_v16, %v1411_v15  ;;  %v1553_v42 = vadd.f32 %v1541_v17, %v1440_v35 }
 0x45d   : > { %v1560_v21 = vadd.f32 %v1552_v19, %v6742_v18  ;;  %v1561_v47 = vadd.f32 %v1553_v42, %v6742_v18  ;;  %v574_v19 = vld [vmem:[#allocation8] sm:$0xff] }
 0x45f   : > { %1568 = vrot.lane.b32.xlu2 %v1560_v21, %s6064_s25 }
 0x462   : > { %v1515_v25 = vpop.f32.mrf.mxu2  ;;  %v1544_v26 = vpop.f32.mrf.mxu3 }
 0x463   : > { %v1554_v27 = vadd.f32 %v1515_v25, %v1414_v22  ;;  %v1555_v28 = vadd.f32 %v1544_v26, %v1443_v23  ;;  %v575_v23 = vld [vmem:[#allocation8 + $0x8] sm:$0xff] }
 0x465   : > { %v1562_v31 = vadd.f32 %v1554_v27, %v6746_v30  ;;  %v1563_v33 = vadd.f32 %v1555_v28, %v6746_v30  ;;  %v576_v28 = vld [vmem:[#allocation8 + $0x10] sm:$0xff] }
 0x467   : > { %1578 = vrot.lane.b32.xlu0 %v1563_v33, %s6064_s25  ;;  %1570 = vrot.lane.b32.xlu1 %v1562_v31, %s6064_s25 }
 0x46a   : > { %v1518_v43 = vpop.f32.mrf.mxu2  ;;  %v1547_v45 = vpop.f32.mrf.mxu3 }
 0x46b   : > { %v1556_v46 = vadd.f32 %v1518_v43, %v1417_v39  ;;  %v1557_v55 = vadd.f32 %v1547_v45, %v1446_v41  ;;  %v577_v45 = vld [vmem:[#allocation8 + $0x18] sm:$0xff] }
 0x46d   : > { %v1564_v54 = vadd.f32 %v1556_v46, %v6752_v38  ;;  %v1565_v48 = vadd.f32 %v1557_v55, %v6752_v38 }
 0x46f   : > { %1576 = vrot.lane.b32.xlu1 %v1561_v47, %s6064_s25  ;;  %1580 = vrot.lane.b32.xlu2 %v1565_v48, %s6064_s25 }
 0x470   : > { %1726 = vmatpush.msra.mxu3 %v1565_v48  ;;  %1572 = vrot.lane.b32.xlu0 %v1564_v54, %s6064_s25 }
 0x471   : > { %1697 = vmatpush.msra.mxu2 %v1564_v54 }
 0x472   : > { %1727 = vmatpush.msra.mxu3 %v1563_v33 }
 0x473   : > { %1698 = vmatpush.msra.mxu2 %v1562_v31 }
 0x474   : > { %1728 = vmatpush.msra.mxu3 %v1561_v47 }
 0x475   : > { %1699 = vmatpush.msra.mxu2 %v1560_v21 }
 0x476   : > { %1729 = vmatpush.msra.mxu3 %v1559_v60 }
 0x477   : > { %1700 = vmatpush.msra.mxu2 %v1558_v61  ;;  %1755 = vrot.lane.b32.xlu1 %v1563_v33, %s6065_s27 }
 0x478   : > { %1574 = vrot.lane.b32.xlu2 %v1559_v60, %s6064_s25  ;;  %1566 = vrot.lane.b32.xlu0 %v1558_v61, %s6064_s25 }
 0x479   : > { %5168 = vmatmul.msk.f32.vlgmr.msra.gmra.mxu2 %vm815_vm4, %v578_v6  ;;  %5172 = vmatmul.msk.f32.vlgmr.msra.gmra.mxu3 %vm815_vm4, %v578_v6 }
 0x47f   : > { %1749 = vrot.lane.b32.xlu1 %v1564_v54, %s6065_s27  ;;  %v583_v54 = vld [vmem:[#allocation8 + $0x48] sm:$0xff] }
 0x480   : > { %1747 = vrot.lane.b32.xlu2 %v1562_v31, %s6065_s27  ;;  %1745 = vrot.lane.b32.xlu0 %v1560_v21, %s6065_s27 }
 0x481   : > { %5169 = vmatmul.msk.f32.gmra.mxu2 %vm815_vm4, %v579_v7  ;;  %5173 = vmatmul.msk.f32.gmra.mxu3 %vm815_vm4, %v579_v7 }
 0x487   : > { %1743 = vrot.lane.b32.xlu1 %v1558_v61, %s6065_s27 }
 0x488   : > { %1753 = vrot.lane.b32.xlu2 %v1561_v47, %s6065_s27  ;;  %1757 = vrot.lane.b32.xlu0 %v1565_v48, %s6065_s27  ;;  %v582_v47 = vld [vmem:[#allocation8 + $0x40] sm:$0xff]  ;;  %v584_v48 = vld [vmem:[#allocation8 + $0x50] sm:$0xff] }
 0x489   : > { %5170 = vmatmul.msk.f32.gmra.mxu2 %vm815_vm4, %v580_v8  ;;  %5174 = vmatmul.msk.f32.gmra.mxu3 %vm815_vm4, %v580_v8 }
 0x48f   : > { %675 = vperm.xlu1 %5657, %v661_v0  }
 0x490   : > { %680 = vperm.xlu2 %5658, %v662_v2   ;;  %1751 = vrot.lane.b32.xlu0 %v1559_v60, %s6065_s27 }
 0x491   : > { %5171 = vmatmul.msk.f32.gmra.mxu2 %vm815_vm4, %v581_v11  ;;  %5175 = vmatmul.msk.f32.gmra.mxu3 %vm815_vm4, %v581_v11 }
 0x498   : > { %665 = vperm.xlu2 %5658, %v659_v51   ;;  %670 = vperm.xlu0 %5656, %v660_v5  }
 0x4b9   : > { %v1569_v3 = vpop.permute.xlu2 %1568 }
 0x4c9   : > { %v1581_v62 = vpop.permute.xlu2 %1580 }
 0x4d2   : > { %v1575_v16 = vpop.permute.xlu2 %1574 }
 0x4d9   : > { %v1579_v10 = vpop.permute.xlu0 %1578  ;;  %v1571_v4 = vpop.permute.xlu1 %1570 }
 0x4da   : > { %v1589_v36 = vsel %vm1582_vm14, %v1579_v10, %v1571_v4  ;;  %v1585_v56 = vsel %vm1582_vm14, %v1571_v4, %v1579_v10  ;;  %v1748_v25 = vpop.permute.xlu2 %1747 }
 0x4e1   : > { %v1577_v32 = vpop.permute.xlu1 %1576 }
 0x4e2   : > { %v1573_v12 = vpop.permute.xlu0 %1572  ;;  %v1588_v14 = vsel %vm1582_vm14, %v1577_v32, %v1569_v3  ;;  %v1584_v15 = vsel %vm1582_vm14, %v1569_v3, %v1577_v32  ;;  %v1754_v35 = vpop.permute.xlu2 %1753 }
 0x4e3   : > { %v1586_v13 = vsel %vm1582_vm14, %v1573_v12, %v1581_v62  ;;  %v1590_v9 = vsel %vm1582_vm14, %v1581_v62, %v1573_v12 }
 0x4e4   : > { %5152 = vmatpush.msk.msra.mxu0 %vm8442_vm12, %v1590_v9  ;;  %5160 = vmatpush.msk.msra.mxu1 %vm8441_vm13, %v1586_v13 }
 0x4e6   : > { %5153 = vmatpush.msk.msra.mxu0 %vm8442_vm12, %v1589_v36  ;;  %5161 = vmatpush.msk.msra.mxu1 %vm8441_vm13, %v1585_v56 }
 0x4e8   : > { %5154 = vmatpush.msk.msra.mxu0 %vm8442_vm12, %v1588_v14  ;;  %5162 = vmatpush.msk.msra.mxu1 %vm8441_vm13, %v1584_v15 }
 0x4e9   : > { %v1756_v21 = vpop.permute.xlu1 %1755 }
 0x4ea   : > { %v1567_v17 = vpop.permute.xlu0 %1566  ;;  %v1762_v29 = vsel %vm8440_vm0, %v1748_v25, %v1756_v21  ;;  %v1766_v34 = vsel %vm8440_vm0, %v1756_v21, %v1748_v25 }
 0x4eb   : > { %v1587_v20 = vsel %vm1582_vm14, %v1575_v16, %v1567_v17  ;;  %v1583_v44 = vsel %vm1582_vm14, %v1567_v17, %v1575_v16 }
 0x4ec   : > { %5155 = vmatpush.msk.msra.mxu0 %vm8442_vm12, %v1587_v20  ;;  %5163 = vmatpush.msk.msra.mxu1 %vm8441_vm13, %v1583_v44 }
 0x4ed   : > { %5156 = vmatmul.msk.f32.vlgmr.msra.gmra.mxu0 %vm815_vm4, %v574_v19  ;;  %5164 = vmatmul.msk.f32.vlgmr.msra.gmra.mxu1 %vm815_vm4, %v574_v19 }
 0x4f1   : > { %v1750_v26 = vpop.permute.xlu1 %1749 }
 0x4f2   : > { %v1746_v22 = vpop.permute.xlu0 %1745 }
 0x4f3   : > { %v1761_v39 = vsel %vm8440_vm0, %v1746_v22, %v1754_v35  ;;  %v1765_v41 = vsel %vm8440_vm0, %v1754_v35, %v1746_v22 }
 0x4f5   : > { %5157 = vmatmul.msk.f32.gmra.mxu0 %vm815_vm4, %v575_v23  ;;  %5165 = vmatmul.msk.f32.gmra.mxu1 %vm815_vm4, %v575_v23 }
 0x4f9   : > { %v1744_v42 = vpop.permute.xlu1 %1743 }
 0x4fa   : > { %v1758_v27 = vpop.permute.xlu0 %1757 }
 0x4fb   : > { %v1763_v31 = vsel %vm8440_vm0, %v1750_v26, %v1758_v27  ;;  %v1767_v33 = vsel %vm8440_vm0, %v1758_v27, %v1750_v26 }
 0x4fc   : > { %5176 = vmatpush.msk.msrb.mxu0 %vm8440_vm0, %v1763_v31  ;;  %5184 = vmatpush.msk.msrb.mxu1 %vm8439_vm15, %v1767_v33  ;;  %v1702_v2 = vpop.f32.mrf.mxu2  ;;  %v1731_v51 = vpop.f32.mrf.mxu3 }
 0x4fd   : > { %5158 = vmatmul.msk.f32.gmra.mxu0 %vm815_vm4, %v576_v28  ;;  %5166 = vmatmul.msk.f32.gmra.mxu1 %vm815_vm4, %v576_v28  ;;  %v6886_v31 = vpop.permute.xlu2 %680 }
 0x4fe   : > { %5177 = vmatpush.msk.msrb.mxu0 %vm8440_vm0, %v1762_v29  ;;  %5185 = vmatpush.msk.msrb.mxu1 %vm8439_vm15, %v1766_v34 }
 0x500   : > { %5178 = vmatpush.msk.msrb.mxu0 %vm8440_vm0, %v1761_v39  ;;  %5186 = vmatpush.msk.msrb.mxu1 %vm8439_vm15, %v1765_v41 }
 0x501   : > { %v6882_v44 = vpop.permute.xlu1 %675 }
 0x502   : > { %v1752_v43 = vpop.permute.xlu0 %1751 }
 0x503   : > { %v1760_v46 = vsel %vm8440_vm0, %v1744_v42, %v1752_v43  ;;  %v1764_v55 = vsel %vm8440_vm0, %v1752_v43, %v1744_v42 }
 0x504   : > { %5179 = vmatpush.msk.msrb.mxu0 %vm8440_vm0, %v1760_v46  ;;  %5187 = vmatpush.msk.msrb.mxu1 %vm8439_vm15, %v1764_v55  ;;  %v1705_v7 = vpop.f32.mrf.mxu2  ;;  %v1734_v8 = vpop.f32.mrf.mxu3 }
 0x505   : > { %5159 = vmatmul.msk.f32.gmra.mxu0 %vm815_vm4, %v577_v45  ;;  %5167 = vmatmul.msk.f32.gmra.mxu1 %vm815_vm4, %v577_v45 }
 0x50a   : > { %v6879_v12 = vpop.permute.xlu0 %670 }
 0x50c   : > { %v1708_v9 = vpop.f32.mrf.mxu2  ;;  %v1737_v32 = vpop.f32.mrf.mxu3 }
 0x50d   : > { %5180 = vmatmul.msk.f32.vlgmr.msrb.gmra.mxu0 %vm815_vm4, %v582_v47  ;;  %5188 = vmatmul.msk.f32.vlgmr.msrb.gmra.mxu1 %vm815_vm4, %v582_v47 }
 0x514   : > { %v1711_v25 = vpop.f32.mrf.mxu2  ;;  %v1740_v26 = vpop.f32.mrf.mxu3 }
 0x515   : > { %5181 = vmatmul.msk.f32.gmra.mxu0 %vm815_vm4, %v583_v54  ;;  %5189 = vmatmul.msk.f32.gmra.mxu1 %vm815_vm4, %v583_v54 }
 0x51d   : > { %5182 = vmatmul.msk.f32.gmra.mxu0 %vm815_vm4, %v584_v48  ;;  %5190 = vmatmul.msk.f32.gmra.mxu1 %vm815_vm4, %v584_v48 }
 0x525   : > { %5183 = vmatmul.msk.f32.gmra.mxu0 %vm815_vm4, %v585_v50  ;;  %5191 = vmatmul.msk.f32.gmra.mxu1 %vm815_vm4, %v585_v50 }
 0x56a   : > { %v1632_v57 = vpop.f32.mrf.mxu0  ;;  %v1661_v40 = vpop.f32.mrf.mxu1 }
 0x56b   : > { %v1703_v45 = vadd.f32 %v1702_v2, %v1632_v57  ;;  %v1732_v46 = vadd.f32 %v1731_v51, %v1661_v40 }
 0x572   : > { %v1635_v58 = vpop.f32.mrf.mxu0  ;;  %v1664_v60 = vpop.f32.mrf.mxu1 }
 0x573   : > { %v1706_v4 = vadd.f32 %v1705_v7, %v1635_v58  ;;  %v1735_v23 = vadd.f32 %v1734_v8, %v1664_v60 }
 0x57a   : > { %v1638_v61 = vpop.f32.mrf.mxu0  ;;  %v1667_v0 = vpop.f32.mrf.mxu1 }
 0x57b   : > { %v1709_v14 = vadd.f32 %v1708_v9, %v1638_v61  ;;  %v1738_v15 = vadd.f32 %v1737_v32, %v1667_v0  ;;  %v6891_v61 = vpop.permute.xlu2 %665 }
 0x582   : > { %v1641_v5 = vpop.f32.mrf.mxu0  ;;  %v1670_v6 = vpop.f32.mrf.mxu1 }
 0x583   : > { %v1712_v29 = vadd.f32 %v1711_v25, %v1641_v5  ;;  %v1741_v34 = vadd.f32 %v1740_v26, %v1670_v6 }
 0x58a   : > { %v1809_v3 = vpop.f32.mrf.mxu0  ;;  %v1838_v10 = vpop.f32.mrf.mxu1 }
 0x58b   : > { %v1850_v54 = vadd.f32 %v1809_v3, %v1703_v45  ;;  %v1851_v48 = vadd.f32 %v1838_v10, %v1732_v46 }
 0x58d   : > { %v1859_v0 = vadd.f32 %v1851_v48, %v6891_v61  ;;  %v1858_v5 = vadd.f32 %v1850_v54, %v6891_v61 }
 0x58f   : > { %v1867_v57 = vmax.f32 %v1859_v0, 0.0  ;;  %v1866_v40 = vmax.f32 %v1858_v5, 0.0 }
 0x592   : > { %v1812_v11 = vpop.f32.mrf.mxu0  ;;  %v1841_v62 = vpop.f32.mrf.mxu1 }
 0x593   : > { %v1852_v13 = vadd.f32 %v1812_v11, %v1706_v4  ;;  %v1853_v33 = vadd.f32 %v1841_v62, %v1735_v23 }
 0x595   : > { %v1860_v36 = vadd.f32 %v1852_v13, %v6879_v12  ;;  %v1861_v43 = vadd.f32 %v1853_v33, %v6879_v12 }
 0x597   : > { %v1868_v56 = vmax.f32 %v1860_v36, 0.0  ;;  %v1869_v60 = vmax.f32 %v1861_v43, 0.0 }
 0x599   : > { %1876 = vadd.xlane.f32.xlu0 %v1868_v56 }
 0x59a   : > { %v1815_v16 = vpop.f32.mrf.mxu0  ;;  %v1844_v17 = vpop.f32.mrf.mxu1 }
 0x59b   : > { %v1854_v19 = vadd.f32 %v1815_v16, %v1709_v14  ;;  %v1855_v20 = vadd.f32 %v1844_v17, %v1738_v15 }
 0x59d   : > { %v1863_v21 = vadd.f32 %v1855_v20, %v6882_v44  ;;  %v1862_v22 = vadd.f32 %v1854_v19, %v6882_v44 }
 0x59f   : > { %v1871_v27 = vmax.f32 %v1863_v21, 0.0  ;;  %v1870_v28 = vmax.f32 %v1862_v22, 0.0 }
 0x5a1   : > { %1966 = vadd.xlane.f32.xlu1 %v1871_v27  ;;  %1878 = vadd.xlane.f32.xlu2 %v1870_v28 }
 0x5a2   : > { %v1818_v35 = vpop.f32.mrf.mxu0  ;;  %v1847_v39 = vpop.f32.mrf.mxu1 }
 0x5a3   : > { %v1856_v41 = vadd.f32 %v1818_v35, %v1712_v29  ;;  %v1857_v42 = vadd.f32 %v1847_v39, %v1741_v34 }
 0x5a5   : > { %v1865_v55 = vadd.f32 %v1857_v42, %v6886_v31  ;;  %v1864_v47 = vadd.f32 %v1856_v41, %v6886_v31 }
 0x5a7   : > { %v1873_v50 = vmax.f32 %v1865_v55, 0.0  ;;  %v1872_v58 = vmax.f32 %v1864_v47, 0.0 }
 0x5a9   : > { %1968 = vadd.xlane.f32.xlu0 %v1873_v50  ;;  %1880 = vadd.xlane.f32.xlu1 %v1872_v58 }
 0x5aa   : > { %1964 = vadd.xlane.f32.xlu2 %v1869_v60 }
 0x5b1   : > { %1962 = vadd.xlane.f32.xlu0 %v1867_v57  ;;  %1874 = vadd.xlane.f32.xlu1 %v1866_v40 }
 0x60c   : > { %v1877_v2 = vpop.xlane.xlu0 %1876 }
 0x60d   : > { %v1883_v51 = vmul.f32 %v1877_v2, %v6506_v37 }
 0x60f   : > { %v6896_v6 = vsub.f32 %v1868_v56, %v1883_v51 }
 0x611   : > { %v1891_v7 = vmul.f32 %v6896_v6, %v6896_v6 }
 0x613   : > { %1896 = vadd.xlane.f32.xlu1 %v1891_v7 }
 0x614   : > { %v1967_v8 = vpop.xlane.xlu1 %1966  ;;  %v1879_v3 = vpop.xlane.xlu2 %1878 }
 0x615   : > { %v1972_v10 = vmul.f32 %v1967_v8, %v6506_v37  ;;  %v1884_v4 = vmul.f32 %v1879_v3, %v6506_v37 }
 0x617   : > { %v6902_v11 = vsub.f32 %v1871_v27, %v1972_v10  ;;  %v6904_v62 = vsub.f32 %v1870_v28, %v1884_v4 }
 0x619   : > { %v1980_v13 = vmul.f32 %v6902_v11, %v6902_v11  ;;  %v1892_v9 = vmul.f32 %v6904_v62, %v6904_v62 }
 0x61b   : > { %1986 = vadd.xlane.f32.xlu2 %v1980_v13  ;;  %1898 = vadd.xlane.f32.xlu0 %v1892_v9 }
 0x61c   : > { %v1969_v32 = vpop.xlane.xlu0 %1968  ;;  %v1881_v36 = vpop.xlane.xlu1 %1880 }
 0x61d   : > { %v1973_v56 = vmul.f32 %v1969_v32, %v6506_v37  ;;  %v1885_v14 = vmul.f32 %v1881_v36, %v6506_v37  ;;  %v1965_v15 = vpop.xlane.xlu2 %1964 }
 0x61e   : > { %v1971_v16 = vmul.f32 %v1965_v15, %v6506_v37 }
 0x61f   : > { %v6913_v17 = vsub.f32 %v1873_v50, %v1973_v56  ;;  %v6915_v19 = vsub.f32 %v1872_v58, %v1885_v14 }
 0x620   : > { %v6917_v20 = vsub.f32 %v1869_v60, %v1971_v16 }
 0x621   : > { %v1981_v21 = vmul.f32 %v6913_v17, %v6913_v17  ;;  %v1893_v22 = vmul.f32 %v6915_v19, %v6915_v19 }
 0x622   : > { %v1979_v23 = vmul.f32 %v6917_v20, %v6917_v20 }
 0x623   : > { %1988 = vadd.xlane.f32.xlu1 %v1981_v21  ;;  %1900 = vadd.xlane.f32.xlu2 %v1893_v22 }
 0x624   : > { %1984 = vadd.xlane.f32.xlu0 %v1979_v23  ;;  %v1963_v25 = vpop.xlane.xlu0 %1962  ;;  %v1875_v26 = vpop.xlane.xlu1 %1874 }
 0x625   : > { %v1970_v27 = vmul.f32 %v1963_v25, %v6506_v37  ;;  %v1882_v28 = vmul.f32 %v1875_v26, %v6506_v37 }
 0x627   : > { %v6927_v33 = vsub.f32 %v1867_v57, %v1970_v27  ;;  %v6929_v29 = vsub.f32 %v1866_v40, %v1882_v28 }
 0x629   : > { %v1978_v34 = vmul.f32 %v6927_v33, %v6927_v33  ;;  %v1890_v35 = vmul.f32 %v6929_v29, %v6929_v29 }
 0x62b   : > { %1982 = vadd.xlane.f32.xlu1 %v1978_v34  ;;  %1894 = vadd.xlane.f32.xlu2 %v1890_v35  ;;  %v6956_v34 = vld [vmem:[%s8431_s9] ss:$0 sm:$0xff] }
 0x686   : > { %v1897_v39 = vpop.xlane.xlu1 %1896 }
 0x687   : > { %v1903_v41 = vmul.f32 %v1897_v39, %v6506_v37 }
 0x689   : > { %v1907_v42 = vadd.f32 1e-05, %v1903_v41 }
 0x68b   : > { %5679 = vrsqrt.f32 %v1907_v42  ;;  %vm1926_vm8 = vweird.f32 %v1907_v42 }
 0x68e   : > { %v1899_v43 = vpop.xlane.xlu0 %1898  ;;  %v1987_v45 = vpop.xlane.xlu2 %1986 }
 0x68f   : > { %v1904_v46 = vmul.f32 %v1899_v43, %v6506_v37  ;;  %v1992_v55 = vmul.f32 %v1987_v45, %v6506_v37 }
 0x691   : > { %v5680_v47 = vpop.eup %5679  ;;  %v1908_v54 = vadd.f32 1e-05, %v1904_v46  ;;  %v1996_v48 = vadd.f32 1e-05, %v1992_v55  ;;  %v6967_v55 = vld [vmem:[%s8432_s10] ss:$0 sm:$0xff] }
 0x692   : > { %v1921_v50 = vmul.f32 %v5680_v47, %v1907_v42  ;;  %vm1927_vm7 = vweird.f32 %v5680_v47 }
 0x693   : > { %5681 = vrsqrt.f32 %v1908_v54  ;;  %vm1928_vm9 = vmor %vm1926_vm8, %vm1927_vm7  ;;  %vm1936_vm7 = vweird.f32 %v1908_v54 }
 0x694   : > { %v1922_v58 = vmul.f32 %v5680_v47, %v1921_v50  ;;  %5683 = vrsqrt.f32 %v1996_v48 }
 0x696   : > { %v1923_v60 = vmul.f32 0.5, %v1922_v58  ;;  %v1989_v0 = vpop.xlane.xlu1 %1988  ;;  %v1901_v5 = vpop.xlane.xlu2 %1900 }
 0x697   : > { %v1993_v57 = vmul.f32 %v1989_v0, %v6506_v37  ;;  %v1985_v40 = vpop.xlane.xlu0 %1984  ;;  %v1905_v2 = vmul.f32 %v1901_v5, %v6506_v37 }
 0x698   : > { %v1924_v51 = vsub.f32 1.5, %v1923_v60  ;;  %v1991_v7 = vmul.f32 %v1985_v40, %v6506_v37 }
 0x699   : > { %v5682_v8 = vpop.eup %5681  ;;  %v6941_v3 = vadd.f32 1e-05, %v1993_v57  ;;  %v6943_v10 = vadd.f32 1e-05, %v1905_v2 }
 0x69a   : > { %v5684_v4 = vpop.eup %5683  ;;  %v1925_v13 = vmul.f32 %v5680_v47, %v1924_v51  ;;  %v1931_v9 = vmul.f32 %v5682_v8, %v1908_v54  ;;  %v6945_v32 = vadd.f32 1e-05, %v1991_v7  ;;  %vm1937_vm10 = vweird.f32 %v5682_v8 }
 0x69b   : > { %v2019_v36 = vmul.f32 %v5684_v4, %v1996_v48  ;;  %5685 = vrsqrt.f32 %v6941_v3  ;;  %vm2025_vm11 = vweird.f32 %v5684_v4  ;;  %vm1938_vm8 = vmor %vm1936_vm7, %vm1937_vm10  ;;  %vm2034_vm0 = vweird.f32 %v6941_v3 }
 0x69c   : > { %v1932_v56 = vmul.f32 %v5682_v8, %v1931_v9  ;;  %5687 = vrsqrt.f32 %v6945_v32  ;;  %v1929_v15 = vsel %vm1928_vm9, %v5680_v47, %v1925_v13  ;;  %vm2024_vm9 = vweird.f32 %v1996_v48 }
 0x69d   : > { %v2020_v14 = vmul.f32 %v5684_v4, %v2019_v36  ;;  %5689 = vrsqrt.f32 %v6943_v10  ;;  %v1951_v23 = vmul.f32 %v1929_v15, %v6896_v6  ;;  %vm2026_vm15 = vmor %vm2024_vm9, %vm2025_vm11  ;;  %vm2014_vm11 = vweird.f32 %v6945_v32 }
 0x69e   : > { %v1933_v16 = vmul.f32 0.5, %v1932_v56  ;;  %v1983_v21 = vpop.xlane.xlu1 %1982  ;;  %v1895_v22 = vpop.xlane.xlu2 %1894  ;;  %vm1946_vm9 = vweird.f32 %v6943_v10 }
 0x69f   : > { %v2021_v25 = vmul.f32 0.5, %v2020_v14  ;;  %v1990_v26 = vmul.f32 %v1983_v21, %v6506_v37  ;;  %v1902_v27 = vmul.f32 %v1895_v22, %v6506_v37  ;;  %v1955_v35 = vmul.f32 %v6956_v34, %v1951_v23 }
 0x6a0   : > { %v1934_v28 = vsub.f32 1.5, %v1933_v16 }
 0x6a1   : > { %v5686_v39 = vpop.eup %5685  ;;  %v2022_v41 = vsub.f32 1.5, %v2021_v25  ;;  %v6959_v42 = vadd.f32 1e-05, %v1990_v26  ;;  %v6961_v43 = vadd.f32 1e-05, %v1902_v27  ;;  %v6970_v47 = vadd.f32 %v6967_v55, %v1955_v35 }
 0x6a2   : > { %v5688_v6 = vpop.eup %5687  ;;  %v1935_v45 = vmul.f32 %v5682_v8, %v1934_v28  ;;  %v2029_v46 = vmul.f32 %v5686_v39, %v6941_v3  ;;  %vm2035_vm10 = vweird.f32 %v5686_v39 }
 0x6a3   : > { %v5690_v50 = vpop.eup %5689  ;;  %v2023_v58 = vmul.f32 %v5684_v4, %v2022_v41  ;;  %v2009_v60 = vmul.f32 %v5688_v6, %v6945_v32  ;;  %5691 = vrsqrt.f32 %v6959_v42  ;;  %2052 = vrot.lane.b32.xlu2 %v6970_v47, %s6061_s19  ;;  %vm2015_vm7 = vweird.f32 %v5688_v6 }
 0x6a4   : > { %v2030_v0 = vmul.f32 %v5686_v39, %v2029_v46  ;;  %v1941_v5 = vmul.f32 %v5690_v50, %v6943_v10  ;;  %5693 = vrsqrt.f32 %v6961_v43  ;;  %v1939_v40 = vsel %vm1938_vm8, %v5682_v8, %v1935_v45  ;;  %vm2036_vm8 = vmor %vm2034_vm0, %vm2035_vm10 }
 0x6a5   : > { %v2010_v57 = vmul.f32 %v5688_v6, %v2009_v60  ;;  %v1952_v51 = vmul.f32 %v1939_v40, %v6904_v62  ;;  %v2027_v7 = vsel %vm2026_vm15, %v5684_v4, %v2023_v58  ;;  %vm1947_vm15 = vweird.f32 %v5690_v50  ;;  %vm2016_vm13 = vmor %vm2014_vm11, %vm2015_vm7 }
 0x6a6   : > { %v2031_v54 = vmul.f32 0.5, %v2030_v0  ;;  %v1942_v2 = vmul.f32 %v5690_v50, %v1941_v5  ;;  %v2040_v48 = vmul.f32 %v2027_v7, %v6902_v11  ;;  %vm1948_vm12 = vmor %vm1946_vm9, %vm1947_vm15  ;;  %vm2004_vm10 = vweird.f32 %v6959_v42 }
 0x6a7   : > { %v2011_v13 = vmul.f32 0.5, %v2010_v57  ;;  %v1956_v56 = vmul.f32 %v6956_v34, %v1952_v51  ;;  %vm1916_vm11 = vweird.f32 %v6961_v43 }
 0x6a8   : > { %v2032_v9 = vsub.f32 1.5, %v2031_v54  ;;  %v1943_v36 = vmul.f32 0.5, %v1942_v2  ;;  %v2044_v8 = vmul.f32 %v6956_v34, %v2040_v48  ;;  %v5747_v48 = vld [vmem:[#allocation5 + $0x30] sm:$0xff] }
 0x6a9   : > { %v5692_v14 = vpop.eup %5691  ;;  %v2012_v15 = vsub.f32 1.5, %v2011_v13  ;;  %v1960_v22 = vadd.f32 %v6967_v55, %v1956_v56  ;;  %v5745_v13 = vld [vmem:[#allocation5 + $0x20] sm:$0xff] }
 0x6aa   : > { %v2033_v16 = vmul.f32 %v5686_v39, %v2032_v9  ;;  %v1944_v62 = vsub.f32 1.5, %v1943_v36  ;;  %v1999_v4 = vmul.f32 %v5692_v14, %v6959_v42  ;;  %v5694_v21 = vpop.eup %5693  ;;  %v2048_v23 = vadd.f32 %v6967_v55, %v2044_v8  ;;  %v5748_v9 = vld [vmem:[#allocation5 + $0x38] sm:$0xff] }
 0x6ab   : > { %v2013_v11 = vmul.f32 %v5688_v6, %v2012_v15  ;;  %v1911_v27 = vmul.f32 %v5694_v21, %v6961_v43  ;;  %2054 = vrot.lane.b32.xlu1 %v1960_v22, %s6061_s19  ;;  %vm2005_vm0 = vweird.f32 %v5692_v14 }
 0x6ac   : > { %v2037_v32 = vsel %vm2036_vm8, %v5686_v39, %v2033_v16  ;;  %v1945_v25 = vmul.f32 %v5690_v50, %v1944_v62  ;;  %v2000_v26 = vmul.f32 %v5692_v14, %v1999_v4  ;;  %2062 = vrot.lane.b32.xlu0 %v2048_v23, %s6061_s19 }
 0x6ad   : > { %v2041_v28 = vmul.f32 %v2037_v32, %v6913_v17  ;;  %v2017_v3 = vsel %vm2016_vm13, %v5688_v6, %v2013_v11  ;;  %v1912_v10 = vmul.f32 %v5694_v21, %v1911_v27  ;;  %vm1917_vm13 = vweird.f32 %v5694_v21  ;;  %v5749_v27 = vld [vmem:[#allocation5] sm:$0xff] }
 0x6ae   : > { %v2001_v35 = vmul.f32 0.5, %v2000_v26  ;;  %v1949_v41 = vsel %vm1948_vm12, %v5690_v50, %v1945_v25  ;;  %v2039_v45 = vmul.f32 %v2017_v3, %v6917_v20  ;;  %vm2006_vm12 = vmor %vm2004_vm10, %vm2005_vm0 }
 0x6af   : > { %v2045_v39 = vmul.f32 %v6956_v34, %v2041_v28  ;;  %v1953_v46 = vmul.f32 %v1949_v41, %v6915_v19  ;;  %v1913_v60 = vmul.f32 0.5, %v1912_v10  ;;  %vm1918_vm7 = vmor %vm1916_vm11, %vm1917_vm13  ;;  %v5750_v10 = vld [vmem:[#allocation5 + $0x8] sm:$0xff] }
 0x6b0   : > { %v2002_v58 = vsub.f32 1.5, %v2001_v35  ;;  %v2043_v50 = vmul.f32 %v6956_v34, %v2039_v45 }
 0x6b1   : > { %v2049_v17 = vadd.f32 %v6967_v55, %v2045_v39  ;;  %v1957_v0 = vmul.f32 %v6956_v34, %v1953_v46  ;;  %v1914_v6 = vsub.f32 1.5, %v1913_v60 }
 0x6b2   : > { %v2003_v5 = vmul.f32 %v5692_v14, %v2002_v58  ;;  %v2047_v40 = vadd.f32 %v6967_v55, %v2043_v50 }
 0x6b3   : > { %2181 = vmatpush.msra.mxu1 %v2049_v17  ;;  %2064 = vrot.lane.b32.xlu2 %v2049_v17, %s6061_s19  ;;  %v1961_v19 = vadd.f32 %v6967_v55, %v1957_v0  ;;  %v1915_v20 = vmul.f32 %v5694_v21, %v1914_v6  ;;  %v5751_v0 = vld [vmem:[#allocation5 + $0x10] sm:$0xff] }
 0x6b4   : > { %v2007_v57 = vsel %vm2006_vm12, %v5692_v14, %v2003_v5 }
 0x6b5   : > { %2056 = vrot.lane.b32.xlu0 %v1961_v19, %s6061_s19  ;;  %2152 = vmatpush.msra.mxu0 %v1961_v19  ;;  %v2038_v42 = vmul.f32 %v2007_v57, %v6927_v33  ;;  %v1919_v54 = vsel %vm1918_vm7, %v5694_v21, %v1915_v20 }
 0x6b6   : > { %2182 = vmatpush.msra.mxu1 %v2048_v23  ;;  %v1950_v51 = vmul.f32 %v1919_v54, %v6929_v29  ;;  %v5746_v29 = vld [vmem:[#allocation5 + $0x28] sm:$0xff] }
 0x6b7   : > { %2153 = vmatpush.msra.mxu0 %v1960_v22  ;;  %v2042_v2 = vmul.f32 %v6956_v34, %v2038_v42  ;;  %v5752_v42 = vld [vmem:[#allocation5 + $0x18] sm:$0xff]  ;;  %v5754_v54 = vld [vmem:[#allocation5 + $0x48] sm:$0xff] }
 0x6b8   : > { %2183 = vmatpush.msra.mxu1 %v2047_v40  ;;  %v1954_v7 = vmul.f32 %v6956_v34, %v1950_v51  ;;  %v5756_v51 = vld [vmem:[#allocation5 + $0x58] sm:$0xff] }
 0x6b9   : > { %2154 = vmatpush.msra.mxu0 %v6970_v47  ;;  %v2046_v43 = vadd.f32 %v6967_v55, %v2042_v2  ;;  %v5755_v2 = vld [vmem:[#allocation5 + $0x50] sm:$0xff] }
 0x6ba   : > { %v1958_v33 = vadd.f32 %v6967_v55, %v1954_v7 }
 0x6bb   : > { %2058 = vrot.lane.b32.xlu2 %v2046_v43, %s6061_s19  ;;  %2184 = vmatpush.msra.mxu1 %v2046_v43 }
 0x6bc   : > { %5212 = vmatmul.msk.f32.vlgmr.msra.gmra.mxu1 %vm815_vm4, %v5745_v13  ;;  %2050 = vrot.lane.b32.xlu1 %v1958_v33, %s6061_s19 }
 0x6bd   : > { %2060 = vrot.lane.b32.xlu0 %v2047_v40, %s6061_s19  ;;  %2155 = vmatpush.msra.mxu0 %v1958_v33 }
 0x6be   : > { %5208 = vmatmul.msk.f32.vlgmr.msra.gmra.mxu0 %vm815_vm4, %v5745_v13 }
 0x6c3   : > { %2202 = vrot.lane.b32.xlu2 %v1960_v22, %s6062_s17 }
 0x6c4   : > { %5213 = vmatmul.msk.f32.gmra.mxu1 %vm815_vm4, %v5746_v29  ;;  %2200 = vrot.lane.b32.xlu1 %v6970_v47, %s6062_s17 }
 0x6c5   : > { %2210 = vrot.lane.b32.xlu0 %v2048_v23, %s6062_s17 }
 0x6c6   : > { %5209 = vmatmul.msk.f32.gmra.mxu0 %vm815_vm4, %v5746_v29 }
 0x6cb   : > { %2208 = vrot.lane.b32.xlu2 %v2047_v40, %s6062_s17  ;;  %v5753_v40 = vld [vmem:[#allocation5 + $0x40] sm:$0xff] }
 0x6cc   : > { %5214 = vmatmul.msk.f32.gmra.mxu1 %vm815_vm4, %v5747_v48  ;;  %2212 = vrot.lane.b32.xlu1 %v2049_v17, %s6062_s17 }
 0x6cd   : > { %2204 = vrot.lane.b32.xlu0 %v1961_v19, %s6062_s17 }
 0x6ce   : > { %5210 = vmatmul.msk.f32.gmra.mxu0 %vm815_vm4, %v5747_v48 }
 0x6d4   : > { %5215 = vmatmul.msk.f32.gmra.mxu1 %vm815_vm4, %v5748_v9  ;;  %2206 = vrot.lane.b32.xlu1 %v2046_v43, %s6062_s17 }
 0x6d5   : > { %2198 = vrot.lane.b32.xlu0 %v1958_v33, %s6062_s17 }
 0x6d6   : > { %5211 = vmatmul.msk.f32.gmra.mxu0 %vm815_vm4, %v5748_v9 }
 0x6fd   : > { %v2053_v47 = vpop.permute.xlu2 %2052 }
 0x70d   : > { %v2065_v56 = vpop.permute.xlu2 %2064 }
 0x715   : > { %v2059_v21 = vpop.permute.xlu2 %2058 }
 0x71d   : > { %v2055_v14 = vpop.permute.xlu1 %2054  ;;  %v2203_v35 = vpop.permute.xlu2 %2202 }
 0x71e   : > { %v2063_v36 = vpop.permute.xlu0 %2062 }
 0x71f   : > { %v2072_v62 = vsel %vm794_vm1, %v2063_v36, %v2055_v14  ;;  %v2068_v4 = vsel %vm794_vm1, %v2055_v14, %v2063_v36 }
 0x725   : > { %v2209_v17 = vpop.permute.xlu2 %2208 }
 0x727   : > { %v2057_v15 = vpop.permute.xlu0 %2056 }
 0x728   : > { %v2069_v8 = vsel %vm794_vm1, %v2057_v15, %v2065_v56  ;;  %v2073_v16 = vsel %vm794_vm1, %v2065_v56, %v2057_v15 }
 0x729   : > { %5192 = vmatpush.msk.msrb.mxu2 %vm538_vm2, %v2073_v16  ;;  %5200 = vmatpush.msk.msrb.mxu3 %vm539_vm3, %v2069_v8 }
 0x72b   : > { %5193 = vmatpush.msk.msrb.mxu2 %vm538_vm2, %v2072_v62  ;;  %5201 = vmatpush.msk.msrb.mxu3 %vm539_vm3, %v2068_v4 }
 0x72e   : > { %v2051_v22 = vpop.permute.xlu1 %2050 }
 0x72f   : > { %v2061_v11 = vpop.permute.xlu0 %2060  ;;  %v2070_v25 = vsel %vm794_vm1, %v2059_v21, %v2051_v22  ;;  %v2066_v26 = vsel %vm794_vm1, %v2051_v22, %v2059_v21 }
 0x730   : > { %v2071_v23 = vsel %vm794_vm1, %v2061_v11, %v2053_v47  ;;  %v2067_v32 = vsel %vm794_vm1, %v2053_v47, %v2061_v11 }
 0x731   : > { %5194 = vmatpush.msk.msrb.mxu2 %vm538_vm2, %v2071_v23  ;;  %5202 = vmatpush.msk.msrb.mxu3 %vm539_vm3, %v2067_v32 }
 0x733   : > { %5195 = vmatpush.msk.msrb.mxu2 %vm538_vm2, %v2070_v25  ;;  %5203 = vmatpush.msk.msrb.mxu3 %vm539_vm3, %v2066_v26 }
 0x734   : > { %5196 = vmatmul.msk.f32.vlgmr.msrb.gmra.mxu2 %vm815_vm4, %v5749_v27  ;;  %5204 = vmatmul.msk.f32.vlgmr.msrb.gmra.mxu3 %vm815_vm4, %v5749_v27 }
 0x736   : > { %v2201_v3 = vpop.permute.xlu1 %2200 }
 0x737   : > { %v2211_v28 = vpop.permute.xlu0 %2210  ;;  %v2215_v5 = vsel %vm540_vm6, %v2201_v3, %v2209_v17  ;;  %v2219_v6 = vsel %vm540_vm6, %v2209_v17, %v2201_v3 }
 0x738   : > { %v2216_v58 = vsel %vm540_vm6, %v2203_v35, %v2211_v28  ;;  %v2220_v60 = vsel %vm540_vm6, %v2211_v28, %v2203_v35 }
 0x739   : > { %v2186_v47 = vpop.f32.mrf.mxu1 }
 0x73b   : > { %v2157_v9 = vpop.f32.mrf.mxu0 }
 0x73c   : > { %5197 = vmatmul.msk.f32.gmra.mxu2 %vm815_vm4, %v5750_v10  ;;  %5205 = vmatmul.msk.f32.gmra.mxu3 %vm815_vm4, %v5750_v10 }
 0x73e   : > { %v2213_v45 = vpop.permute.xlu1 %2212 }
 0x73f   : > { %v2205_v41 = vpop.permute.xlu0 %2204 }
 0x740   : > { %v2217_v39 = vsel %vm540_vm6, %v2205_v41, %v2213_v45  ;;  %v2221_v46 = vsel %vm540_vm6, %v2213_v45, %v2205_v41 }
 0x741   : > { %5216 = vmatpush.msk.msra.mxu2 %vm540_vm6, %v2217_v39  ;;  %5224 = vmatpush.msk.msra.mxu3 %vm541_vm5, %v2221_v46  ;;  %v2189_v15 = vpop.f32.mrf.mxu1 }
 0x743   : > { %5217 = vmatpush.msk.msra.mxu2 %vm540_vm6, %v2216_v58  ;;  %5225 = vmatpush.msk.msra.mxu3 %vm541_vm5, %v2220_v60  ;;  %v2160_v14 = vpop.f32.mrf.mxu0 }
 0x744   : > { %5198 = vmatmul.msk.f32.gmra.mxu2 %vm815_vm4, %v5751_v0  ;;  %5206 = vmatmul.msk.f32.gmra.mxu3 %vm815_vm4, %v5751_v0 }
 0x745   : > { %5218 = vmatpush.msk.msra.mxu2 %vm540_vm6, %v2215_v5  ;;  %5226 = vmatpush.msk.msra.mxu3 %vm541_vm5, %v2219_v6 }
 0x746   : > { %v2207_v19 = vpop.permute.xlu1 %2206 }
 0x747   : > { %v2199_v50 = vpop.permute.xlu0 %2198 }
 0x748   : > { %v2214_v20 = vsel %vm540_vm6, %v2199_v50, %v2207_v19  ;;  %v2218_v57 = vsel %vm540_vm6, %v2207_v19, %v2199_v50 }
 0x749   : > { %5219 = vmatpush.msk.msra.mxu2 %vm540_vm6, %v2214_v20  ;;  %5227 = vmatpush.msk.msra.mxu3 %vm541_vm5, %v2218_v57  ;;  %v2192_v23 = vpop.f32.mrf.mxu1 }
 0x74b   : > { %v2163_v22 = vpop.f32.mrf.mxu0 }
 0x74c   : > { %5199 = vmatmul.msk.f32.gmra.mxu2 %vm815_vm4, %v5752_v42  ;;  %5207 = vmatmul.msk.f32.gmra.mxu3 %vm815_vm4, %v5752_v42 }
 0x751   : > { %v2195_v58 = vpop.f32.mrf.mxu1 }
 0x753   : > { %v2166_v46 = vpop.f32.mrf.mxu0 }
 0x754   : > { %5220 = vmatmul.msk.f32.vlgmr.msra.gmra.mxu2 %vm815_vm4, %v5753_v40  ;;  %5228 = vmatmul.msk.f32.vlgmr.msra.gmra.mxu3 %vm815_vm4, %v5753_v40 }
 0x75c   : > { %5221 = vmatmul.msk.f32.gmra.mxu2 %vm815_vm4, %v5754_v54  ;;  %5229 = vmatmul.msk.f32.gmra.mxu3 %vm815_vm4, %v5754_v54 }
 0x764   : > { %5222 = vmatmul.msk.f32.gmra.mxu2 %vm815_vm4, %v5755_v2  ;;  %5230 = vmatmul.msk.f32.gmra.mxu3 %vm815_vm4, %v5755_v2 }
 0x76c   : > { %5223 = vmatmul.msk.f32.gmra.mxu2 %vm815_vm4, %v5756_v51  ;;  %5231 = vmatmul.msk.f32.gmra.mxu3 %vm815_vm4, %v5756_v51 }
 0x7b7   : > { %v2099_v43 = vpop.f32.mrf.mxu2  ;;  %v2128_v7 = vpop.f32.mrf.mxu3 }
 0x7b8   : > { %v2187_v40 = vadd.f32 %v2186_v47, %v2128_v7  ;;  %v2158_v51 = vadd.f32 %v2157_v9, %v2099_v43 }
 0x7bf   : > { %v2102_v33 = vpop.f32.mrf.mxu2  ;;  %v2131_v13 = vpop.f32.mrf.mxu3 }
 0x7c0   : > { %v2161_v62 = vadd.f32 %v2160_v14, %v2102_v33  ;;  %v2190_v41 = vadd.f32 %v2189_v15, %v2131_v13 }
 0x7c7   : > { %v2105_v29 = vpop.f32.mrf.mxu2  ;;  %v2134_v48 = vpop.f32.mrf.mxu3 }
 0x7c8   : > { %v2164_v26 = vadd.f32 %v2163_v22, %v2105_v29  ;;  %v2193_v27 = vadd.f32 %v2192_v23, %v2134_v48 }
 0x7cf   : > { %v2108_v36 = vpop.f32.mrf.mxu2  ;;  %v2137_v56 = vpop.f32.mrf.mxu3 }
 0x7d0   : > { %v2167_v5 = vadd.f32 %v2166_v46, %v2108_v36  ;;  %v2196_v6 = vadd.f32 %v2195_v58, %v2137_v56 }
 0x7d7   : > { %v2247_v8 = vpop.f32.mrf.mxu2  ;;  %v2276_v16 = vpop.f32.mrf.mxu3 }
 0x7d8   : > { %v2289_v33 = vadd.f32 %v2276_v16, %v2187_v40  ;;  %v2288_v36 = vadd.f32 %v2247_v8, %v2158_v51 }
 0x7da   : > { %v2297_v56 = vadd.f32 %v2289_v33, %v6501_v24  ;;  %v2296_v14 = vadd.f32 %v2288_v36, %v6501_v24 }
 0x7dc   : > { %v2305_v15 = vmax.f32 %v2297_v56, 0.0 }
 0x7df   : > { %v2250_v4 = vpop.f32.mrf.mxu2  ;;  %v2279_v21 = vpop.f32.mrf.mxu3 }
 0x7e0   : > { %v2290_v11 = vadd.f32 %v2250_v4, %v2161_v62  ;;  %v2291_v60 = vadd.f32 %v2279_v21, %v2190_v41  ;;  %v2304_v62 = vmax.f32 %v2296_v14, 0.0 }
 0x7e2   : > { %v2298_v32 = vadd.f32 %v2290_v11, %v6490_v53  ;;  %v2299_v42 = vadd.f32 %v2291_v60, %v6490_v53 }
 0x7e4   : > { %v2306_v25 = vmax.f32 %v2298_v32, 0.0  ;;  %v2307_v29 = vmax.f32 %v2299_v42, 0.0 }
 0x7e6   : > { %2314 = vadd.xlane.f32.xlu0 %v2306_v25 }
 0x7e7   : > { %v2253_v28 = vpop.f32.mrf.mxu2  ;;  %v2282_v3 = vpop.f32.mrf.mxu3 }
 0x7e8   : > { %v2292_v35 = vadd.f32 %v2253_v28, %v2164_v26  ;;  %v2293_v10 = vadd.f32 %v2282_v3, %v2193_v27 }
 0x7ea   : > { %v2301_v45 = vadd.f32 %v2293_v10, %v6493_v63  ;;  %v2300_v39 = vadd.f32 %v2292_v35, %v6493_v63 }
 0x7ec   : > { %v2309_v17 = vmax.f32 %v2301_v45, 0.0  ;;  %v2308_v0 = vmax.f32 %v2300_v39, 0.0 }
 0x7ee   : > { %2404 = vadd.xlane.f32.xlu2 %v2309_v17  ;;  %2316 = vadd.xlane.f32.xlu1 %v2308_v0 }
 0x7ef   : > { %v2256_v50 = vpop.f32.mrf.mxu2  ;;  %v2285_v19 = vpop.f32.mrf.mxu3 }
 0x7f0   : > { %v2294_v20 = vadd.f32 %v2256_v50, %v2167_v5  ;;  %v2295_v57 = vadd.f32 %v2285_v19, %v2196_v6 }
 0x7f2   : > { %v2303_v54 = vadd.f32 %v2295_v57, %v6496_v1  ;;  %v2302_v2 = vadd.f32 %v2294_v20, %v6496_v1 }
 0x7f4   : > { %v2311_v13 = vmax.f32 %v2303_v54, 0.0  ;;  %v2310_v48 = vmax.f32 %v2302_v2, 0.0 }
 0x7f6   : > { %2406 = vadd.xlane.f32.xlu0 %v2311_v13  ;;  %2402 = vadd.xlane.f32.xlu1 %v2307_v29 }
 0x7f7   : > { %2318 = vadd.xlane.f32.xlu2 %v2310_v48 }
 0x7fe   : > { %2400 = vadd.xlane.f32.xlu0 %v2305_v15 }
 0x7ff   : > { %2312 = vadd.xlane.f32.xlu2 %v2304_v62 }
 0x859   : > { %v2315_v7 = vpop.xlane.xlu0 %2314 }
 0x85a   : > { %v2321_v47 = vmul.f32 %v2315_v7, %v6506_v37 }
 0x85c   : > { %v7123_v43 = vsub.f32 %v2306_v25, %v2321_v47 }
 0x85e   : > { %v2329_v9 = vmul.f32 %v7123_v43, %v7123_v43 }
 0x860   : > { %2334 = vadd.xlane.f32.xlu2 %v2329_v9 }
 0x861   : > { %v2405_v8 = vpop.xlane.xlu2 %2404  ;;  %v2317_v16 = vpop.xlane.xlu1 %2316 }
 0x862   : > { %v2410_v4 = vmul.f32 %v2405_v8, %v6506_v37  ;;  %v2322_v21 = vmul.f32 %v2317_v16, %v6506_v37 }
 0x864   : > { %v7129_v11 = vsub.f32 %v2309_v17, %v2410_v4  ;;  %v7131_v22 = vsub.f32 %v2308_v0, %v2322_v21 }
 0x866   : > { %v2418_v23 = vmul.f32 %v7129_v11, %v7129_v11  ;;  %v2330_v32 = vmul.f32 %v7131_v22, %v7131_v22 }
 0x868   : > { %2424 = vadd.xlane.f32.xlu1 %v2418_v23  ;;  %2336 = vadd.xlane.f32.xlu0 %v2330_v32 }
 0x869   : > { %v2407_v25 = vpop.xlane.xlu0 %2406  ;;  %v2403_v26 = vpop.xlane.xlu1 %2402 }
 0x86a   : > { %v2411_v27 = vmul.f32 %v2407_v25, %v6506_v37  ;;  %v2409_v28 = vmul.f32 %v2403_v26, %v6506_v37  ;;  %v2319_v3 = vpop.xlane.xlu2 %2318 }
 0x86b   : > { %v2323_v35 = vmul.f32 %v2319_v3, %v6506_v37 }
 0x86c   : > { %v7140_v10 = vsub.f32 %v2307_v29, %v2409_v28  ;;  %v7142_v41 = vsub.f32 %v2311_v13, %v2411_v27 }
 0x86d   : > { %v7144_v45 = vsub.f32 %v2310_v48, %v2323_v35 }
 0x86e   : > { %v2417_v39 = vmul.f32 %v7140_v10, %v7140_v10  ;;  %v2419_v46 = vmul.f32 %v7142_v41, %v7142_v41 }
 0x86f   : > { %v2331_v58 = vmul.f32 %v7144_v45, %v7144_v45 }
 0x870   : > { %2422 = vadd.xlane.f32.xlu0 %v2417_v39  ;;  %2426 = vadd.xlane.f32.xlu2 %v2419_v46 }
 0x871   : > { %2338 = vadd.xlane.f32.xlu1 %v2331_v58  ;;  %v2401_v60 = vpop.xlane.xlu0 %2400 }
 0x872   : > { %v2408_v17 = vmul.f32 %v2401_v60, %v6506_v37  ;;  %v2313_v0 = vpop.xlane.xlu2 %2312 }
 0x873   : > { %v2320_v5 = vmul.f32 %v2313_v0, %v6506_v37 }
 0x874   : > { %v7154_v6 = vsub.f32 %v2305_v15, %v2408_v17 }
 0x875   : > { %v7156_v50 = vsub.f32 %v2304_v62, %v2320_v5 }
 0x876   : > { %v2416_v19 = vmul.f32 %v7154_v6, %v7154_v6 }
 0x877   : > { %v2328_v20 = vmul.f32 %v7156_v50, %v7156_v50 }
 0x878   : > { %2420 = vadd.xlane.f32.xlu2 %v2416_v19 }
 0x879   : > { %2332 = vadd.xlane.f32.xlu1 %v2328_v20 }
 0x8d3   : > { %v2335_v57 = vpop.xlane.xlu2 %2334 }
 0x8d4   : > { %v2341_v42 = vmul.f32 %v2335_v57, %v6506_v37 }
 0x8d6   : > { %v2345_v40 = vadd.f32 1e-05, %v2341_v42 }
 0x8d8   : > { %5695 = vrsqrt.f32 %v2345_v40  ;;  %vm2364_vm8 = vweird.f32 %v2345_v40 }
 0x8db   : > { %v2337_v54 = vpop.xlane.xlu0 %2336  ;;  %v2425_v2 = vpop.xlane.xlu1 %2424 }
 0x8dc   : > { %v2342_v51 = vmul.f32 %v2337_v54, %v6506_v37  ;;  %v2430_v33 = vmul.f32 %v2425_v2, %v6506_v37 }
 0x8de   : > { %v5696_v13 = vpop.eup %5695  ;;  %v2346_v29 = vadd.f32 1e-05, %v2342_v51  ;;  %v2434_v48 = vadd.f32 1e-05, %v2430_v33 }
 0x8df   : > { %v2359_v36 = vmul.f32 %v5696_v13, %v2345_v40  ;;  %vm2365_vm15 = vweird.f32 %v5696_v13 }
 0x8e0   : > { %5697 = vrsqrt.f32 %v2346_v29  ;;  %vm2366_vm9 = vmor %vm2364_vm8, %vm2365_vm15  ;;  %vm2374_vm13 = vweird.f32 %v2346_v29  ;;  %vm2462_vm11 = vweird.f32 %v2434_v48 }
 0x8e1   : > { %v2360_v56 = vmul.f32 %v5696_v13, %v2359_v36  ;;  %5699 = vrsqrt.f32 %v2434_v48 }
 0x8e3   : > { %v2361_v14 = vmul.f32 0.5, %v2360_v56  ;;  %v2423_v15 = vpop.xlane.xlu0 %2422  ;;  %v2427_v62 = vpop.xlane.xlu2 %2426 }
 0x8e4   : > { %v2429_v7 = vmul.f32 %v2423_v15, %v6506_v37  ;;  %v2339_v47 = vpop.xlane.xlu1 %2338  ;;  %v2431_v9 = vmul.f32 %v2427_v62, %v6506_v37 }
 0x8e5   : > { %v2362_v8 = vsub.f32 1.5, %v2361_v14  ;;  %v2343_v16 = vmul.f32 %v2339_v47, %v6506_v37 }
 0x8e6   : > { %v5698_v4 = vpop.eup %5697  ;;  %v7168_v21 = vadd.f32 1e-05, %v2429_v7  ;;  %v7170_v23 = vadd.f32 1e-05, %v2431_v9 }
 0x8e7   : > { %v5700_v32 = vpop.eup %5699  ;;  %v2363_v25 = vmul.f32 %v5696_v13, %v2362_v8  ;;  %v2369_v26 = vmul.f32 %v5698_v4, %v2346_v29  ;;  %v7172_v27 = vadd.f32 1e-05, %v2343_v16  ;;  %vm2375_vm0 = vweird.f32 %v5698_v4 }
 0x8e8   : > { %v2457_v28 = vmul.f32 %v5700_v32, %v2434_v48  ;;  %5701 = vrsqrt.f32 %v7168_v21  ;;  %vm2463_vm10 = vweird.f32 %v5700_v32  ;;  %vm2376_vm12 = vmor %vm2374_vm13, %vm2375_vm0  ;;  %vm2452_vm15 = vweird.f32 %v7168_v21 }
 0x8e9   : > { %v2370_v3 = vmul.f32 %v5698_v4, %v2369_v26  ;;  %5703 = vrsqrt.f32 %v7172_v27  ;;  %v2367_v39 = vsel %vm2366_vm9, %v5696_v13, %v2363_v25  ;;  %vm2464_vm7 = vmor %vm2462_vm11, %vm2463_vm10  ;;  %vm2384_vm13 = vweird.f32 %v7172_v27 }
 0x8ea   : > { %v2458_v35 = vmul.f32 %v5700_v32, %v2457_v28  ;;  %5705 = vrsqrt.f32 %v7170_v23  ;;  %v2389_v60 = vmul.f32 %v2367_v39, %v7123_v43  ;;  %vm2472_vm11 = vweird.f32 %v7170_v23 }
 0x8eb   : > { %v2371_v46 = vmul.f32 0.5, %v2370_v3  ;;  %v2421_v58 = vpop.xlane.xlu2 %2420 }
 0x8ec   : > { %v2459_v17 = vmul.f32 0.5, %v2458_v35  ;;  %v2333_v0 = vpop.xlane.xlu1 %2332  ;;  %v2428_v5 = vmul.f32 %v2421_v58, %v6506_v37  ;;  %v2393_v54 = vmul.f32 %v6956_v34, %v2389_v60 }
 0x8ed   : > { %v2372_v19 = vsub.f32 1.5, %v2371_v46  ;;  %v2340_v20 = vmul.f32 %v2333_v0, %v6506_v37 }
 0x8ee   : > { %v7180_v57 = vpop.eup %5701  ;;  %v2460_v42 = vsub.f32 1.5, %v2459_v17  ;;  %v7182_v40 = vadd.f32 1e-05, %v2428_v5  ;;  %v7195_v7 = vadd.f32 %v6967_v55, %v2393_v54 }
 0x8ef   : > { %v5704_v2 = vpop.eup %5703  ;;  %v2373_v51 = vmul.f32 %v5698_v4, %v2372_v19  ;;  %v2447_v43 = vmul.f32 %v7180_v57, %v7168_v21  ;;  %v7187_v33 = vadd.f32 1e-05, %v2340_v20  ;;  %vm2453_vm8 = vweird.f32 %v7180_v57 }
 0x8f0   : > { %v5706_v13 = vpop.eup %5705  ;;  %v2461_v36 = vmul.f32 %v5700_v32, %v2460_v42  ;;  %v2379_v56 = vmul.f32 %v5704_v2, %v7172_v27  ;;  %5707 = vrsqrt.f32 %v7182_v40  ;;  %2490 = vrot.lane.b32.xlu1 %v7195_v7, %s6061_s19  ;;  %vm2385_vm9 = vweird.f32 %v5704_v2  ;;  %vm7207_vm10 = vmor %vm2452_vm15, %vm2453_vm8 }
 0x8f1   : > { %v2448_v14 = vmul.f32 %v7180_v57, %v2447_v43  ;;  %v2467_v15 = vmul.f32 %v5706_v13, %v7170_v23  ;;  %5709 = vrsqrt.f32 %v7187_v33  ;;  %v2377_v8 = vsel %vm2376_vm12, %v5698_v4, %v2373_v51  ;;  %vm2386_vm12 = vmor %vm2384_vm13, %vm2385_vm9 }
 0x8f2   : > { %v2380_v62 = vmul.f32 %v5704_v2, %v2379_v56  ;;  %v2465_v9 = vsel %vm2464_vm7, %v5700_v32, %v2461_v36  ;;  %v2390_v25 = vmul.f32 %v2377_v8, %v7131_v22  ;;  %vm2473_vm0 = vweird.f32 %v5706_v13 }
 0x8f3   : > { %v2449_v47 = vmul.f32 0.5, %v2448_v14  ;;  %v2468_v29 = vmul.f32 %v5706_v13, %v2467_v15  ;;  %v2478_v48 = vmul.f32 %v2465_v9, %v7129_v11  ;;  %vm2474_vm7 = vmor %vm2472_vm11, %vm2473_vm0  ;;  %vm2442_vm9 = vweird.f32 %v7182_v40 }
 0x8f4   : > { %v2381_v16 = vmul.f32 0.5, %v2380_v62  ;;  %v2394_v4 = vmul.f32 %v6956_v34, %v2390_v25  ;;  %vm2354_vm0 = vweird.f32 %v7187_v33  ;;  %vm8462_vm11 = vcmp.ge.s32.totalorder %v6366_v52, 2 }
 0x8f5   : > { %v2450_v26 = vsub.f32 1.5, %v2449_v47  ;;  %v2469_v28 = vmul.f32 0.5, %v2468_v29  ;;  %v2482_v32 = vmul.f32 %v6956_v34, %v2478_v48 }
 0x8f6   : > { %v5708_v3 = vpop.eup %5707  ;;  %v2382_v35 = vsub.f32 1.5, %v2381_v16  ;;  %v2398_v19 = vadd.f32 %v6967_v55, %v2394_v4 }
 0x8f7   : > { %v5710_v39 = vpop.eup %5709  ;;  %v2451_v46 = vmul.f32 %v7180_v57, %v2450_v26  ;;  %v2470_v58 = vsub.f32 1.5, %v2469_v28  ;;  %v2437_v11 = vmul.f32 %v5708_v3, %v7182_v40  ;;  %v2486_v17 = vadd.f32 %v6967_v55, %v2482_v32 }
 0x8f8   : > { %v2383_v21 = vmul.f32 %v5704_v2, %v2382_v35  ;;  %v2349_v60 = vmul.f32 %v5710_v39, %v7187_v33  ;;  %2492 = vrot.lane.b32.xlu2 %v2398_v19, %s6061_s19  ;;  %vm2443_vm15 = vweird.f32 %v5708_v3  ;;  %vm2355_vm8 = vweird.f32 %v5710_v39 }
 0x8f9   : > { %v2471_v0 = vmul.f32 %v5706_v13, %v2470_v58  ;;  %v2438_v5 = vmul.f32 %v5708_v3, %v2437_v11  ;;  %2500 = vrot.lane.b32.xlu0 %v2486_v17, %s6061_s19  ;;  %v2455_v27 = vsel %vm7207_vm10, %v7180_v57, %v2451_v46  ;;  %vm2444_vm10 = vmor %vm2442_vm9, %vm2443_vm15 }
 0x8fa   : > { %v2350_v20 = vmul.f32 %v5710_v39, %v2349_v60  ;;  %v2387_v42 = vsel %vm2386_vm12, %v5704_v2, %v2383_v21  ;;  %v2477_v15 = vmul.f32 %v2455_v27, %v7140_v10  ;;  %vm2356_vm13 = vmor %vm2354_vm0, %vm2355_vm8  ;;  %v5762_v27 = vld [vmem:[#allocation7 + $0x8] sm:$0xff]  ;;  %vm8461_vm12 = vcmp.ge.s32.totalorder %v6363_v49, 2 }
 0x8fb   : > { %v2439_v54 = vmul.f32 0.5, %v2438_v5  ;;  %v2391_v51 = vmul.f32 %v2387_v42, %v7144_v45  ;;  %v2475_v43 = vsel %vm2474_vm7, %v5706_v13, %v2471_v0  ;;  %vm8463_vm7 = vmmov %vm8461_vm12 }
 0x8fc   : > { %v2351_v36 = vmul.f32 0.5, %v2350_v20  ;;  %v2479_v23 = vmul.f32 %v2475_v43, %v7142_v41  ;;  %v2481_v13 = vmul.f32 %v6956_v34, %v2477_v15  ;;  %vm8464_vm15 = vmmov %vm8462_vm11 }
 0x8fd   : > { %v2440_v56 = vsub.f32 1.5, %v2439_v54  ;;  %v2395_v14 = vmul.f32 %v6956_v34, %v2391_v51  ;;  %vm8465_vm8 = vmmov %vm8463_vm7 }
 0x8fe   : > { %v2352_v2 = vsub.f32 1.5, %v2351_v36  ;;  %v2483_v62 = vmul.f32 %v6956_v34, %v2479_v23  ;;  %v2485_v8 = vadd.f32 %v6967_v55, %v2481_v13  ;;  %v5764_v13 = vld [vmem:[#allocation7 + $0x18] sm:$0xff]  ;;  %vm8466_vm9 = vmmov %vm8462_vm11 }
 0x8ff   : > { %v2441_v57 = vmul.f32 %v5708_v3, %v2440_v56  ;;  %v2399_v47 = vadd.f32 %v6967_v55, %v2395_v14  ;;  %vm8467_vm0 = vmmov %vm8463_vm7 }
 0x900   : > { %v2353_v45 = vmul.f32 %v5710_v39, %v2352_v2  ;;  %v2487_v41 = vadd.f32 %v6967_v55, %v2483_v62  ;;  %v5763_v62 = vld [vmem:[#allocation7 + $0x10] sm:$0xff] }
 0x901   : > { %2590 = vmatpush.msrb.mxu2 %v2399_v47  ;;  %v2445_v10 = vsel %vm2444_vm10, %v5708_v3, %v2441_v57  ;;  %2494 = vrot.lane.b32.xlu0 %v2399_v47, %s6061_s19  ;;  %vm8468_vm10 = vmmov %vm8466_vm9 }
 0x902   : > { %2502 = vrot.lane.b32.xlu1 %v2487_v41, %s6061_s19  ;;  %v2357_v29 = vsel %vm2356_vm13, %v5710_v39, %v2353_v45  ;;  %v2476_v40 = vmul.f32 %v2445_v10, %v7154_v6  ;;  %2619 = vmatpush.msrb.mxu3 %v2487_v41  ;;  %v5757_v6 = vld [vmem:[#allocation7 + $0x20] sm:$0xff]  ;;  %vm8469_vm13 = vcmp.lt.s32.totalorder %v6363_v49, 126 }
 0x903   : > { %2591 = vmatpush.msrb.mxu2 %v2398_v19  ;;  %v2388_v9 = vmul.f32 %v2357_v29, %v7156_v50  ;;  %v5760_v50 = vld [vmem:[#allocation7 + $0x38] sm:$0xff]  ;;  %v5765_v10 = vld [vmem:[#allocation7 + $0x40] sm:$0xff]  ;;  %v5766_v29 = vld [vmem:[#allocation7 + $0x48] sm:$0xff] }
 0x904   : > { %v2480_v33 = vmul.f32 %v6956_v34, %v2476_v40  ;;  %2620 = vmatpush.msrb.mxu3 %v2486_v17  ;;  %v5767_v40 = vld [vmem:[#allocation7 + $0x50] sm:$0xff] }
 0x905   : > { %2592 = vmatpush.msrb.mxu2 %v7195_v7  ;;  %v2392_v16 = vmul.f32 %v6956_v34, %v2388_v9  ;;  %v5758_v34 = vld [vmem:[#allocation7 + $0x28] sm:$0xff]  ;;  %v5768_v9 = vld [vmem:[#allocation7 + $0x58] sm:$0xff] }
 0x906   : > { %v2484_v48 = vadd.f32 %v6967_v55, %v2480_v33  ;;  %2621 = vmatpush.msrb.mxu3 %v2485_v8 }
 0x907   : > { %v2396_v25 = vadd.f32 %v6967_v55, %v2392_v16  ;;  %v5759_v55 = vld [vmem:[#allocation7 + $0x30] sm:$0xff] }
 0x908   : > { %2622 = vmatpush.msrb.mxu3 %v2484_v48 }
 0x909   : > { %2488 = vrot.lane.b32.xlu2 %v2396_v25, %s6061_s19  ;;  %2593 = vmatpush.msrb.mxu2 %v2396_v25 }
 0x90a   : > { %2498 = vrot.lane.b32.xlu0 %v2485_v8, %s6061_s19  ;;  %2496 = vrot.lane.b32.xlu1 %v2484_v48, %s6061_s19 }
 0x90b   : > { %5248 = vmatmul.msk.f32.vlgmr.msrb.gmra.mxu2 %vm815_vm4, %v5757_v6  ;;  %5252 = vmatmul.msk.f32.vlgmr.msrb.gmra.mxu3 %vm815_vm4, %v5757_v6 }
 0x911   : > { %2638 = vrot.lane.b32.xlu2 %v7195_v7, %s6062_s17 }
 0x912   : > { %2648 = vrot.lane.b32.xlu0 %v2486_v17, %s6062_s17  ;;  %2640 = vrot.lane.b32.xlu1 %v2398_v19, %s6062_s17  ;;  %v5761_v19 = vld [vmem:[#allocation7] sm:$0xff] }
 0x913   : > { %5249 = vmatmul.msk.f32.gmra.mxu2 %vm815_vm4, %v5758_v34  ;;  %5253 = vmatmul.msk.f32.gmra.mxu3 %vm815_vm4, %v5758_v34 }
 0x919   : > { %2650 = vrot.lane.b32.xlu2 %v2487_v41, %s6062_s17 }
 0x91a   : > { %2642 = vrot.lane.b32.xlu0 %v2399_v47, %s6062_s17  ;;  %2646 = vrot.lane.b32.xlu1 %v2485_v8, %s6062_s17 }
 0x91b   : > { %5250 = vmatmul.msk.f32.gmra.mxu2 %vm815_vm4, %v5759_v55  ;;  %5254 = vmatmul.msk.f32.gmra.mxu3 %vm815_vm4, %v5759_v55 }
 0x921   : > { %2644 = vrot.lane.b32.xlu2 %v2484_v48, %s6062_s17 }
 0x922   : > { %2636 = vrot.lane.b32.xlu0 %v2396_v25, %s6062_s17 }
 0x923   : > { %5251 = vmatmul.msk.f32.gmra.mxu2 %vm815_vm4, %v5760_v50  ;;  %5255 = vmatmul.msk.f32.gmra.mxu3 %vm815_vm4, %v5760_v50 }
 0x952   : > { %v2493_v28 = vpop.permute.xlu2 %2492 }
 0x962   : > { %v2491_v7 = vpop.permute.xlu1 %2490 }
 0x963   : > { %v2489_v39 = vpop.permute.xlu2 %2488 }
 0x96b   : > { %v2501_v26 = vpop.permute.xlu0 %2500  ;;  %v2639_v5 = vpop.permute.xlu2 %2638 }
 0x96c   : > { %v2510_v46 = vsel %vm794_vm1, %v2501_v26, %v2493_v28  ;;  %v2506_v58 = vsel %vm794_vm1, %v2493_v28, %v2501_v26 }
 0x973   : > { %v2495_v3 = vpop.permute.xlu0 %2494  ;;  %v2651_v54 = vpop.permute.xlu2 %2650 }
 0x974   : > { %v2503_v35 = vpop.permute.xlu1 %2502 }
 0x975   : > { %v2507_v32 = vsel %vm794_vm1, %v2495_v3, %v2503_v35  ;;  %v2511_v4 = vsel %vm794_vm1, %v2503_v35, %v2495_v3 }
 0x976   : > { %5232 = vmatpush.msk.msrb.mxu0 %vm538_vm2, %v2511_v4  ;;  %5240 = vmatpush.msk.msrb.mxu1 %vm539_vm3, %v2507_v32 }
 0x978   : > { %5233 = vmatpush.msk.msrb.mxu0 %vm538_vm2, %v2510_v46  ;;  %5241 = vmatpush.msk.msrb.mxu1 %vm539_vm3, %v2506_v58 }
 0x97b   : > { %v2645_v57 = vpop.permute.xlu2 %2644 }
 0x97c   : > { %v2499_v11 = vpop.permute.xlu0 %2498  ;;  %v2497_v22 = vpop.permute.xlu1 %2496 }
 0x97d   : > { %v2509_v21 = vsel %vm794_vm1, %v2499_v11, %v2491_v7  ;;  %v2505_v60 = vsel %vm794_vm1, %v2491_v7, %v2499_v11  ;;  %v2508_v17 = vsel %vm794_vm1, %v2497_v22, %v2489_v39  ;;  %v2504_v0 = vsel %vm794_vm1, %v2489_v39, %v2497_v22 }
 0x97e   : > { %5234 = vmatpush.msk.msrb.mxu0 %vm538_vm2, %v2509_v21  ;;  %5242 = vmatpush.msk.msrb.mxu1 %vm539_vm3, %v2505_v60 }
 0x980   : > { %5235 = vmatpush.msk.msrb.mxu0 %vm538_vm2, %v2508_v17  ;;  %5243 = vmatpush.msk.msrb.mxu1 %vm539_vm3, %v2504_v0 }
 0x981   : > { %5236 = vmatmul.msk.f32.vlgmr.msrb.gmra.mxu0 %vm815_vm4, %v5761_v19  ;;  %5244 = vmatmul.msk.f32.vlgmr.msrb.gmra.mxu1 %vm815_vm4, %v5761_v19 }
 0x984   : > { %v2649_v20 = vpop.permute.xlu0 %2648  ;;  %v2641_v42 = vpop.permute.xlu1 %2640 }
 0x985   : > { %v2654_v56 = vsel %vm540_vm6, %v2641_v42, %v2649_v20  ;;  %v2658_v14 = vsel %vm540_vm6, %v2649_v20, %v2641_v42 }
 0x989   : > { %5237 = vmatmul.msk.f32.gmra.mxu0 %vm815_vm4, %v5762_v27  ;;  %5245 = vmatmul.msk.f32.gmra.mxu1 %vm815_vm4, %v5762_v27 }
 0x98c   : > { %v2643_v51 = vpop.permute.xlu0 %2642  ;;  %v2647_v23 = vpop.permute.xlu1 %2646 }
 0x98d   : > { %v2655_v43 = vsel %vm540_vm6, %v2643_v51, %v2651_v54  ;;  %v2659_v36 = vsel %vm540_vm6, %v2651_v54, %v2643_v51  ;;  %v2653_v15 = vsel %vm540_vm6, %v2639_v5, %v2647_v23  ;;  %v2657_v2 = vsel %vm540_vm6, %v2647_v23, %v2639_v5 }
 0x98e   : > { %5256 = vmatpush.msk.msra.mxu0 %vm540_vm6, %v2655_v43  ;;  %5264 = vmatpush.msk.msra.mxu1 %vm541_vm5, %v2659_v36  ;;  %v2595_v34 = vpop.f32.mrf.mxu2  ;;  %v2624_v55 = vpop.f32.mrf.mxu3 }
 0x990   : > { %5257 = vmatpush.msk.msra.mxu0 %vm540_vm6, %v2654_v56  ;;  %5265 = vmatpush.msk.msra.mxu1 %vm541_vm5, %v2658_v14 }
 0x991   : > { %5238 = vmatmul.msk.f32.gmra.mxu0 %vm815_vm4, %v5763_v62  ;;  %5246 = vmatmul.msk.f32.gmra.mxu1 %vm815_vm4, %v5763_v62 }
 0x992   : > { %5258 = vmatpush.msk.msra.mxu0 %vm540_vm6, %v2653_v15  ;;  %5266 = vmatpush.msk.msra.mxu1 %vm541_vm5, %v2657_v2 }
 0x994   : > { %v2637_v47 = vpop.permute.xlu0 %2636 }
 0x995   : > { %v2652_v45 = vsel %vm540_vm6, %v2637_v47, %v2645_v57  ;;  %v2656_v41 = vsel %vm540_vm6, %v2645_v57, %v2637_v47 }
 0x996   : > { %5259 = vmatpush.msk.msra.mxu0 %vm540_vm6, %v2652_v45  ;;  %5267 = vmatpush.msk.msra.mxu1 %vm541_vm5, %v2656_v41  ;;  %v2598_v26 = vpop.f32.mrf.mxu2  ;;  %v2627_v28 = vpop.f32.mrf.mxu3 }
 0x999   : > { %5239 = vmatmul.msk.f32.gmra.mxu0 %vm815_vm4, %v5764_v13  ;;  %5247 = vmatmul.msk.f32.gmra.mxu1 %vm815_vm4, %v5764_v13 }
 0x99e   : > { %v2601_v58 = vpop.f32.mrf.mxu2  ;;  %v2630_v11 = vpop.f32.mrf.mxu3 }
 0x9a1   : > { %5260 = vmatmul.msk.f32.vlgmr.msra.gmra.mxu0 %vm815_vm4, %v5765_v10  ;;  %5268 = vmatmul.msk.f32.vlgmr.msra.gmra.mxu1 %vm815_vm4, %v5765_v10 }
 0x9a6   : > { %v2604_v27 = vpop.f32.mrf.mxu2  ;;  %v2633_v54 = vpop.f32.mrf.mxu3 }
 0x9a9   : > { %5261 = vmatmul.msk.f32.gmra.mxu0 %vm815_vm4, %v5766_v29  ;;  %5269 = vmatmul.msk.f32.gmra.mxu1 %vm815_vm4, %v5766_v29 }
 0x9b1   : > { %5262 = vmatmul.msk.f32.gmra.mxu0 %vm815_vm4, %v5767_v40  ;;  %5270 = vmatmul.msk.f32.gmra.mxu1 %vm815_vm4, %v5767_v40 }
 0x9b9   : > { %5263 = vmatmul.msk.f32.gmra.mxu0 %vm815_vm4, %v5768_v9  ;;  %5271 = vmatmul.msk.f32.gmra.mxu1 %vm815_vm4, %v5768_v9  ;;  %v5769_v9 = vld [vmem:[#allocation8 + $0x20] sm:$0xff] }
 0x9fe   : > { %v2537_v33 = vpop.f32.mrf.mxu0  ;;  %v2566_v8 = vpop.f32.mrf.mxu1 }
 0x9ff   : > { %v2625_v62 = vadd.f32 %v2624_v55, %v2566_v8  ;;  %v2596_v41 = vadd.f32 %v2595_v34, %v2537_v33  ;;  %v5770_v33 = vld [vmem:[#allocation8 + $0x28] sm:$0xff]  ;;  %v5771_v8 = vld [vmem:[#allocation8 + $0x30] sm:$0xff] }
 0xa06   : > { %v2540_v16 = vpop.f32.mrf.mxu0  ;;  %v2569_v48 = vpop.f32.mrf.mxu1 }
 0xa07   : > { %v2599_v32 = vadd.f32 %v2598_v26, %v2540_v16  ;;  %v2628_v51 = vadd.f32 %v2627_v28, %v2569_v48  ;;  %v5772_v16 = vld [vmem:[#allocation8 + $0x38] sm:$0xff] }
 0xa0e   : > { %v2543_v25 = vpop.f32.mrf.mxu0  ;;  %v2572_v6 = vpop.f32.mrf.mxu1 }
 0xa0f   : > { %v2602_v21 = vadd.f32 %v2601_v58, %v2543_v25  ;;  %v2631_v60 = vadd.f32 %v2630_v11, %v2572_v6  ;;  %v5773_v11 = vld [vmem:[#allocation8] sm:$0xff] }
 0xa16   : > { %v2546_v50 = vpop.f32.mrf.mxu0  ;;  %v2575_v7 = vpop.f32.mrf.mxu1 }
 0xa17   : > { %v2605_v43 = vadd.f32 %v2604_v27, %v2546_v50  ;;  %v2634_v36 = vadd.f32 %v2633_v54, %v2575_v7 }
 0xa1e   : > { %v2685_v3 = vpop.f32.mrf.mxu0  ;;  %v2714_v35 = vpop.f32.mrf.mxu1 }
 0xa1f   : > { %v2727_v13 = vadd.f32 %v2714_v35, %v2625_v62  ;;  %v2726_v10 = vadd.f32 %v2685_v3, %v2596_v41  ;;  %v5777_v62 = vld [vmem:[#allocation8 + $0x40] sm:$0xff] }
 0xa21   : > { %v2735_v29 = vadd.f32 %v2727_v13, %v6760_v59  ;;  %v2734_v40 = vadd.f32 %v2726_v10, %v6760_v59 }
 0xa26   : > { %v2688_v4 = vpop.f32.mrf.mxu0  ;;  %v2717_v39 = vpop.f32.mrf.mxu1 }
 0xa27   : > { %v2728_v46 = vadd.f32 %v2688_v4, %v2599_v32  ;;  %v2729_v23 = vadd.f32 %v2717_v39, %v2628_v51  ;;  %v5775_v51 = vld [vmem:[#allocation8 + $0x10] sm:$0xff] }
 0xa29   : > { %v2736_v22 = vadd.f32 %v2728_v46, %v6742_v18  ;;  %v2737_v45 = vadd.f32 %v2729_v23, %v6742_v18 }
 0xa2b   : > { %2744 = vrot.lane.b32.xlu0 %v2736_v22, %s6064_s25 }
 0xa2e   : > { %v2691_v17 = vpop.f32.mrf.mxu0  ;;  %v2720_v0 = vpop.f32.mrf.mxu1 }
 0xa2f   : > { %v2730_v5 = vadd.f32 %v2691_v17, %v2602_v21  ;;  %v2731_v19 = vadd.f32 %v2720_v0, %v2631_v60  ;;  %v5774_v17 = vld [vmem:[#allocation8 + $0x8] sm:$0xff] }
 0xa31   : > { %v2738_v20 = vadd.f32 %v2730_v5, %v6746_v30  ;;  %v2739_v42 = vadd.f32 %v2731_v19, %v6746_v30 }
 0xa33   : > { %2754 = vrot.lane.b32.xlu1 %v2739_v42, %s6064_s25  ;;  %2746 = vrot.lane.b32.xlu2 %v2738_v20, %s6064_s25 }
 0xa36   : > { %v2694_v56 = vpop.f32.mrf.mxu0  ;;  %v2723_v14 = vpop.f32.mrf.mxu1 }
 0xa37   : > { %v2732_v15 = vadd.f32 %v2694_v56, %v2605_v43  ;;  %v2733_v2 = vadd.f32 %v2723_v14, %v2634_v36 }
 0xa39   : > { %v2740_v57 = vadd.f32 %v2732_v15, %v6752_v38  ;;  %v2741_v47 = vadd.f32 %v2733_v2, %v6752_v38  ;;  %v5776_v2 = vld [vmem:[#allocation8 + $0x18] sm:$0xff] }
 0xa3b   : > { %2873 = vmatpush.msrb.mxu1 %v2741_v47  ;;  %2756 = vrot.lane.b32.xlu0 %v2741_v47, %s6064_s25 }
 0xa3c   : > { %2752 = vrot.lane.b32.xlu2 %v2737_v45, %s6064_s25  ;;  %2748 = vrot.lane.b32.xlu1 %v2740_v57, %s6064_s25 }
 0xa3d   : > { %2844 = vmatpush.msrb.mxu0 %v2740_v57  ;;  %2874 = vmatpush.msrb.mxu1 %v2739_v42 }
 0xa3f   : > { %2845 = vmatpush.msrb.mxu0 %v2738_v20  ;;  %2875 = vmatpush.msrb.mxu1 %v2737_v45 }
 0xa41   : > { %2846 = vmatpush.msrb.mxu0 %v2736_v22  ;;  %2876 = vmatpush.msrb.mxu1 %v2735_v29 }
 0xa42   : > { %5292 = vmatmul.msk.f32.vlgmr.msrb.gmra.mxu1 %vm815_vm4, %v5769_v9 }
 0xa43   : > { %2847 = vmatpush.msrb.mxu0 %v2734_v40  ;;  %2750 = vrot.lane.b32.xlu0 %v2735_v29, %s6064_s25 }
 0xa44   : > { %2902 = vrot.lane.b32.xlu2 %v2739_v42, %s6065_s27  ;;  %2742 = vrot.lane.b32.xlu1 %v2734_v40, %s6064_s25 }
 0xa45   : > { %5288 = vmatmul.msk.f32.vlgmr.msrb.gmra.mxu0 %vm815_vm4, %v5769_v9 }
 0xa4a   : > { %5293 = vmatmul.msk.f32.gmra.mxu1 %vm815_vm4, %v5770_v33 }
 0xa4b   : > { %2894 = vrot.lane.b32.xlu0 %v2738_v20, %s6065_s27 }
 0xa4c   : > { %2896 = vrot.lane.b32.xlu2 %v2740_v57, %s6065_s27  ;;  %2892 = vrot.lane.b32.xlu1 %v2736_v22, %s6065_s27  ;;  %v5778_v57 = vld [vmem:[#allocation8 + $0x48] sm:$0xff] }
 0xa4d   : > { %5289 = vmatmul.msk.f32.gmra.mxu0 %vm815_vm4, %v5770_v33 }
 0xa52   : > { %5294 = vmatmul.msk.f32.gmra.mxu1 %vm815_vm4, %v5771_v8 }
 0xa53   : > { %2900 = vrot.lane.b32.xlu0 %v2737_v45, %s6065_s27  ;;  %v5780_v45 = vld [vmem:[#allocation8 + $0x58] sm:$0xff] }
 0xa54   : > { %2890 = vrot.lane.b32.xlu2 %v2734_v40, %s6065_s27  ;;  %2904 = vrot.lane.b32.xlu1 %v2741_v47, %s6065_s27  ;;  %v5779_v47 = vld [vmem:[#allocation8 + $0x50] sm:$0xff] }
 0xa55   : > { %5290 = vmatmul.msk.f32.gmra.mxu0 %vm815_vm4, %v5771_v8 }
 0xa5a   : > { %5295 = vmatmul.msk.f32.gmra.mxu1 %vm815_vm4, %v5772_v16 }
 0xa5c   : > { %2898 = vrot.lane.b32.xlu1 %v2735_v29, %s6065_s27 }
 0xa5d   : > { %5291 = vmatmul.msk.f32.gmra.mxu0 %vm815_vm4, %v5772_v16 }
 0xa8d   : > { %v2747_v6 = vpop.permute.xlu2 %2746 }
 0xa96   : > { %v2753_v26 = vpop.permute.xlu2 %2752 }
 0xa9d   : > { %v2745_v48 = vpop.permute.xlu0 %2744 }
 0xa9e   : > { %v2759_v35 = vsel %vm1582_vm14, %v2745_v48, %v2753_v26  ;;  %v2763_v32 = vsel %vm1582_vm14, %v2753_v26, %v2745_v48  ;;  %v2903_v22 = vpop.permute.xlu2 %2902 }
 0xaa5   : > { %v2755_v25 = vpop.permute.xlu1 %2754 }
 0xaa6   : > { %v2760_v28 = vsel %vm1582_vm14, %v2747_v6, %v2755_v25  ;;  %v2764_v3 = vsel %vm1582_vm14, %v2755_v25, %v2747_v6  ;;  %v2897_v0 = vpop.permute.xlu2 %2896 }
 0xaad   : > { %v2757_v34 = vpop.permute.xlu0 %2756 }
 0xaae   : > { %v2749_v55 = vpop.permute.xlu1 %2748  ;;  %v2891_v23 = vpop.permute.xlu2 %2890 }
 0xaaf   : > { %v2761_v50 = vsel %vm1582_vm14, %v2749_v55, %v2757_v34  ;;  %v2765_v7 = vsel %vm1582_vm14, %v2757_v34, %v2749_v55 }
 0xab0   : > { %5272 = vmatpush.msk.msra.mxu2 %vm8461_vm12, %v2765_v7  ;;  %5280 = vmatpush.msk.msra.mxu3 %vm8462_vm11, %v2761_v50  ;;  %vm8470_vm12 = vmmov %vm8469_vm13 }
 0xab1   : > { %vm8471_vm11 = vmmov %vm8470_vm12 }
 0xab2   : > { %5273 = vmatpush.msk.msra.mxu2 %vm8463_vm7, %v2764_v3  ;;  %5281 = vmatpush.msk.msra.mxu3 %vm8464_vm15, %v2760_v28  ;;  %vm8472_vm7 = vcmp.lt.s32.totalorder %v6366_v52, 126  ;;  %vm8473_vm15 = vmmov %vm8471_vm11 }
 0xab4   : > { %5274 = vmatpush.msk.msra.mxu2 %vm8465_vm8, %v2763_v32  ;;  %5282 = vmatpush.msk.msra.mxu3 %vm8466_vm9, %v2759_v35  ;;  %vm8474_vm8 = vmmov %vm8471_vm11 }
 0xab5   : > { %v2751_v4 = vpop.permute.xlu0 %2750  ;;  %vm8475_vm9 = vmmov %vm8474_vm8 }
 0xab6   : > { %v2743_v39 = vpop.permute.xlu1 %2742 }
 0xab7   : > { %v2758_v46 = vsel %vm1582_vm14, %v2743_v39, %v2751_v4  ;;  %v2762_v58 = vsel %vm1582_vm14, %v2751_v4, %v2743_v39 }
 0xab8   : > { %5275 = vmatpush.msk.msra.mxu2 %vm8467_vm0, %v2762_v58  ;;  %5283 = vmatpush.msk.msra.mxu3 %vm8468_vm10, %v2758_v46  ;;  %vm8476_vm0 = vmmov %vm8472_vm7 }
 0xab9   : > { %5276 = vmatmul.msk.f32.vlgmr.msra.gmra.mxu2 %vm815_vm4, %v5773_v11  ;;  %5284 = vmatmul.msk.f32.vlgmr.msra.gmra.mxu3 %vm815_vm4, %v5773_v11  ;;  %vm8477_vm10 = vmmov %vm8474_vm8 }
 0xabd   : > { %v2895_v21 = vpop.permute.xlu0 %2894 }
 0xabe   : > { %v2893_v60 = vpop.permute.xlu1 %2892  ;;  %v2908_v27 = vsel %vm8473_vm15, %v2895_v21, %v2903_v22  ;;  %v2912_v54 = vsel %vm8474_vm8, %v2903_v22, %v2895_v21 }
 0xabf   : > { %v2878_v8 = vpop.f32.mrf.mxu1 }
 0xac1   : > { %5277 = vmatmul.msk.f32.gmra.mxu2 %vm815_vm4, %v5774_v17  ;;  %5285 = vmatmul.msk.f32.gmra.mxu3 %vm815_vm4, %v5774_v17 }
 0xac2   : > { %v2849_v33 = vpop.f32.mrf.mxu0 }
 0xac5   : > { %v2901_v42 = vpop.permute.xlu0 %2900 }
 0xac6   : > { %v2905_v5 = vpop.permute.xlu1 %2904  ;;  %v2907_v43 = vsel %vm8477_vm10, %v2893_v60, %v2901_v42 }
 0xac7   : > { %v2909_v19 = vsel %vm8469_vm13, %v2897_v0, %v2905_v5  ;;  %v2913_v20 = vsel %vm8470_vm12, %v2905_v5, %v2897_v0  ;;  %vm8478_vm13 = vmmov %vm8474_vm8  ;;  %v2881_v6 = vpop.f32.mrf.mxu1 }
 0xac8   : > { %5296 = vmatpush.msk.msrb.mxu2 %vm8471_vm11, %v2909_v19  ;;  %5304 = vmatpush.msk.msrb.mxu3 %vm8472_vm7, %v2913_v20  ;;  %v2911_v36 = vsel %vm8478_vm13, %v2901_v42, %v2893_v60  ;;  %vm8479_vm12 = vmmov %vm8474_vm8 }
 0xac9   : > { %5278 = vmatmul.msk.f32.gmra.mxu2 %vm815_vm4, %v5775_v51  ;;  %5286 = vmatmul.msk.f32.gmra.mxu3 %vm815_vm4, %v5775_v51  ;;  %vm8480_vm11 = vmmov %vm8476_vm0 }
 0xaca   : > { %5297 = vmatpush.msk.msrb.mxu2 %vm8475_vm9, %v2908_v27  ;;  %5305 = vmatpush.msk.msrb.mxu3 %vm8476_vm0, %v2912_v54  ;;  %vm8481_vm7 = vmmov %vm8474_vm8  ;;  %v2852_v25 = vpop.f32.mrf.mxu0 }
 0xacb   : > { %vm8482_vm15 = vmmov %vm8481_vm7 }
 0xacc   : > { %5298 = vmatpush.msk.msrb.mxu2 %vm8479_vm12, %v2907_v43  ;;  %5306 = vmatpush.msk.msrb.mxu3 %vm8480_vm11, %v2911_v36  ;;  %vm8483_vm8 = vmmov %vm8481_vm7 }
 0xacd   : > { %vm8484_vm9 = vmmov %vm8476_vm0 }
 0xace   : > { %v2899_v56 = vpop.permute.xlu1 %2898 }
 0xacf   : > { %v2906_v14 = vsel %vm8481_vm7, %v2891_v23, %v2899_v56  ;;  %v2910_v15 = vsel %vm8482_vm15, %v2899_v56, %v2891_v23  ;;  %v2884_v35 = vpop.f32.mrf.mxu1 }
 0xad0   : > { %5299 = vmatpush.msk.msrb.mxu2 %vm8483_vm8, %v2906_v14  ;;  %5307 = vmatpush.msk.msrb.mxu3 %vm8484_vm9, %v2910_v15 }
 0xad1   : > { %5279 = vmatmul.msk.f32.gmra.mxu2 %vm815_vm4, %v5776_v2  ;;  %5287 = vmatmul.msk.f32.gmra.mxu3 %vm815_vm4, %v5776_v2 }
 0xad2   : > { %v2855_v3 = vpop.f32.mrf.mxu0 }
 0xad7   : > { %v2887_v0 = vpop.f32.mrf.mxu1 }
 0xad9   : > { %5300 = vmatmul.msk.f32.vlgmr.msrb.gmra.mxu2 %vm815_vm4, %v5777_v62  ;;  %5308 = vmatmul.msk.f32.vlgmr.msrb.gmra.mxu3 %vm815_vm4, %v5777_v62 }
 0xada   : > { %v2858_v17 = vpop.f32.mrf.mxu0 }
 0xae1   : > { %5301 = vmatmul.msk.f32.gmra.mxu2 %vm815_vm4, %v5778_v57  ;;  %5309 = vmatmul.msk.f32.gmra.mxu3 %vm815_vm4, %v5778_v57 }
 0xae9   : > { %5302 = vmatmul.msk.f32.gmra.mxu2 %vm815_vm4, %v5779_v47  ;;  %5310 = vmatmul.msk.f32.gmra.mxu3 %vm815_vm4, %v5779_v47 }
 0xaf1   : > { %5303 = vmatmul.msk.f32.gmra.mxu2 %vm815_vm4, %v5780_v45  ;;  %5311 = vmatmul.msk.f32.gmra.mxu3 %vm815_vm4, %v5780_v45  ;;  %v5781_v45 = vld [vmem:[#allocation5 + $0x20] sm:$0xff] }
 0xb3c   : > { %v2791_v41 = vpop.f32.mrf.mxu2  ;;  %v2820_v13 = vpop.f32.mrf.mxu3 }
 0xb3d   : > { %v2879_v36 = vadd.f32 %v2878_v8, %v2820_v13  ;;  %v2850_v14 = vadd.f32 %v2849_v33, %v2791_v41  ;;  %v5782_v41 = vld [vmem:[#allocation5 + $0x28] sm:$0xff]  ;;  %v5783_v13 = vld [vmem:[#allocation5 + $0x30] sm:$0xff] }
 0xb44   : > { %v2794_v10 = vpop.f32.mrf.mxu2  ;;  %v2823_v29 = vpop.f32.mrf.mxu3 }
 0xb45   : > { %v2853_v50 = vadd.f32 %v2852_v25, %v2794_v10  ;;  %v2882_v5 = vadd.f32 %v2881_v6, %v2823_v29  ;;  %v5784_v10 = vld [vmem:[#allocation5 + $0x38] sm:$0xff] }
 0xb4c   : > { %v2797_v40 = vpop.f32.mrf.mxu2  ;;  %v2826_v9 = vpop.f32.mrf.mxu3 }
 0xb4d   : > { %v2856_v4 = vadd.f32 %v2855_v3, %v2797_v40  ;;  %v2885_v39 = vadd.f32 %v2884_v35, %v2826_v9  ;;  %v5785_v35 = vld [vmem:[#allocation5] sm:$0xff] }
 0xb54   : > { %v2800_v16 = vpop.f32.mrf.mxu2  ;;  %v2829_v48 = vpop.f32.mrf.mxu3 }
 0xb55   : > { %v2859_v19 = vadd.f32 %v2858_v17, %v2800_v16  ;;  %v2888_v20 = vadd.f32 %v2887_v0, %v2829_v48  ;;  %v5787_v0 = vld [vmem:[#allocation5 + $0x10] sm:$0xff] }
 0xb5c   : > { %v2939_v34 = vpop.f32.mrf.mxu2  ;;  %v2968_v55 = vpop.f32.mrf.mxu3 }
 0xb5d   : > { %v2981_v2 = vadd.f32 %v2968_v55, %v2879_v36  ;;  %v2980_v62 = vadd.f32 %v2939_v34, %v2850_v14  ;;  %v5789_v36 = vld [vmem:[#allocation5 + $0x40] sm:$0xff]  ;;  %v5792_v14 = vld [vmem:[#allocation5 + $0x58] sm:$0xff] }
 0xb5f   : > { %v2989_v57 = vadd.f32 %v2981_v2, %v6891_v61  ;;  %v2988_v47 = vadd.f32 %v2980_v62, %v6891_v61 }
 0xb64   : > { %v2942_v7 = vpop.f32.mrf.mxu2  ;;  %v2971_v26 = vpop.f32.mrf.mxu3 }
 0xb65   : > { %v2982_v28 = vadd.f32 %v2942_v7, %v2853_v50  ;;  %v2983_v42 = vadd.f32 %v2971_v26, %v2882_v5 }
 0xb67   : > { %v2990_v32 = vadd.f32 %v2982_v28, %v6879_v12  ;;  %v2991_v15 = vadd.f32 %v2983_v42, %v6879_v12 }
 0xb69   : > { %2998 = vrot.lane.b32.xlu2 %v2990_v32, %s6061_s19 }
 0xb6c   : > { %v2945_v46 = vpop.f32.mrf.mxu2  ;;  %v2974_v58 = vpop.f32.mrf.mxu3 }
 0xb6d   : > { %v2984_v11 = vadd.f32 %v2945_v46, %v2856_v4  ;;  %v2985_v22 = vadd.f32 %v2974_v58, %v2885_v39  ;;  %v5786_v46 = vld [vmem:[#allocation5 + $0x8] sm:$0xff] }
 0xb6f   : > { %v2992_v21 = vadd.f32 %v2984_v11, %v6882_v44  ;;  %v2993_v60 = vadd.f32 %v2985_v22, %v6882_v44 }
 0xb71   : > { %3008 = vrot.lane.b32.xlu0 %v2993_v60, %s6061_s19  ;;  %3000 = vrot.lane.b32.xlu1 %v2992_v21, %s6061_s19 }
 0xb74   : > { %v2948_v27 = vpop.f32.mrf.mxu2  ;;  %v2977_v54 = vpop.f32.mrf.mxu3 }
 0xb75   : > { %v2986_v51 = vadd.f32 %v2948_v27, %v2859_v19  ;;  %v2987_v43 = vadd.f32 %v2977_v54, %v2888_v20 }
 0xb77   : > { %v2994_v23 = vadd.f32 %v2986_v51, %v6886_v31  ;;  %v2995_v56 = vadd.f32 %v2987_v43, %v6886_v31  ;;  %v5788_v43 = vld [vmem:[#allocation5 + $0x18] sm:$0xff] }
 0xb79   : > { %3127 = vmatpush.msra.mxu3 %v2995_v56  ;;  %3002 = vrot.lane.b32.xlu0 %v2994_v23, %s6061_s19 }
 0xb7a   : > { %3098 = vmatpush.msra.mxu2 %v2994_v23  ;;  %3006 = vrot.lane.b32.xlu1 %v2991_v15, %s6061_s19 }
 0xb7b   : > { %3010 = vrot.lane.b32.xlu2 %v2995_v56, %s6061_s19  ;;  %3128 = vmatpush.msra.mxu3 %v2993_v60 }
 0xb7c   : > { %3099 = vmatpush.msra.mxu2 %v2992_v21 }
 0xb7d   : > { %3129 = vmatpush.msra.mxu3 %v2991_v15 }
 0xb7e   : > { %3100 = vmatpush.msra.mxu2 %v2990_v32 }
 0xb7f   : > { %3130 = vmatpush.msra.mxu3 %v2989_v57 }
 0xb80   : > { %3101 = vmatpush.msra.mxu2 %v2988_v47  ;;  %5332 = vmatmul.msk.f32.vlgmr.msra.gmra.mxu3 %vm815_vm4, %v5781_v45 }
 0xb81   : > { %2996 = vrot.lane.b32.xlu0 %v2988_v47, %s6061_s19  ;;  %5328 = vmatmul.msk.f32.vlgmr.msra.gmra.mxu2 %vm815_vm4, %v5781_v45 }
 0xb82   : > { %3156 = vrot.lane.b32.xlu1 %v2993_v60, %s6062_s17 }
 0xb83   : > { %3004 = vrot.lane.b32.xlu2 %v2989_v57, %s6061_s19 }
 0xb88   : > { %5333 = vmatmul.msk.f32.gmra.mxu3 %vm815_vm4, %v5782_v41 }
 0xb89   : > { %3146 = vrot.lane.b32.xlu0 %v2990_v32, %s6062_s17  ;;  %5329 = vmatmul.msk.f32.gmra.mxu2 %vm815_vm4, %v5782_v41 }
 0xb8a   : > { %3150 = vrot.lane.b32.xlu1 %v2994_v23, %s6062_s17  ;;  %v5790_v23 = vld [vmem:[#allocation5 + $0x48] sm:$0xff] }
 0xb8b   : > { %3148 = vrot.lane.b32.xlu2 %v2992_v21, %s6062_s17 }
 0xb90   : > { %5334 = vmatmul.msk.f32.gmra.mxu3 %vm815_vm4, %v5783_v13 }
 0xb91   : > { %3158 = vrot.lane.b32.xlu0 %v2995_v56, %s6062_s17  ;;  %5330 = vmatmul.msk.f32.gmra.mxu2 %vm815_vm4, %v5783_v13  ;;  %v5791_v56 = vld [vmem:[#allocation5 + $0x50] sm:$0xff] }
 0xb92   : > { %3144 = vrot.lane.b32.xlu1 %v2988_v47, %s6062_s17 }
 0xb93   : > { %3154 = vrot.lane.b32.xlu2 %v2991_v15, %s6062_s17 }
 0xb98   : > { %5335 = vmatmul.msk.f32.gmra.mxu3 %vm815_vm4, %v5784_v10 }
 0xb99   : > { %3152 = vrot.lane.b32.xlu0 %v2989_v57, %s6062_s17  ;;  %5331 = vmatmul.msk.f32.gmra.mxu2 %vm815_vm4, %v5784_v10 }
 0xbc3   : > { %v2999_v29 = vpop.permute.xlu2 %2998 }
 0xbd5   : > { %v3011_v33 = vpop.permute.xlu2 %3010 }
 0xbdd   : > { %v3005_v7 = vpop.permute.xlu2 %3004 }
 0xbe3   : > { %v3009_v40 = vpop.permute.xlu0 %3008  ;;  %v3001_v9 = vpop.permute.xlu1 %3000 }
 0xbe4   : > { %v3014_v6 = vsel %vm794_vm1, %v3001_v9, %v3009_v40  ;;  %v3018_v34 = vsel %vm794_vm1, %v3009_v40, %v3001_v9 }
 0xbe5   : > { %v3149_v39 = vpop.permute.xlu2 %3148 }
 0xbeb   : > { %v3003_v8 = vpop.permute.xlu0 %3002 }
 0xbec   : > { %v3015_v16 = vsel %vm794_vm1, %v3003_v8, %v3011_v33  ;;  %v3019_v48 = vsel %vm794_vm1, %v3011_v33, %v3003_v8  ;;  %v3007_v25 = vpop.permute.xlu1 %3006 }
 0xbed   : > { %5312 = vmatpush.msk.msra.mxu0 %vm538_vm2, %v3019_v48  ;;  %5320 = vmatpush.msk.msra.mxu1 %vm539_vm3, %v3015_v16  ;;  %v3013_v55 = vsel %vm794_vm1, %v2999_v29, %v3007_v25  ;;  %v3017_v50 = vsel %vm794_vm1, %v3007_v25, %v2999_v29  ;;  %v3155_v5 = vpop.permute.xlu2 %3154 }
 0xbef   : > { %5313 = vmatpush.msk.msra.mxu0 %vm538_vm2, %v3018_v34  ;;  %5321 = vmatpush.msk.msra.mxu1 %vm539_vm3, %v3014_v6 }
 0xbf1   : > { %5314 = vmatpush.msk.msra.mxu0 %vm538_vm2, %v3017_v50  ;;  %5322 = vmatpush.msk.msra.mxu1 %vm539_vm3, %v3013_v55 }
 0xbf3   : > { %v2997_v26 = vpop.permute.xlu0 %2996 }
 0xbf4   : > { %v3012_v28 = vsel %vm794_vm1, %v2997_v26, %v3005_v7  ;;  %v3016_v3 = vsel %vm794_vm1, %v3005_v7, %v2997_v26  ;;  %v3157_v32 = vpop.permute.xlu1 %3156 }
 0xbf5   : > { %5315 = vmatpush.msk.msra.mxu0 %vm538_vm2, %v3016_v3  ;;  %5323 = vmatpush.msk.msra.mxu1 %vm539_vm3, %v3012_v28  ;;  %v3162_v60 = vsel %vm540_vm6, %v3149_v39, %v3157_v32  ;;  %v3166_v17 = vsel %vm540_vm6, %v3157_v32, %v3149_v39 }
 0xbf6   : > { %5316 = vmatmul.msk.f32.vlgmr.msra.gmra.mxu0 %vm815_vm4, %v5785_v35  ;;  %5324 = vmatmul.msk.f32.vlgmr.msra.gmra.mxu1 %vm815_vm4, %v5785_v35 }
 0xbfb   : > { %v3147_v4 = vpop.permute.xlu0 %3146 }
 0xbfc   : > { %v3151_v58 = vpop.permute.xlu1 %3150  ;;  %v3161_v19 = vsel %vm540_vm6, %v3147_v4, %v3155_v5  ;;  %v3165_v20 = vsel %vm540_vm6, %v3155_v5, %v3147_v4 }
 0xbfe   : > { %5317 = vmatmul.msk.f32.gmra.mxu0 %vm815_vm4, %v5786_v46  ;;  %5325 = vmatmul.msk.f32.gmra.mxu1 %vm815_vm4, %v5786_v46 }
 0xc03   : > { %v3159_v11 = vpop.permute.xlu0 %3158  ;;  %v3132_v13 = vpop.f32.mrf.mxu3 }
 0xc04   : > { %v3163_v22 = vsel %vm540_vm6, %v3151_v58, %v3159_v11  ;;  %v3167_v21 = vsel %vm540_vm6, %v3159_v11, %v3151_v58  ;;  %v3145_v42 = vpop.permute.xlu1 %3144  ;;  %v3103_v41 = vpop.f32.mrf.mxu2 }
 0xc05   : > { %5336 = vmatpush.msk.msrb.mxu0 %vm540_vm6, %v3163_v22  ;;  %5344 = vmatpush.msk.msrb.mxu1 %vm541_vm5, %v3167_v21 }
 0xc06   : > { %5318 = vmatmul.msk.f32.gmra.mxu0 %vm815_vm4, %v5787_v0  ;;  %5326 = vmatmul.msk.f32.gmra.mxu1 %vm815_vm4, %v5787_v0 }
 0xc07   : > { %5337 = vmatpush.msk.msrb.mxu0 %vm540_vm6, %v3162_v60  ;;  %5345 = vmatpush.msk.msrb.mxu1 %vm541_vm5, %v3166_v17 }
 0xc09   : > { %5338 = vmatpush.msk.msrb.mxu0 %vm540_vm6, %v3161_v19  ;;  %5346 = vmatpush.msk.msrb.mxu1 %vm541_vm5, %v3165_v20 }
 0xc0b   : > { %v3153_v27 = vpop.permute.xlu0 %3152  ;;  %v3135_v9 = vpop.f32.mrf.mxu3 }
 0xc0c   : > { %v3160_v54 = vsel %vm540_vm6, %v3145_v42, %v3153_v27  ;;  %v3164_v51 = vsel %vm540_vm6, %v3153_v27, %v3145_v42  ;;  %v3106_v40 = vpop.f32.mrf.mxu2 }
 0xc0d   : > { %5339 = vmatpush.msk.msrb.mxu0 %vm540_vm6, %v3160_v54  ;;  %5347 = vmatpush.msk.msrb.mxu1 %vm541_vm5, %v3164_v51 }
 0xc0e   : > { %5319 = vmatmul.msk.f32.gmra.mxu0 %vm815_vm4, %v5788_v43  ;;  %5327 = vmatmul.msk.f32.gmra.mxu1 %vm815_vm4, %v5788_v43 }
 0xc13   : > { %v3138_v55 = vpop.f32.mrf.mxu3 }
 0xc14   : > { %v3109_v34 = vpop.f32.mrf.mxu2 }
 0xc16   : > { %5340 = vmatmul.msk.f32.vlgmr.msrb.gmra.mxu0 %vm815_vm4, %v5789_v36  ;;  %5348 = vmatmul.msk.f32.vlgmr.msrb.gmra.mxu1 %vm815_vm4, %v5789_v36 }
 0xc1b   : > { %v3141_v22 = vpop.f32.mrf.mxu3 }
 0xc1c   : > { %v3112_v11 = vpop.f32.mrf.mxu2 }
 0xc1e   : > { %5341 = vmatmul.msk.f32.gmra.mxu0 %vm815_vm4, %v5790_v23  ;;  %5349 = vmatmul.msk.f32.gmra.mxu1 %vm815_vm4, %v5790_v23 }
 0xc26   : > { %5342 = vmatmul.msk.f32.gmra.mxu0 %vm815_vm4, %v5791_v56  ;;  %5350 = vmatmul.msk.f32.gmra.mxu1 %vm815_vm4, %v5791_v56 }
 0xc2e   : > { %5343 = vmatmul.msk.f32.gmra.mxu0 %vm815_vm4, %v5792_v14  ;;  %5351 = vmatmul.msk.f32.gmra.mxu1 %vm815_vm4, %v5792_v14 }
 0xc73   : > { %v3045_v15 = vpop.f32.mrf.mxu0  ;;  %v3074_v2 = vpop.f32.mrf.mxu1 }
 0xc74   : > { %v3104_v51 = vadd.f32 %v3103_v41, %v3045_v15  ;;  %v3133_v23 = vadd.f32 %v3132_v13, %v3074_v2 }
 0xc7b   : > { %v3048_v62 = vpop.f32.mrf.mxu0  ;;  %v3077_v57 = vpop.f32.mrf.mxu1 }
 0xc7c   : > { %v3107_v16 = vadd.f32 %v3106_v40, %v3048_v62  ;;  %v3136_v39 = vadd.f32 %v3135_v9, %v3077_v57 }
 0xc83   : > { %v3051_v47 = vpop.f32.mrf.mxu0  ;;  %v3080_v45 = vpop.f32.mrf.mxu1 }
 0xc84   : > { %v3110_v26 = vadd.f32 %v3109_v34, %v3051_v47  ;;  %v3139_v28 = vadd.f32 %v3138_v55, %v3080_v45 }
 0xc8b   : > { %v3054_v10 = vpop.f32.mrf.mxu0  ;;  %v3083_v29 = vpop.f32.mrf.mxu1 }
 0xc8c   : > { %v3113_v0 = vadd.f32 %v3112_v11, %v3054_v10  ;;  %v3142_v5 = vadd.f32 %v3141_v22, %v3083_v29 }
 0xc93   : > { %v3193_v33 = vpop.f32.mrf.mxu0  ;;  %v3222_v8 = vpop.f32.mrf.mxu1 }
 0xc94   : > { %v3234_v56 = vadd.f32 %v3193_v33, %v3104_v51  ;;  %v3235_v47 = vadd.f32 %v3222_v8, %v3133_v23 }
 0xc96   : > { %v3242_v45 = vadd.f32 %v3234_v56, %v6501_v24  ;;  %v3243_v10 = vadd.f32 %v3235_v47, %v6501_v24 }
 0xc98   : > { %v3250_v29 = vmax.f32 %v3242_v45, 0.0  ;;  %v3251_v40 = vmax.f32 %v3243_v10, 0.0 }
 0xc9b   : > { %v3196_v48 = vpop.f32.mrf.mxu0  ;;  %v3225_v25 = vpop.f32.mrf.mxu1 }
 0xc9c   : > { %v3236_v6 = vadd.f32 %v3196_v48, %v3107_v16  ;;  %v3237_v21 = vadd.f32 %v3225_v25, %v3136_v39 }
 0xc9e   : > { %v3244_v50 = vadd.f32 %v3236_v6, %v6490_v53  ;;  %v3245_v42 = vadd.f32 %v3237_v21, %v6490_v53 }
 0xca0   : > { %v3252_v7 = vmax.f32 %v3244_v50, 0.0  ;;  %v3253_v62 = vmax.f32 %v3245_v42, 0.0 }
 0xca2   : > { %3260 = vadd.xlane.f32.xlu1 %v3252_v7 }
 0xca3   : > { %v3199_v3 = vpop.f32.mrf.mxu0  ;;  %v3228_v35 = vpop.f32.mrf.mxu1 }
 0xca4   : > { %v3238_v32 = vadd.f32 %v3199_v3, %v3110_v26  ;;  %v3239_v4 = vadd.f32 %v3228_v35, %v3139_v28 }
 0xca6   : > { %v3246_v46 = vadd.f32 %v3238_v32, %v6493_v63  ;;  %v3247_v58 = vadd.f32 %v3239_v4, %v6493_v63 }
 0xca8   : > { %v3255_v60 = vmax.f32 %v3247_v58, 0.0  ;;  %v3254_v17 = vmax.f32 %v3246_v46, 0.0 }
 0xcaa   : > { %3350 = vadd.xlane.f32.xlu2 %v3255_v60  ;;  %3262 = vadd.xlane.f32.xlu0 %v3254_v17 }
 0xcab   : > { %v3202_v19 = vpop.f32.mrf.mxu0  ;;  %v3231_v20 = vpop.f32.mrf.mxu1 }
 0xcac   : > { %v3240_v27 = vadd.f32 %v3202_v19, %v3113_v0  ;;  %v3241_v54 = vadd.f32 %v3231_v20, %v3142_v5 }
 0xcae   : > { %v3248_v43 = vadd.f32 %v3240_v27, %v6496_v1  ;;  %v3249_v36 = vadd.f32 %v3241_v54, %v6496_v1 }
 0xcb0   : > { %v3256_v14 = vmax.f32 %v3248_v43, 0.0  ;;  %v3257_v57 = vmax.f32 %v3249_v36, 0.0 }
 0xcb2   : > { %3264 = vadd.xlane.f32.xlu2 %v3256_v14  ;;  %3348 = vadd.xlane.f32.xlu0 %v3253_v62 }
 0xcb3   : > { %3352 = vadd.xlane.f32.xlu1 %v3257_v57 }
 0xcba   : > { %3258 = vadd.xlane.f32.xlu2 %v3250_v29 }
 0xcbb   : > { %3346 = vadd.xlane.f32.xlu1 %v3251_v40 }
 0xd15   : > { %v3261_v15 = vpop.xlane.xlu1 %3260 }
 0xd16   : > { %v3267_v41 = vmul.f32 %v3261_v15, %v6506_v37 }
 0xd18   : > { %v7574_v2 = vsub.f32 %v3252_v7, %v3267_v41 }
 0xd1a   : > { %v3275_v13 = vmul.f32 %v7574_v2, %v7574_v2 }
 0xd1c   : > { %3280 = vadd.xlane.f32.xlu2 %v3275_v13 }
 0xd1d   : > { %v3351_v9 = vpop.xlane.xlu2 %3350  ;;  %v3263_v33 = vpop.xlane.xlu0 %3262 }
 0xd1e   : > { %v3356_v8 = vmul.f32 %v3351_v9, %v6506_v37  ;;  %v3268_v16 = vmul.f32 %v3263_v33, %v6506_v37 }
 0xd20   : > { %v7580_v48 = vsub.f32 %v3255_v60, %v3356_v8  ;;  %v7582_v25 = vsub.f32 %v3254_v17, %v3268_v16 }
 0xd22   : > { %v3364_v6 = vmul.f32 %v7580_v48, %v7580_v48  ;;  %v3276_v34 = vmul.f32 %v7582_v25, %v7582_v25 }
 0xd24   : > { %3370 = vadd.xlane.f32.xlu0 %v3364_v6  ;;  %3282 = vadd.xlane.f32.xlu1 %v3276_v34 }
 0xd25   : > { %v3265_v55 = vpop.xlane.xlu2 %3264  ;;  %v3349_v50 = vpop.xlane.xlu0 %3348 }
 0xd26   : > { %v3269_v7 = vmul.f32 %v3265_v55, %v6506_v37  ;;  %v3355_v26 = vmul.f32 %v3349_v50, %v6506_v37  ;;  %v3353_v28 = vpop.xlane.xlu1 %3352 }
 0xd27   : > { %v3357_v3 = vmul.f32 %v3353_v28, %v6506_v37 }
 0xd28   : > { %v7591_v35 = vsub.f32 %v3256_v14, %v3269_v7  ;;  %v7593_v32 = vsub.f32 %v3253_v62, %v3355_v26 }
 0xd29   : > { %v7595_v4 = vsub.f32 %v3257_v57, %v3357_v3 }
 0xd2a   : > { %v3277_v39 = vmul.f32 %v7591_v35, %v7591_v35  ;;  %v3363_v46 = vmul.f32 %v7593_v32, %v7593_v32 }
 0xd2b   : > { %v3365_v58 = vmul.f32 %v7595_v4, %v7595_v4 }
 0xd2c   : > { %3284 = vadd.xlane.f32.xlu0 %v3277_v39  ;;  %3368 = vadd.xlane.f32.xlu1 %v3363_v46 }
 0xd2d   : > { %3372 = vadd.xlane.f32.xlu2 %v3365_v58  ;;  %v3259_v11 = vpop.xlane.xlu2 %3258 }
 0xd2e   : > { %v3347_v22 = vpop.xlane.xlu1 %3346  ;;  %v3266_v21 = vmul.f32 %v3259_v11, %v6506_v37 }
 0xd2f   : > { %v3354_v60 = vmul.f32 %v3347_v22, %v6506_v37 }
 0xd30   : > { %v7605_v17 = vsub.f32 %v3250_v29, %v3266_v21  ;;  %v7633_v21 = vld [vmem:[%s8431_s9] ss:$0 sm:$0xff] }
 0xd31   : > { %v7607_v0 = vsub.f32 %v3251_v40, %v3354_v60 }
 0xd32   : > { %v3274_v5 = vmul.f32 %v7605_v17, %v7605_v17 }
 0xd33   : > { %v3362_v19 = vmul.f32 %v7607_v0, %v7607_v0 }
 0xd34   : > { %3278 = vadd.xlane.f32.xlu0 %v3274_v5 }
 0xd35   : > { %3366 = vadd.xlane.f32.xlu2 %v3362_v19 }
 0xd8f   : > { %v3281_v20 = vpop.xlane.xlu2 %3280 }
 0xd90   : > { %v3287_v42 = vmul.f32 %v3281_v20, %v6506_v37 }
 0xd92   : > { %v3291_v27 = vadd.f32 1e-05, %v3287_v42 }
 0xd94   : > { %5711 = vrsqrt.f32 %v3291_v27  ;;  %vm3310_vm10 = vweird.f32 %v3291_v27 }
 0xd97   : > { %v3371_v54 = vpop.xlane.xlu0 %3370  ;;  %v3283_v51 = vpop.xlane.xlu1 %3282 }
 0xd98   : > { %v3376_v43 = vmul.f32 %v3371_v54, %v6506_v37  ;;  %v3288_v36 = vmul.f32 %v3283_v51, %v6506_v37 }
 0xd9a   : > { %v5712_v23 = vpop.eup %5711  ;;  %v3380_v56 = vadd.f32 1e-05, %v3376_v43  ;;  %v3292_v14 = vadd.f32 1e-05, %v3288_v36 }
 0xd9b   : > { %v3305_v62 = vmul.f32 %v5712_v23, %v3291_v27  ;;  %vm3311_vm0 = vweird.f32 %v5712_v23  ;;  %v7642_v27 = vld [vmem:[%s8432_s10] ss:$0 sm:$0xff] }
 0xd9c   : > { %5713 = vrsqrt.f32 %v3380_v56  ;;  %vm3312_vm13 = vmor %vm3310_vm10, %vm3311_vm0  ;;  %vm3408_vm7 = vweird.f32 %v3380_v56  ;;  %vm3320_vm8 = vweird.f32 %v3292_v14 }
 0xd9d   : > { %v3306_v57 = vmul.f32 %v5712_v23, %v3305_v62  ;;  %5715 = vrsqrt.f32 %v3292_v14 }
 0xd9f   : > { %v3307_v47 = vmul.f32 0.5, %v3306_v57  ;;  %v3285_v45 = vpop.xlane.xlu0 %3284  ;;  %v3369_v10 = vpop.xlane.xlu1 %3368 }
 0xda0   : > { %v3289_v29 = vmul.f32 %v3285_v45, %v6506_v37  ;;  %v3375_v40 = vmul.f32 %v3369_v10, %v6506_v37  ;;  %v3373_v15 = vpop.xlane.xlu2 %3372 }
 0xda1   : > { %v3308_v41 = vsub.f32 1.5, %v3307_v47  ;;  %v3377_v13 = vmul.f32 %v3373_v15, %v6506_v37 }
 0xda2   : > { %v5714_v9 = vpop.eup %5713  ;;  %v7619_v33 = vadd.f32 1e-05, %v3289_v29  ;;  %v7621_v8 = vadd.f32 1e-05, %v3375_v40 }
 0xda3   : > { %v5716_v16 = vpop.eup %5715  ;;  %v3309_v6 = vmul.f32 %v5712_v23, %v3308_v41  ;;  %v3403_v34 = vmul.f32 %v5714_v9, %v3380_v56  ;;  %v7623_v55 = vadd.f32 1e-05, %v3377_v13  ;;  %vm3409_vm12 = vweird.f32 %v5714_v9 }
 0xda4   : > { %v3315_v50 = vmul.f32 %v5716_v16, %v3292_v14  ;;  %5717 = vrsqrt.f32 %v7619_v33  ;;  %vm3321_vm11 = vweird.f32 %v5716_v16  ;;  %vm3410_vm15 = vmor %vm3408_vm7, %vm3409_vm12  ;;  %vm3330_vm10 = vweird.f32 %v7619_v33 }
 0xda5   : > { %v3313_v7 = vsel %vm3312_vm13, %v5712_v23, %v3309_v6  ;;  %v3404_v26 = vmul.f32 %v5714_v9, %v3403_v34  ;;  %5719 = vrsqrt.f32 %v7621_v8  ;;  %vm3322_vm9 = vmor %vm3320_vm8, %vm3321_vm11  ;;  %vm3398_vm7 = vweird.f32 %v7621_v8 }
 0xda6   : > { %v3335_v28 = vmul.f32 %v3313_v7, %v7574_v2  ;;  %v3316_v3 = vmul.f32 %v5716_v16, %v3315_v50  ;;  %5721 = vrsqrt.f32 %v7623_v55  ;;  %vm3418_vm8 = vweird.f32 %v7623_v55 }
 0xda7   : > { %v3405_v39 = vmul.f32 0.5, %v3404_v26  ;;  %v3279_v46 = vpop.xlane.xlu0 %3278 }
 0xda8   : > { %v3317_v58 = vmul.f32 0.5, %v3316_v3  ;;  %v3286_v11 = vmul.f32 %v3279_v46, %v6506_v37  ;;  %v3367_v22 = vpop.xlane.xlu2 %3366  ;;  %v3339_v60 = vmul.f32 %v7633_v21, %v3335_v28 }
 0xda9   : > { %v3406_v5 = vsub.f32 1.5, %v3405_v39  ;;  %v3374_v2 = vmul.f32 %v3367_v22, %v6506_v37 }
 0xdaa   : > { %v5718_v19 = vpop.eup %5717  ;;  %v3318_v20 = vsub.f32 1.5, %v3317_v58  ;;  %v7637_v42 = vadd.f32 1e-05, %v3286_v11  ;;  %v7645_v54 = vadd.f32 %v7642_v27, %v3339_v60 }
 0xdab   : > { %v5720_v51 = vpop.eup %5719  ;;  %v3407_v43 = vmul.f32 %v5714_v9, %v3406_v5  ;;  %v3325_v36 = vmul.f32 %v5718_v19, %v7619_v33  ;;  %v7648_v23 = vadd.f32 1e-05, %v3374_v2  ;;  %vm3331_vm0 = vweird.f32 %v5718_v19 }
 0xdac   : > { %v5722_v62 = vpop.eup %5721  ;;  %v3319_v57 = vmul.f32 %v5716_v16, %v3318_v20  ;;  %v3393_v47 = vmul.f32 %v5720_v51, %v7621_v8  ;;  %5723 = vrsqrt.f32 %v7637_v42  ;;  %3436 = vrot.lane.b32.xlu1 %v7645_v54, %s6061_s19  ;;  %vm3399_vm13 = vweird.f32 %v5720_v51  ;;  %vm3332_vm11 = vmor %vm3330_vm10, %vm3331_vm0 }
 0xdad   : > { %v3411_v45 = vsel %vm3410_vm15, %v5714_v9, %v3407_v43  ;;  %v3326_v10 = vmul.f32 %v5718_v19, %v3325_v36  ;;  %v3413_v56 = vmul.f32 %v5722_v62, %v7623_v55  ;;  %5725 = vrsqrt.f32 %v7648_v23  ;;  %vm3400_vm15 = vmor %vm3398_vm7, %vm3399_vm13 }
 0xdae   : > { %v3424_v29 = vmul.f32 %v3411_v45, %v7580_v48  ;;  %v3323_v40 = vsel %vm3322_vm9, %v5716_v16, %v3319_v57  ;;  %v3394_v15 = vmul.f32 %v5720_v51, %v3393_v47  ;;  %vm3419_vm12 = vweird.f32 %v5722_v62 }
 0xdaf   : > { %v3336_v41 = vmul.f32 %v3323_v40, %v7582_v25  ;;  %v3327_v14 = vmul.f32 0.5, %v3326_v10  ;;  %v3414_v13 = vmul.f32 %v5722_v62, %v3413_v56  ;;  %vm3420_vm9 = vmor %vm3418_vm8, %vm3419_vm12  ;;  %vm3300_vm10 = vweird.f32 %v7637_v42 }
 0xdb0   : > { %v3395_v6 = vmul.f32 0.5, %v3394_v15  ;;  %v3428_v34 = vmul.f32 %v7633_v21, %v3424_v29  ;;  %vm8486_vm8 = vcmp.ge.s32.totalorder %v6366_v52, 2 }
 0xdb1   : > { %v3328_v50 = vsub.f32 1.5, %v3327_v14  ;;  %v3415_v9 = vmul.f32 0.5, %v3414_v13  ;;  %v3340_v7 = vmul.f32 %v7633_v21, %v3336_v41  ;;  %v5795_v13 = vld [vmem:[#allocation7 + $0x20] sm:$0xff] }
 0xdb2   : > { %v5724_v26 = vpop.eup %5723  ;;  %v3396_v48 = vsub.f32 1.5, %v3395_v6  ;;  %v7663_v16 = vadd.f32 %v7642_v27, %v3428_v34 }
 0xdb3   : > { %v3329_v25 = vmul.f32 %v5718_v19, %v3328_v50  ;;  %v3416_v28 = vsub.f32 1.5, %v3415_v9  ;;  %v3295_v3 = vmul.f32 %v5724_v26, %v7637_v42  ;;  %v7668_v46 = vadd.f32 %v7642_v27, %v3340_v7  ;;  %v5726_v33 = vpop.eup %5725 }
 0xdb4   : > { %v3397_v39 = vmul.f32 %v5720_v51, %v3396_v48  ;;  %3446 = vrot.lane.b32.xlu0 %v7663_v16, %s6061_s19  ;;  %v3383_v8 = vmul.f32 %v5726_v33, %v7648_v23  ;;  %vm3301_vm0 = vweird.f32 %v5724_v26  ;;  %vm3389_vm12 = vweird.f32 %v5726_v33 }
 0xdb5   : > { %v3333_v58 = vsel %vm3332_vm11, %v5718_v19, %v3329_v25  ;;  %v3417_v11 = vmul.f32 %v5722_v62, %v3416_v28  ;;  %v3296_v22 = vmul.f32 %v5724_v26, %v3295_v3  ;;  %3438 = vrot.lane.b32.xlu2 %v7668_v46, %s6061_s19  ;;  %vm3302_vm13 = vmor %vm3300_vm10, %vm3301_vm0  ;;  %vm3388_vm11 = vweird.f32 %v7648_v23 }
 0xdb6   : > { %v3337_v60 = vmul.f32 %v3333_v58, %v7591_v35  ;;  %v3401_v5 = vsel %vm3400_vm15, %v5720_v51, %v3397_v39  ;;  %v3384_v36 = vmul.f32 %v5726_v33, %v3383_v8  ;;  %vm3390_vm7 = vmor %vm3388_vm11, %vm3389_vm12  ;;  %v5800_v8 = vld [vmem:[#allocation7 + $0x8] sm:$0xff]  ;;  %vm8485_vm15 = vcmp.ge.s32.totalorder %v6363_v49, 2 }
 0xdb7   : > { %v3423_v2 = vmul.f32 %v3401_v5, %v7593_v32  ;;  %v3421_v20 = vsel %vm3420_vm9, %v5722_v62, %v3417_v11  ;;  %v3297_v43 = vmul.f32 0.5, %v3296_v22  ;;  %v5799_v22 = vld [vmem:[#allocation7] sm:$0xff]  ;;  %vm8487_vm9 = vmmov %vm8485_vm15 }
 0xdb8   : > { %v3425_v19 = vmul.f32 %v3421_v20, %v7595_v4  ;;  %v3341_v55 = vmul.f32 %v7633_v21, %v3337_v60  ;;  %v3385_v51 = vmul.f32 0.5, %v3384_v36  ;;  %vm8488_vm0 = vmmov %vm8486_vm8 }
 0xdb9   : > { %v3298_v57 = vsub.f32 1.5, %v3297_v43  ;;  %v3427_v35 = vmul.f32 %v7633_v21, %v3423_v2  ;;  %vm8489_vm10 = vmmov %vm8487_vm9 }
 0xdba   : > { %v3345_v47 = vadd.f32 %v7642_v27, %v3341_v55  ;;  %v3429_v45 = vmul.f32 %v7633_v21, %v3425_v19  ;;  %v3386_v62 = vsub.f32 1.5, %v3385_v51  ;;  %vm8491_vm12 = vmmov %vm8487_vm9 }
 0xdbb   : > { %v3299_v10 = vmul.f32 %v5724_v26, %v3298_v57  ;;  %v3431_v32 = vadd.f32 %v7642_v27, %v3427_v35  ;;  %v5801_v35 = vld [vmem:[#allocation7 + $0x10] sm:$0xff]  ;;  %vm8492_vm11 = vmmov %vm8488_vm0 }
 0xdbc   : > { %3536 = vmatpush.msra.mxu0 %v3345_v47  ;;  %3440 = vrot.lane.b32.xlu1 %v3345_v47, %s6061_s19  ;;  %v3433_v4 = vadd.f32 %v7642_v27, %v3429_v45  ;;  %v3387_v29 = vmul.f32 %v5726_v33, %v3386_v62 }
 0xdbd   : > { %v3303_v56 = vsel %vm3302_vm13, %v5724_v26, %v3299_v10  ;;  %3444 = vrot.lane.b32.xlu2 %v3431_v32, %s6061_s19  ;;  %vm8490_vm13 = vmmov %vm8488_vm0 }
 0xdbe   : > { %3448 = vrot.lane.b32.xlu0 %v3433_v4, %s6061_s19  ;;  %v3334_v42 = vmul.f32 %v3303_v56, %v7605_v17  ;;  %3565 = vmatpush.msra.mxu1 %v3433_v4  ;;  %v3391_v40 = vsel %vm3390_vm7, %v5726_v33, %v3387_v29  ;;  %v5803_v56 = vld [vmem:[#allocation7 + $0x40] sm:$0xff]  ;;  %v5804_v29 = vld [vmem:[#allocation7 + $0x48] sm:$0xff]  ;;  %vm8493_vm7 = vcmp.lt.s32.totalorder %v6363_v49, 126 }
 0xdbf   : > { %3537 = vmatpush.msra.mxu0 %v7668_v46  ;;  %v3422_v41 = vmul.f32 %v3391_v40, %v7607_v0  ;;  %v5796_v0 = vld [vmem:[#allocation7 + $0x28] sm:$0xff]  ;;  %v5806_v40 = vld [vmem:[#allocation7 + $0x58] sm:$0xff] }
 0xdc0   : > { %v3338_v15 = vmul.f32 %v7633_v21, %v3334_v42  ;;  %3566 = vmatpush.msra.mxu1 %v7663_v16  ;;  %v5805_v42 = vld [vmem:[#allocation7 + $0x50] sm:$0xff] }
 0xdc1   : > { %3538 = vmatpush.msra.mxu0 %v7645_v54  ;;  %v3426_v14 = vmul.f32 %v7633_v21, %v3422_v41  ;;  %v5797_v21 = vld [vmem:[#allocation7 + $0x30] sm:$0xff] }
 0xdc2   : > { %v3342_v23 = vadd.f32 %v7642_v27, %v3338_v15  ;;  %3567 = vmatpush.msra.mxu1 %v3431_v32 }
 0xdc3   : > { %v3430_v17 = vadd.f32 %v7642_v27, %v3426_v14  ;;  %v5798_v27 = vld [vmem:[#allocation7 + $0x38] sm:$0xff] }
 0xdc4   : > { %3539 = vmatpush.msra.mxu0 %v3342_v23 }
 0xdc5   : > { %5368 = vmatmul.msk.f32.vlgmr.msra.gmra.mxu0 %vm815_vm4, %v5795_v13  ;;  %3594 = vrot.lane.b32.xlu2 %v7663_v16, %s6062_s17 }
 0xdc6   : > { %3434 = vrot.lane.b32.xlu0 %v3342_v23, %s6061_s19  ;;  %3442 = vrot.lane.b32.xlu1 %v3430_v17, %s6061_s19 }
 0xdc7   : > { %3568 = vmatpush.msra.mxu1 %v3430_v17 }
 0xdc8   : > { %5372 = vmatmul.msk.f32.vlgmr.msra.gmra.mxu1 %vm815_vm4, %v5795_v13 }
 0xdcd   : > { %5369 = vmatmul.msk.f32.gmra.mxu0 %vm815_vm4, %v5796_v0  ;;  %3588 = vrot.lane.b32.xlu2 %v3345_v47, %s6062_s17 }
 0xdce   : > { %3584 = vrot.lane.b32.xlu0 %v7645_v54, %s6062_s17  ;;  %3586 = vrot.lane.b32.xlu1 %v7668_v46, %s6062_s17 }
 0xdd0   : > { %5373 = vmatmul.msk.f32.gmra.mxu1 %vm815_vm4, %v5796_v0 }
 0xdd5   : > { %5370 = vmatmul.msk.f32.gmra.mxu0 %vm815_vm4, %v5797_v21  ;;  %3582 = vrot.lane.b32.xlu2 %v3342_v23, %s6062_s17 }
 0xdd6   : > { %3596 = vrot.lane.b32.xlu0 %v3433_v4, %s6062_s17  ;;  %3592 = vrot.lane.b32.xlu1 %v3431_v32, %s6062_s17  ;;  %v5802_v4 = vld [vmem:[#allocation7 + $0x18] sm:$0xff] }
 0xdd8   : > { %5374 = vmatmul.msk.f32.gmra.mxu1 %vm815_vm4, %v5797_v21 }
 0xddd   : > { %5371 = vmatmul.msk.f32.gmra.mxu0 %vm815_vm4, %v5798_v27 }
 0xdde   : > { %3590 = vrot.lane.b32.xlu0 %v3430_v17, %s6062_s17 }
 0xde0   : > { %5375 = vmatmul.msk.f32.gmra.mxu1 %vm815_vm4, %v5798_v27 }
 0xe0f   : > { %v3439_v34 = vpop.permute.xlu2 %3438 }
 0xe17   : > { %v3445_v48 = vpop.permute.xlu2 %3444 }
 0xe1e   : > { %v3437_v54 = vpop.permute.xlu1 %3436 }
 0xe1f   : > { %v3451_v28 = vsel %vm794_vm1, %v3437_v54, %v3445_v48  ;;  %v3455_v3 = vsel %vm794_vm1, %v3445_v48, %v3437_v54  ;;  %v3595_v11 = vpop.permute.xlu2 %3594 }
 0xe26   : > { %v3447_v6 = vpop.permute.xlu0 %3446 }
 0xe27   : > { %v3452_v16 = vsel %vm794_vm1, %v3439_v34, %v3447_v6  ;;  %v3456_v25 = vsel %vm794_vm1, %v3447_v6, %v3439_v34  ;;  %v3589_v2 = vpop.permute.xlu2 %3588 }
 0xe2e   : > { %v3441_v50 = vpop.permute.xlu1 %3440 }
 0xe2f   : > { %v3583_v45 = vpop.permute.xlu2 %3582 }
 0xe30   : > { %v3449_v9 = vpop.permute.xlu0 %3448 }
 0xe31   : > { %v3453_v7 = vsel %vm794_vm1, %v3441_v50, %v3449_v9  ;;  %v3457_v26 = vsel %vm794_vm1, %v3449_v9, %v3441_v50 }
 0xe32   : > { %5352 = vmatpush.msk.msrb.mxu2 %vm538_vm2, %v3457_v26  ;;  %5360 = vmatpush.msk.msrb.mxu3 %vm539_vm3, %v3453_v7 }
 0xe34   : > { %5353 = vmatpush.msk.msrb.mxu2 %vm538_vm2, %v3456_v25  ;;  %5361 = vmatpush.msk.msrb.mxu3 %vm539_vm3, %v3452_v16 }
 0xe36   : > { %5354 = vmatpush.msk.msrb.mxu2 %vm538_vm2, %v3455_v3  ;;  %5362 = vmatpush.msk.msrb.mxu3 %vm539_vm3, %v3451_v28 }
 0xe38   : > { %v3435_v39 = vpop.permute.xlu0 %3434  ;;  %v3443_v46 = vpop.permute.xlu1 %3442 }
 0xe39   : > { %v3450_v33 = vsel %vm794_vm1, %v3435_v39, %v3443_v46  ;;  %v3454_v58 = vsel %vm794_vm1, %v3443_v46, %v3435_v39 }
 0xe3a   : > { %5355 = vmatpush.msk.msrb.mxu2 %vm538_vm2, %v3454_v58  ;;  %5363 = vmatpush.msk.msrb.mxu3 %vm539_vm3, %v3450_v33 }
 0xe3b   : > { %5356 = vmatmul.msk.f32.vlgmr.msrb.gmra.mxu2 %vm815_vm4, %v5799_v22  ;;  %5364 = vmatmul.msk.f32.vlgmr.msrb.gmra.mxu3 %vm815_vm4, %v5799_v22 }
 0xe40   : > { %v3585_v60 = vpop.permute.xlu0 %3584  ;;  %v3587_v5 = vpop.permute.xlu1 %3586 }
 0xe41   : > { %v3600_v55 = vsel %vm540_vm6, %v3587_v5, %v3595_v11  ;;  %v3604_v57 = vsel %vm540_vm6, %v3595_v11, %v3587_v5 }
 0xe42   : > { %v3541_v0 = vpop.f32.mrf.mxu0 }
 0xe43   : > { %5357 = vmatmul.msk.f32.gmra.mxu2 %vm815_vm4, %v5800_v8  ;;  %5365 = vmatmul.msk.f32.gmra.mxu3 %vm815_vm4, %v5800_v8 }
 0xe45   : > { %v3570_v21 = vpop.f32.mrf.mxu1 }
 0xe48   : > { %v3597_v20 = vpop.permute.xlu0 %3596  ;;  %v3593_v36 = vpop.permute.xlu1 %3592 }
 0xe49   : > { %v3601_v43 = vsel %vm540_vm6, %v3589_v2, %v3597_v20  ;;  %v3605_v19 = vsel %vm540_vm6, %v3597_v20, %v3589_v2  ;;  %v3599_v51 = vsel %vm540_vm6, %v3585_v60, %v3593_v36  ;;  %v3603_v47 = vsel %vm540_vm6, %v3593_v36, %v3585_v60 }
 0xe4a   : > { %5376 = vmatpush.msk.msra.mxu2 %vm540_vm6, %v3601_v43  ;;  %5384 = vmatpush.msk.msra.mxu3 %vm541_vm5, %v3605_v19  ;;  %v3544_v6 = vpop.f32.mrf.mxu0 }
 0xe4b   : > { %5358 = vmatmul.msk.f32.gmra.mxu2 %vm815_vm4, %v5801_v35  ;;  %5366 = vmatmul.msk.f32.gmra.mxu3 %vm815_vm4, %v5801_v35 }
 0xe4c   : > { %5377 = vmatpush.msk.msra.mxu2 %vm540_vm6, %v3600_v55  ;;  %5385 = vmatpush.msk.msra.mxu3 %vm541_vm5, %v3604_v57 }
 0xe4d   : > { %v3573_v34 = vpop.f32.mrf.mxu1 }
 0xe4e   : > { %5378 = vmatpush.msk.msra.mxu2 %vm540_vm6, %v3599_v51  ;;  %5386 = vmatpush.msk.msra.mxu3 %vm541_vm5, %v3603_v47 }
 0xe50   : > { %v3591_v10 = vpop.permute.xlu0 %3590 }
 0xe51   : > { %v3598_v32 = vsel %vm540_vm6, %v3583_v45, %v3591_v10  ;;  %v3602_v62 = vsel %vm540_vm6, %v3591_v10, %v3583_v45 }
 0xe52   : > { %5379 = vmatpush.msk.msra.mxu2 %vm540_vm6, %v3598_v32  ;;  %5387 = vmatpush.msk.msra.mxu3 %vm541_vm5, %v3602_v62  ;;  %v3547_v25 = vpop.f32.mrf.mxu0 }
 0xe53   : > { %5359 = vmatmul.msk.f32.gmra.mxu2 %vm815_vm4, %v5802_v4  ;;  %5367 = vmatmul.msk.f32.gmra.mxu3 %vm815_vm4, %v5802_v4 }
 0xe55   : > { %v3576_v28 = vpop.f32.mrf.mxu1 }
 0xe5a   : > { %v3550_v8 = vpop.f32.mrf.mxu0 }
 0xe5b   : > { %5380 = vmatmul.msk.f32.vlgmr.msra.gmra.mxu2 %vm815_vm4, %v5803_v56  ;;  %5388 = vmatmul.msk.f32.vlgmr.msra.gmra.mxu3 %vm815_vm4, %v5803_v56 }
 0xe5d   : > { %v3579_v2 = vpop.f32.mrf.mxu1 }
 0xe63   : > { %5381 = vmatmul.msk.f32.gmra.mxu2 %vm815_vm4, %v5804_v29  ;;  %5389 = vmatmul.msk.f32.gmra.mxu3 %vm815_vm4, %v5804_v29 }
 0xe6b   : > { %5382 = vmatmul.msk.f32.gmra.mxu2 %vm815_vm4, %v5805_v42  ;;  %5390 = vmatmul.msk.f32.gmra.mxu3 %vm815_vm4, %v5805_v42 }
 0xe73   : > { %5383 = vmatmul.msk.f32.gmra.mxu2 %vm815_vm4, %v5806_v40  ;;  %5391 = vmatmul.msk.f32.gmra.mxu3 %vm815_vm4, %v5806_v40  ;;  %v5807_v40 = vld [vmem:[#allocation8 + $0x20] sm:$0xff] }
 0xebe   : > { %v3483_v15 = vpop.f32.mrf.mxu2  ;;  %v3512_v41 = vpop.f32.mrf.mxu3 }
 0xebf   : > { %v3571_v47 = vadd.f32 %v3570_v21, %v3512_v41  ;;  %v3542_v62 = vadd.f32 %v3541_v0, %v3483_v15  ;;  %v5808_v15 = vld [vmem:[#allocation8 + $0x28] sm:$0xff]  ;;  %v5809_v41 = vld [vmem:[#allocation8 + $0x30] sm:$0xff] }
 0xec6   : > { %v3486_v23 = vpop.f32.mrf.mxu2  ;;  %v3515_v14 = vpop.f32.mrf.mxu3 }
 0xec7   : > { %v3545_v7 = vadd.f32 %v3544_v6, %v3486_v23  ;;  %v3574_v20 = vadd.f32 %v3573_v34, %v3515_v14  ;;  %v5810_v23 = vld [vmem:[#allocation8 + $0x38] sm:$0xff] }
 0xece   : > { %v3489_v17 = vpop.f32.mrf.mxu2  ;;  %v3518_v13 = vpop.f32.mrf.mxu3 }
 0xecf   : > { %v3548_v39 = vadd.f32 %v3547_v25, %v3489_v17  ;;  %v3577_v46 = vadd.f32 %v3576_v28, %v3518_v13  ;;  %v5811_v28 = vld [vmem:[#allocation8] sm:$0xff] }
 0xed6   : > { %v3492_v27 = vpop.f32.mrf.mxu2  ;;  %v3521_v54 = vpop.f32.mrf.mxu3 }
 0xed7   : > { %v3551_v43 = vadd.f32 %v3550_v8, %v3492_v27  ;;  %v3580_v19 = vadd.f32 %v3579_v2, %v3521_v54  ;;  %v5813_v2 = vld [vmem:[#allocation8 + $0x10] sm:$0xff] }
 0xede   : > { %v3631_v50 = vpop.f32.mrf.mxu2  ;;  %v3660_v9 = vpop.f32.mrf.mxu3 }
 0xedf   : > { %v3673_v4 = vadd.f32 %v3660_v9, %v3571_v47  ;;  %v3672_v56 = vadd.f32 %v3631_v50, %v3542_v62  ;;  %v5815_v47 = vld [vmem:[#allocation8 + $0x40] sm:$0xff] }
 0xee1   : > { %v3681_v29 = vadd.f32 %v3673_v4, %v6760_v59  ;;  %v3680_v42 = vadd.f32 %v3672_v56, %v6760_v59 }
 0xee6   : > { %v3634_v26 = vpop.f32.mrf.mxu2  ;;  %v3663_v48 = vpop.f32.mrf.mxu3 }
 0xee7   : > { %v3674_v16 = vadd.f32 %v3634_v26, %v3545_v7  ;;  %v3675_v36 = vadd.f32 %v3663_v48, %v3574_v20 }
 0xee9   : > { %v3682_v3 = vadd.f32 %v3674_v16, %v6742_v18  ;;  %v3683_v32 = vadd.f32 %v3675_v36, %v6742_v18 }
 0xeeb   : > { %3690 = vrot.lane.b32.xlu2 %v3682_v3, %s6064_s25 }
 0xeee   : > { %v3637_v33 = vpop.f32.mrf.mxu2  ;;  %v3666_v58 = vpop.f32.mrf.mxu3 }
 0xeef   : > { %v3676_v11 = vadd.f32 %v3637_v33, %v3548_v39  ;;  %v3677_v22 = vadd.f32 %v3666_v58, %v3577_v46  ;;  %v5812_v33 = vld [vmem:[#allocation8 + $0x8] sm:$0xff] }
 0xef1   : > { %v3684_v60 = vadd.f32 %v3676_v11, %v6746_v30  ;;  %v3685_v5 = vadd.f32 %v3677_v22, %v6746_v30 }
 0xef3   : > { %3700 = vrot.lane.b32.xlu1 %v3685_v5, %s6064_s25  ;;  %3692 = vrot.lane.b32.xlu0 %v3684_v60, %s6064_s25 }
 0xef6   : > { %v3640_v55 = vpop.f32.mrf.mxu2  ;;  %v3669_v57 = vpop.f32.mrf.mxu3 }
 0xef7   : > { %v3678_v35 = vadd.f32 %v3640_v55, %v3551_v43  ;;  %v3679_v51 = vadd.f32 %v3669_v57, %v3580_v19 }
 0xef9   : > { %v3686_v45 = vadd.f32 %v3678_v35, %v6752_v38  ;;  %v3687_v10 = vadd.f32 %v3679_v51, %v6752_v38  ;;  %v5814_v51 = vld [vmem:[#allocation8 + $0x18] sm:$0xff] }
 0xefb   : > { %3819 = vmatpush.msrb.mxu3 %v3687_v10  ;;  %3702 = vrot.lane.b32.xlu2 %v3687_v10, %s6064_s25 }
 0xefc   : > { %3698 = vrot.lane.b32.xlu0 %v3683_v32, %s6064_s25  ;;  %3694 = vrot.lane.b32.xlu1 %v3686_v45, %s6064_s25 }
 0xefd   : > { %3790 = vmatpush.msrb.mxu2 %v3686_v45  ;;  %3820 = vmatpush.msrb.mxu3 %v3685_v5 }
 0xeff   : > { %3791 = vmatpush.msrb.mxu2 %v3684_v60  ;;  %3821 = vmatpush.msrb.mxu3 %v3683_v32 }
 0xf01   : > { %3792 = vmatpush.msrb.mxu2 %v3682_v3  ;;  %3822 = vmatpush.msrb.mxu3 %v3681_v29 }
 0xf02   : > { %5412 = vmatmul.msk.f32.vlgmr.msrb.gmra.mxu3 %vm815_vm4, %v5807_v40 }
 0xf03   : > { %3793 = vmatpush.msrb.mxu2 %v3680_v42  ;;  %3696 = vrot.lane.b32.xlu2 %v3681_v29, %s6064_s25 }
 0xf04   : > { %3848 = vrot.lane.b32.xlu0 %v3685_v5, %s6065_s27  ;;  %3688 = vrot.lane.b32.xlu1 %v3680_v42, %s6064_s25 }
 0xf05   : > { %5408 = vmatmul.msk.f32.vlgmr.msrb.gmra.mxu2 %vm815_vm4, %v5807_v40 }
 0xf0a   : > { %5413 = vmatmul.msk.f32.gmra.mxu3 %vm815_vm4, %v5808_v15 }
 0xf0b   : > { %3840 = vrot.lane.b32.xlu2 %v3684_v60, %s6065_s27 }
 0xf0c   : > { %3842 = vrot.lane.b32.xlu0 %v3686_v45, %s6065_s27  ;;  %3838 = vrot.lane.b32.xlu1 %v3682_v3, %s6065_s27  ;;  %v5816_v45 = vld [vmem:[#allocation8 + $0x48] sm:$0xff] }
 0xf0d   : > { %5409 = vmatmul.msk.f32.gmra.mxu2 %vm815_vm4, %v5808_v15 }
 0xf12   : > { %5414 = vmatmul.msk.f32.gmra.mxu3 %vm815_vm4, %v5809_v41 }
 0xf13   : > { %3846 = vrot.lane.b32.xlu2 %v3683_v32, %s6065_s27  ;;  %v5818_v32 = vld [vmem:[#allocation8 + $0x58] sm:$0xff] }
 0xf14   : > { %3836 = vrot.lane.b32.xlu0 %v3680_v42, %s6065_s27  ;;  %3850 = vrot.lane.b32.xlu1 %v3687_v10, %s6065_s27  ;;  %v5817_v10 = vld [vmem:[#allocation8 + $0x50] sm:$0xff] }
 0xf15   : > { %5410 = vmatmul.msk.f32.gmra.mxu2 %vm815_vm4, %v5809_v41 }
 0xf1a   : > { %5415 = vmatmul.msk.f32.gmra.mxu3 %vm815_vm4, %v5810_v23 }
 0xf1c   : > { %3844 = vrot.lane.b32.xlu1 %v3681_v29, %s6065_s27 }
 0xf1d   : > { %5411 = vmatmul.msk.f32.gmra.mxu2 %vm815_vm4, %v5810_v23 }
 0xf45   : > { %v3691_v14 = vpop.permute.xlu2 %3690 }
 0xf55   : > { %v3703_v0 = vpop.permute.xlu2 %3702 }
 0xf5d   : > { %v3697_v26 = vpop.permute.xlu2 %3696 }
 0xf65   : > { %v3701_v17 = vpop.permute.xlu1 %3700  ;;  %v3693_v13 = vpop.permute.xlu0 %3692 }
 0xf66   : > { %v3706_v34 = vsel %vm1582_vm14, %v3693_v13, %v3701_v17  ;;  %v3710_v50 = vsel %vm1582_vm14, %v3701_v17, %v3693_v13  ;;  %v3841_v46 = vpop.permute.xlu2 %3840 }
 0xf6e   : > { %v3695_v21 = vpop.permute.xlu1 %3694  ;;  %v3699_v6 = vpop.permute.xlu0 %3698 }
 0xf6f   : > { %v3707_v27 = vsel %vm1582_vm14, %v3695_v21, %v3703_v0  ;;  %v3711_v54 = vsel %vm1582_vm14, %v3703_v0, %v3695_v21  ;;  %v3705_v9 = vsel %vm1582_vm14, %v3691_v14, %v3699_v6  ;;  %v3709_v7 = vsel %vm1582_vm14, %v3699_v6, %v3691_v14  ;;  %v3847_v20 = vpop.permute.xlu2 %3846 }
 0xf70   : > { %5392 = vmatpush.msk.msrb.mxu0 %vm8485_vm15, %v3711_v54  ;;  %5400 = vmatpush.msk.msrb.mxu1 %vm8486_vm8, %v3707_v27  ;;  %vm8494_vm15 = vmmov %vm8493_vm7 }
 0xf71   : > { %vm8495_vm8 = vmmov %vm8493_vm7 }
 0xf72   : > { %5393 = vmatpush.msk.msrb.mxu0 %vm8487_vm9, %v3710_v50  ;;  %5401 = vmatpush.msk.msrb.mxu1 %vm8488_vm0, %v3706_v34  ;;  %vm8496_vm9 = vcmp.lt.s32.totalorder %v6366_v52, 126  ;;  %vm8497_vm0 = vmmov %vm8493_vm7 }
 0xf74   : > { %5394 = vmatpush.msk.msrb.mxu0 %vm8489_vm10, %v3709_v7  ;;  %5402 = vmatpush.msk.msrb.mxu1 %vm8490_vm13, %v3705_v9  ;;  %vm8498_vm10 = vmmov %vm8497_vm0 }
 0xf75   : > { %vm8499_vm13 = vmmov %vm8497_vm0 }
 0xf76   : > { %v3689_v48 = vpop.permute.xlu1 %3688  ;;  %v3849_v3 = vpop.permute.xlu0 %3848 }
 0xf77   : > { %v3704_v16 = vsel %vm1582_vm14, %v3689_v48, %v3697_v26  ;;  %v3708_v25 = vsel %vm1582_vm14, %v3697_v26, %v3689_v48  ;;  %v3854_v5 = vsel %vm8497_vm0, %v3841_v46, %v3849_v3  ;;  %v3858_v8 = vsel %vm8498_vm10, %v3849_v3, %v3841_v46  ;;  %vm8506_vm10 = vmmov %vm8497_vm0 }
 0xf78   : > { %5395 = vmatpush.msk.msrb.mxu0 %vm8491_vm12, %v3708_v25  ;;  %5403 = vmatpush.msk.msrb.mxu1 %vm8492_vm11, %v3704_v16  ;;  %vm8500_vm12 = vmmov %vm8496_vm9 }
 0xf79   : > { %5396 = vmatmul.msk.f32.vlgmr.msrb.gmra.mxu0 %vm815_vm4, %v5811_v28  ;;  %5404 = vmatmul.msk.f32.vlgmr.msrb.gmra.mxu1 %vm815_vm4, %v5811_v28  ;;  %vm8501_vm11 = vmmov %vm8497_vm0 }
 0xf7e   : > { %v3839_v39 = vpop.permute.xlu1 %3838  ;;  %v3843_v58 = vpop.permute.xlu0 %3842 }
 0xf7f   : > { %v3853_v43 = vsel %vm8501_vm11, %v3839_v39, %v3847_v20 }
 0xf81   : > { %5397 = vmatmul.msk.f32.gmra.mxu0 %vm815_vm4, %v5812_v33  ;;  %5405 = vmatmul.msk.f32.gmra.mxu1 %vm815_vm4, %v5812_v33 }
 0xf85   : > { %v3824_v15 = vpop.f32.mrf.mxu3 }
 0xf86   : > { %v3851_v11 = vpop.permute.xlu1 %3850  ;;  %v3837_v36 = vpop.permute.xlu0 %3836 }
 0xf87   : > { %v3855_v22 = vsel %vm8493_vm7, %v3843_v58, %v3851_v11  ;;  %v3859_v60 = vsel %vm8494_vm15, %v3851_v11, %v3843_v58  ;;  %vm8502_vm7 = vmmov %vm8497_vm0 }
 0xf88   : > { %5416 = vmatpush.msk.msra.mxu0 %vm8495_vm8, %v3855_v22  ;;  %5424 = vmatpush.msk.msra.mxu1 %vm8496_vm9, %v3859_v60  ;;  %v3857_v19 = vsel %vm8502_vm7, %v3847_v20, %v3839_v39  ;;  %vm8503_vm15 = vmmov %vm8497_vm0  ;;  %v3795_v41 = vpop.f32.mrf.mxu2 }
 0xf89   : > { %5398 = vmatmul.msk.f32.gmra.mxu0 %vm815_vm4, %v5813_v2  ;;  %5406 = vmatmul.msk.f32.gmra.mxu1 %vm815_vm4, %v5813_v2  ;;  %vm8504_vm8 = vmmov %vm8496_vm9 }
 0xf8a   : > { %5417 = vmatpush.msk.msra.mxu0 %vm8499_vm13, %v3854_v5  ;;  %5425 = vmatpush.msk.msra.mxu1 %vm8500_vm12, %v3858_v8  ;;  %vm8505_vm9 = vmmov %vm8497_vm0 }
 0xf8b   : > { %vm8507_vm13 = vmmov %vm8504_vm8 }
 0xf8c   : > { %5418 = vmatpush.msk.msra.mxu0 %vm8503_vm15, %v3853_v43  ;;  %5426 = vmatpush.msk.msra.mxu1 %vm8504_vm8, %v3857_v19 }
 0xf8d   : > { %v3827_v17 = vpop.f32.mrf.mxu3 }
 0xf8e   : > { %v3845_v55 = vpop.permute.xlu1 %3844 }
 0xf8f   : > { %v3852_v57 = vsel %vm8505_vm9, %v3837_v36, %v3845_v55  ;;  %v3856_v35 = vsel %vm8497_vm0, %v3845_v55, %v3837_v36 }
 0xf90   : > { %5419 = vmatpush.msk.msra.mxu0 %vm8506_vm10, %v3852_v57  ;;  %5427 = vmatpush.msk.msra.mxu1 %vm8507_vm13, %v3856_v35  ;;  %v3798_v13 = vpop.f32.mrf.mxu2 }
 0xf91   : > { %5399 = vmatmul.msk.f32.gmra.mxu0 %vm815_vm4, %v5814_v51  ;;  %5407 = vmatmul.msk.f32.gmra.mxu1 %vm815_vm4, %v5814_v51 }
 0xf95   : > { %v3830_v50 = vpop.f32.mrf.mxu3 }
 0xf98   : > { %v3801_v9 = vpop.f32.mrf.mxu2 }
 0xf99   : > { %5420 = vmatmul.msk.f32.vlgmr.msra.gmra.mxu0 %vm815_vm4, %v5815_v47  ;;  %5428 = vmatmul.msk.f32.vlgmr.msra.gmra.mxu1 %vm815_vm4, %v5815_v47 }
 0xf9d   : > { %v3833_v33 = vpop.f32.mrf.mxu3 }
 0xfa0   : > { %v3804_v58 = vpop.f32.mrf.mxu2 }
 0xfa1   : > { %5421 = vmatmul.msk.f32.gmra.mxu0 %vm815_vm4, %v5816_v45  ;;  %5429 = vmatmul.msk.f32.gmra.mxu1 %vm815_vm4, %v5816_v45 }
 0xfa9   : > { %5422 = vmatmul.msk.f32.gmra.mxu0 %vm815_vm4, %v5817_v10  ;;  %5430 = vmatmul.msk.f32.gmra.mxu1 %vm815_vm4, %v5817_v10 }
 0xfb1   : > { %5423 = vmatmul.msk.f32.gmra.mxu0 %vm815_vm4, %v5818_v32  ;;  %5431 = vmatmul.msk.f32.gmra.mxu1 %vm815_vm4, %v5818_v32  ;;  %v5819_v32 = vld [vmem:[#allocation5 + $0x20] sm:$0xff] }
 0xff6   : > { %v3737_v62 = vpop.f32.mrf.mxu0  ;;  %v3766_v4 = vpop.f32.mrf.mxu1 }
 0xff7   : > { %v3825_v19 = vadd.f32 %v3824_v15, %v3766_v4  ;;  %v3796_v57 = vadd.f32 %v3795_v41, %v3737_v62  ;;  %v5820_v62 = vld [vmem:[#allocation5 + $0x28] sm:$0xff]  ;;  %v5821_v4 = vld [vmem:[#allocation5 + $0x30] sm:$0xff] }
 0xffe   : > { %v3740_v56 = vpop.f32.mrf.mxu0  ;;  %v3769_v29 = vpop.f32.mrf.mxu1 }
 0xfff   : > { %v3799_v27 = vadd.f32 %v3798_v13, %v3740_v56  ;;  %v3828_v11 = vadd.f32 %v3827_v17, %v3769_v29  ;;  %v5822_v56 = vld [vmem:[#allocation5 + $0x38] sm:$0xff] }
0x1006   : > { %v3743_v42 = vpop.f32.mrf.mxu0  ;;  %v3772_v40 = vpop.f32.mrf.mxu1 }
0x1007   : > { %v3831_v26 = vadd.f32 %v3830_v50, %v3772_v40  ;;  %v3802_v48 = vadd.f32 %v3801_v9, %v3743_v42 }
0x100e   : > { %v3746_v23 = vpop.f32.mrf.mxu0  ;;  %v3775_v14 = vpop.f32.mrf.mxu1 }
0x100f   : > { %v3834_v22 = vadd.f32 %v3833_v33, %v3775_v14  ;;  %v3805_v60 = vadd.f32 %v3804_v58, %v3746_v23  ;;  %v5824_v33 = vld [vmem:[#allocation5 + $0x8] sm:$0xff] }
0x1016   : > { %v3885_v0 = vpop.f32.mrf.mxu0  ;;  %v3914_v21 = vpop.f32.mrf.mxu1 }
0x1017   : > { %v3927_v51 = vadd.f32 %v3914_v21, %v3825_v19  ;;  %v3926_v47 = vadd.f32 %v3885_v0, %v3796_v57  ;;  %v5827_v19 = vld [vmem:[#allocation5 + $0x40] sm:$0xff]  ;;  %v5830_v57 = vld [vmem:[#allocation5 + $0x58] sm:$0xff] }
0x1019   : > { %v3935_v45 = vadd.f32 %v3927_v51, %v6891_v61  ;;  %v3934_v10 = vadd.f32 %v3926_v47, %v6891_v61 }
0x101e   : > { %v3888_v54 = vpop.f32.mrf.mxu0  ;;  %v3917_v6 = vpop.f32.mrf.mxu1 }
0x101f   : > { %v3928_v34 = vadd.f32 %v3888_v54, %v3799_v27  ;;  %v3929_v5 = vadd.f32 %v3917_v6, %v3828_v11 }
0x1021   : > { %v3936_v7 = vadd.f32 %v3928_v34, %v6879_v12  ;;  %v3937_v35 = vadd.f32 %v3929_v5, %v6879_v12 }
0x1023   : > { %3944 = vrot.lane.b32.xlu0 %v3936_v7, %s6061_s19 }
0x1026   : > { %v3891_v16 = vpop.f32.mrf.mxu0  ;;  %v3920_v25 = vpop.f32.mrf.mxu1 }
0x1027   : > { %v3930_v28 = vadd.f32 %v3891_v16, %v3802_v48  ;;  %v3931_v3 = vadd.f32 %v3920_v25, %v3831_v26  ;;  %v5823_v26 = vld [vmem:[#allocation5] sm:$0xff] }
0x1029   : > { %v3938_v39 = vadd.f32 %v3930_v28, %v6882_v44  ;;  %v3939_v46 = vadd.f32 %v3931_v3, %v6882_v44 }
0x102b   : > { %3954 = vrot.lane.b32.xlu2 %v3939_v46, %s6061_s19  ;;  %3946 = vrot.lane.b32.xlu1 %v3938_v39, %s6061_s19 }
0x102e   : > { %v3894_v8 = vpop.f32.mrf.mxu0  ;;  %v3923_v2 = vpop.f32.mrf.mxu1 }
0x102f   : > { %v3932_v20 = vadd.f32 %v3894_v8, %v3805_v60  ;;  %v3933_v43 = vadd.f32 %v3923_v2, %v3834_v22 }
0x1031   : > { %v3940_v36 = vadd.f32 %v3932_v20, %v6886_v31  ;;  %v3941_v55 = vadd.f32 %v3933_v43, %v6886_v31  ;;  %v5825_v20 = vld [vmem:[#allocation5 + $0x10] sm:$0xff]  ;;  %v5826_v43 = vld [vmem:[#allocation5 + $0x18] sm:$0xff] }
0x1033   : > { %4073 = vmatpush.msrb.mxu1 %v3941_v55  ;;  %3948 = vrot.lane.b32.xlu2 %v3940_v36, %s6061_s19 }
0x1034   : > { %4044 = vmatpush.msrb.mxu0 %v3940_v36  ;;  %3952 = vrot.lane.b32.xlu1 %v3937_v35, %s6061_s19 }
0x1035   : > { %3956 = vrot.lane.b32.xlu0 %v3941_v55, %s6061_s19  ;;  %4074 = vmatpush.msrb.mxu1 %v3939_v46 }
0x1036   : > { %4045 = vmatpush.msrb.mxu0 %v3938_v39 }
0x1037   : > { %4075 = vmatpush.msrb.mxu1 %v3937_v35 }
0x1038   : > { %4046 = vmatpush.msrb.mxu0 %v3936_v7 }
0x1039   : > { %4076 = vmatpush.msrb.mxu1 %v3935_v45 }
0x103a   : > { %4047 = vmatpush.msrb.mxu0 %v3934_v10  ;;  %5452 = vmatmul.msk.f32.vlgmr.msrb.gmra.mxu1 %vm815_vm4, %v5819_v32 }
0x103b   : > { %3942 = vrot.lane.b32.xlu2 %v3934_v10, %s6061_s19  ;;  %5448 = vmatmul.msk.f32.vlgmr.msrb.gmra.mxu0 %vm815_vm4, %v5819_v32 }
0x103c   : > { %4102 = vrot.lane.b32.xlu1 %v3939_v46, %s6062_s17 }
0x103d   : > { %3950 = vrot.lane.b32.xlu0 %v3935_v45, %s6061_s19 }
0x1042   : > { %5453 = vmatmul.msk.f32.gmra.mxu1 %vm815_vm4, %v5820_v62 }
0x1043   : > { %4092 = vrot.lane.b32.xlu2 %v3936_v7, %s6062_s17  ;;  %5449 = vmatmul.msk.f32.gmra.mxu0 %vm815_vm4, %v5820_v62 }
0x1044   : > { %4096 = vrot.lane.b32.xlu1 %v3940_v36, %s6062_s17  ;;  %v5828_v36 = vld [vmem:[#allocation5 + $0x48] sm:$0xff] }
0x1045   : > { %4094 = vrot.lane.b32.xlu0 %v3938_v39, %s6062_s17 }
0x104a   : > { %5454 = vmatmul.msk.f32.gmra.mxu1 %vm815_vm4, %v5821_v4 }
0x104b   : > { %4104 = vrot.lane.b32.xlu2 %v3941_v55, %s6062_s17  ;;  %5450 = vmatmul.msk.f32.gmra.mxu0 %vm815_vm4, %v5821_v4  ;;  %v5829_v55 = vld [vmem:[#allocation5 + $0x50] sm:$0xff] }
0x104c   : > { %4090 = vrot.lane.b32.xlu1 %v3934_v10, %s6062_s17 }
0x104d   : > { %4100 = vrot.lane.b32.xlu0 %v3937_v35, %s6062_s17 }
0x1052   : > { %5455 = vmatmul.msk.f32.gmra.mxu1 %vm815_vm4, %v5822_v56 }
0x1053   : > { %4098 = vrot.lane.b32.xlu2 %v3935_v45, %s6062_s17  ;;  %5451 = vmatmul.msk.f32.gmra.mxu0 %vm815_vm4, %v5822_v56 }
0x1085   : > { %v3955_v29 = vpop.permute.xlu2 %3954 }
0x108d   : > { %v3949_v42 = vpop.permute.xlu2 %3948 }
0x1095   : > { %v3945_v15 = vpop.permute.xlu0 %3944  ;;  %v3943_v41 = vpop.permute.xlu2 %3942 }
0x109d   : > { %v3947_v40 = vpop.permute.xlu1 %3946  ;;  %v4093_v27 = vpop.permute.xlu2 %4092 }
0x109e   : > { %v3960_v0 = vsel %vm794_vm1, %v3947_v40, %v3955_v29  ;;  %v3964_v21 = vsel %vm794_vm1, %v3955_v29, %v3947_v40 }
0x10a5   : > { %v4105_v48 = vpop.permute.xlu2 %4104 }
0x10a6   : > { %v3953_v23 = vpop.permute.xlu1 %3952 }
0x10a7   : > { %v3957_v14 = vpop.permute.xlu0 %3956  ;;  %v3959_v54 = vsel %vm794_vm1, %v3945_v15, %v3953_v23  ;;  %v3963_v6 = vsel %vm794_vm1, %v3953_v23, %v3945_v15 }
0x10a8   : > { %v3961_v17 = vsel %vm794_vm1, %v3949_v42, %v3957_v14  ;;  %v3965_v13 = vsel %vm794_vm1, %v3957_v14, %v3949_v42 }
0x10a9   : > { %5432 = vmatpush.msk.msra.mxu2 %vm538_vm2, %v3965_v13  ;;  %5440 = vmatpush.msk.msra.mxu3 %vm539_vm3, %v3961_v17 }
0x10ab   : > { %5433 = vmatpush.msk.msra.mxu2 %vm538_vm2, %v3964_v21  ;;  %5441 = vmatpush.msk.msra.mxu3 %vm539_vm3, %v3960_v0 }
0x10ad   : > { %5434 = vmatpush.msk.msra.mxu2 %vm538_vm2, %v3963_v6  ;;  %5442 = vmatpush.msk.msra.mxu3 %vm539_vm3, %v3959_v54  ;;  %v4099_v5 = vpop.permute.xlu2 %4098 }
0x10ae   : > { %v4103_v34 = vpop.permute.xlu1 %4102 }
0x10af   : > { %v3951_v50 = vpop.permute.xlu0 %3950 }
0x10b0   : > { %v3958_v9 = vsel %vm794_vm1, %v3943_v41, %v3951_v50  ;;  %v3962_v7 = vsel %vm794_vm1, %v3951_v50, %v3943_v41 }
0x10b1   : > { %5435 = vmatpush.msk.msra.mxu2 %vm538_vm2, %v3962_v7  ;;  %5443 = vmatpush.msk.msra.mxu3 %vm539_vm3, %v3958_v9 }
0x10b2   : > { %5436 = vmatmul.msk.f32.vlgmr.msra.gmra.mxu2 %vm815_vm4, %v5823_v26  ;;  %5444 = vmatmul.msk.f32.vlgmr.msra.gmra.mxu3 %vm815_vm4, %v5823_v26 }
0x10b6   : > { %v4097_v16 = vpop.permute.xlu1 %4096 }
0x10b7   : > { %v4109_v25 = vsel %vm540_vm6, %v4097_v16, %v4105_v48  ;;  %v4113_v28 = vsel %vm540_vm6, %v4105_v48, %v4097_v16  ;;  %v4095_v3 = vpop.permute.xlu0 %4094  ;;  %v4078_v62 = vpop.f32.mrf.mxu1 }
0x10b8   : > { %5456 = vmatpush.msk.msrb.mxu2 %vm540_vm6, %v4109_v25  ;;  %5464 = vmatpush.msk.msrb.mxu3 %vm541_vm5, %v4113_v28  ;;  %v4108_v39 = vsel %vm540_vm6, %v4095_v3, %v4103_v34  ;;  %v4112_v46 = vsel %vm540_vm6, %v4103_v34, %v4095_v3  ;;  %v4049_v4 = vpop.f32.mrf.mxu0 }
0x10ba   : > { %5437 = vmatmul.msk.f32.gmra.mxu2 %vm815_vm4, %v5824_v33  ;;  %5445 = vmatmul.msk.f32.gmra.mxu3 %vm815_vm4, %v5824_v33 }
0x10bb   : > { %5457 = vmatpush.msk.msrb.mxu2 %vm540_vm6, %v4108_v39  ;;  %5465 = vmatpush.msk.msrb.mxu3 %vm541_vm5, %v4112_v46 }
0x10be   : > { %v4091_v11 = vpop.permute.xlu1 %4090 }
0x10bf   : > { %v4101_v58 = vpop.permute.xlu0 %4100  ;;  %v4106_v8 = vsel %vm540_vm6, %v4091_v11, %v4099_v5  ;;  %v4110_v2 = vsel %vm540_vm6, %v4099_v5, %v4091_v11  ;;  %v4081_v42 = vpop.f32.mrf.mxu1 }
0x10c0   : > { %v4107_v22 = vsel %vm540_vm6, %v4093_v27, %v4101_v58  ;;  %v4111_v60 = vsel %vm540_vm6, %v4101_v58, %v4093_v27  ;;  %v4052_v40 = vpop.f32.mrf.mxu0 }
0x10c1   : > { %5458 = vmatpush.msk.msrb.mxu2 %vm540_vm6, %v4107_v22  ;;  %5466 = vmatpush.msk.msrb.mxu3 %vm541_vm5, %v4111_v60 }
0x10c2   : > { %5438 = vmatmul.msk.f32.gmra.mxu2 %vm815_vm4, %v5825_v20  ;;  %5446 = vmatmul.msk.f32.gmra.mxu3 %vm815_vm4, %v5825_v20 }
0x10c3   : > { %5459 = vmatpush.msk.msrb.mxu2 %vm540_vm6, %v4106_v8  ;;  %5467 = vmatpush.msk.msrb.mxu3 %vm541_vm5, %v4110_v2 }
0x10c7   : > { %v4084_v0 = vpop.f32.mrf.mxu1 }
0x10c8   : > { %v4055_v21 = vpop.f32.mrf.mxu0 }
0x10ca   : > { %5439 = vmatmul.msk.f32.gmra.mxu2 %vm815_vm4, %v5826_v43  ;;  %5447 = vmatmul.msk.f32.gmra.mxu3 %vm815_vm4, %v5826_v43 }
0x10cf   : > { %v4087_v28 = vpop.f32.mrf.mxu1 }
0x10d0   : > { %v4058_v3 = vpop.f32.mrf.mxu0 }
0x10d2   : > { %5460 = vmatmul.msk.f32.vlgmr.msrb.gmra.mxu2 %vm815_vm4, %v5827_v19  ;;  %5468 = vmatmul.msk.f32.vlgmr.msrb.gmra.mxu3 %vm815_vm4, %v5827_v19 }
0x10da   : > { %5461 = vmatmul.msk.f32.gmra.mxu2 %vm815_vm4, %v5828_v36  ;;  %5469 = vmatmul.msk.f32.gmra.mxu3 %vm815_vm4, %v5828_v36 }
0x10e2   : > { %5462 = vmatmul.msk.f32.gmra.mxu2 %vm815_vm4, %v5829_v55  ;;  %5470 = vmatmul.msk.f32.gmra.mxu3 %vm815_vm4, %v5829_v55 }
0x10ea   : > { %5463 = vmatmul.msk.f32.gmra.mxu2 %vm815_vm4, %v5830_v57  ;;  %5471 = vmatmul.msk.f32.gmra.mxu3 %vm815_vm4, %v5830_v57 }
0x1135   : > { %v3991_v35 = vpop.f32.mrf.mxu2  ;;  %v4020_v51 = vpop.f32.mrf.mxu3 }
0x1136   : > { %v4079_v25 = vadd.f32 %v4078_v62, %v4020_v51  ;;  %v4050_v20 = vadd.f32 %v4049_v4, %v3991_v35 }
0x113d   : > { %v3994_v47 = vpop.f32.mrf.mxu2  ;;  %v4023_v45 = vpop.f32.mrf.mxu3 }
0x113e   : > { %v4053_v23 = vadd.f32 %v4052_v40, %v3994_v47  ;;  %v4082_v43 = vadd.f32 %v4081_v42, %v4023_v45 }
0x1145   : > { %v3997_v10 = vpop.f32.mrf.mxu2  ;;  %v4026_v32 = vpop.f32.mrf.mxu3 }
0x1146   : > { %v4085_v6 = vadd.f32 %v4084_v0, %v4026_v32  ;;  %v4056_v34 = vadd.f32 %v4055_v21, %v3997_v10 }
0x114d   : > { %v4000_v56 = vpop.f32.mrf.mxu2  ;;  %v4029_v29 = vpop.f32.mrf.mxu3 }
0x114e   : > { %v4088_v58 = vadd.f32 %v4087_v28, %v4029_v29  ;;  %v4059_v11 = vadd.f32 %v4058_v3, %v4000_v56 }
0x1155   : > { %v4139_v15 = vpop.f32.mrf.mxu2  ;;  %v4168_v41 = vpop.f32.mrf.mxu3 }
0x1156   : > { %v4181_v33 = vadd.f32 %v4168_v41, %v4079_v25  ;;  %v4180_v36 = vadd.f32 %v4139_v15, %v4050_v20 }
0x1158   : > { %v4189_v2 = vadd.f32 %v4181_v33, %v6501_v24  ;;  %v4188_v10 = vadd.f32 %v4180_v36, %v6501_v24 }
0x115a   : > { %v4197_v47 = vmax.f32 %v4189_v2, 0.0  ;;  %v4196_v62 = vmax.f32 %v4188_v10, 0.0 }
0x115d   : > { %v4142_v14 = vpop.f32.mrf.mxu2  ;;  %v4171_v17 = vpop.f32.mrf.mxu3 }
0x115e   : > { %v4182_v13 = vadd.f32 %v4142_v14, %v4053_v23  ;;  %v4183_v55 = vadd.f32 %v4171_v17, %v4082_v43 }
0x1160   : > { %v4190_v27 = vadd.f32 %v4182_v13, %v6490_v53  ;;  %v4191_v32 = vadd.f32 %v4183_v55, %v6490_v53 }
0x1162   : > { %v4198_v54 = vmax.f32 %v4190_v27, 0.0  ;;  %v4199_v56 = vmax.f32 %v4191_v32, 0.0 }
0x1164   : > { %4206 = vadd.xlane.f32.xlu2 %v4198_v54 }
0x1165   : > { %v4145_v50 = vpop.f32.mrf.mxu2  ;;  %v4174_v9 = vpop.f32.mrf.mxu3 }
0x1166   : > { %v4184_v7 = vadd.f32 %v4145_v50, %v4056_v34  ;;  %v4185_v26 = vadd.f32 %v4174_v9, %v4085_v6 }
0x1168   : > { %v4192_v48 = vadd.f32 %v4184_v7, %v6493_v63  ;;  %v4193_v16 = vadd.f32 %v4185_v26, %v6493_v63 }
0x116a   : > { %v4200_v39 = vmax.f32 %v4192_v48, 0.0  ;;  %v4201_v46 = vmax.f32 %v4193_v16, 0.0 }
0x116c   : > { %4296 = vadd.xlane.f32.xlu0 %v4201_v46  ;;  %4208 = vadd.xlane.f32.xlu2 %v4200_v39 }
0x116d   : > { %v4148_v22 = vpop.f32.mrf.mxu2  ;;  %v4177_v60 = vpop.f32.mrf.mxu3 }
0x116e   : > { %v4186_v5 = vadd.f32 %v4148_v22, %v4059_v11  ;;  %v4187_v8 = vadd.f32 %v4177_v60, %v4088_v58 }
0x1170   : > { %v4194_v63 = vadd.f32 %v4186_v5, %v6496_v1  ;;  %v4195_v19 = vadd.f32 %v4187_v8, %v6496_v1 }
0x1172   : > { %v4202_v57 = vmax.f32 %v4194_v63, 0.0  ;;  %v4203_v51 = vmax.f32 %v4195_v19, 0.0 }
0x1174   : > { %4298 = vadd.xlane.f32.xlu1 %v4203_v51  ;;  %4210 = vadd.xlane.f32.xlu0 %v4202_v57 }
0x1175   : > { %4292 = vadd.xlane.f32.xlu2 %v4197_v47 }
0x117c   : > { %4294 = vadd.xlane.f32.xlu1 %v4199_v56  ;;  %4204 = vadd.xlane.f32.xlu0 %v4196_v62 }
0x11d7   : > { %v4207_v35 = vpop.xlane.xlu2 %4206 }
0x11d8   : > { %v4213_v45 = vmul.f32 %v4207_v35, %v6506_v37 }
0x11da   : > { %v8034_v1 = vsub.f32 %v4198_v54, %v4213_v45 }
0x11dc   : > { %v4221_v4 = vmul.f32 %v8034_v1, %v8034_v1 }
0x11de   : > { %4226 = vadd.xlane.f32.xlu0 %v4221_v4 }
0x11df   : > { %v4297_v29 = vpop.xlane.xlu0 %4296  ;;  %v4209_v42 = vpop.xlane.xlu2 %4208 }
0x11e0   : > { %v4302_v40 = vmul.f32 %v4297_v29, %v6506_v37  ;;  %v4214_v24 = vmul.f32 %v4209_v42, %v6506_v37 }
0x11e2   : > { %v8040_v53 = vsub.f32 %v4201_v46, %v4302_v40  ;;  %v8042_v15 = vsub.f32 %v4200_v39, %v4214_v24 }
0x11e4   : > { %v4310_v41 = vmul.f32 %v8040_v53, %v8040_v53  ;;  %v4222_v23 = vmul.f32 %v8042_v15, %v8042_v15 }
0x11e6   : > { %4316 = vadd.xlane.f32.xlu1 %v4310_v41  ;;  %4228 = vadd.xlane.f32.xlu2 %v4222_v23 }
0x11e7   : > { %v4299_v14 = vpop.xlane.xlu1 %4298  ;;  %v4211_v17 = vpop.xlane.xlu0 %4210 }
0x11e8   : > { %v4303_v13 = vmul.f32 %v4299_v14, %v6506_v37  ;;  %v4215_v0 = vmul.f32 %v4211_v17, %v6506_v37  ;;  %v4293_v21 = vpop.xlane.xlu2 %4292 }
0x11e9   : > { %v4300_v6 = vmul.f32 %v4293_v21, %v6506_v37 }
0x11ea   : > { %v8050_v27 = vsub.f32 %v4203_v51, %v4303_v13  ;;  %v8052_v54 = vsub.f32 %v4202_v57, %v4215_v0 }
0x11eb   : > { %v8059_v26 = vsub.f32 %v4197_v47, %v4300_v6 }
0x11ec   : > { %v4223_v34 = vmul.f32 %v8052_v54, %v8052_v54  ;;  %v4311_v50 = vmul.f32 %v8050_v27, %v8050_v27 }
0x11ed   : > { %v4308_v39 = vmul.f32 %v8059_v26, %v8059_v26 }
0x11ee   : > { %4230 = vadd.xlane.f32.xlu1 %v4223_v34  ;;  %4318 = vadd.xlane.f32.xlu0 %v4311_v50  ;;  %v8090_v34 = vld [vmem:[%s8431_s9] ss:$0 sm:$0xff] }
0x11ef   : > { %v4295_v9 = vpop.xlane.xlu1 %4294  ;;  %v4205_v7 = vpop.xlane.xlu0 %4204 }
0x11f0   : > { %v4301_v48 = vmul.f32 %v4295_v9, %v6506_v37  ;;  %v4212_v16 = vmul.f32 %v4205_v7, %v6506_v37 }
0x11f2   : > { %v8063_v25 = vsub.f32 %v4199_v56, %v4301_v48  ;;  %v8065_v28 = vsub.f32 %v4196_v62, %v4212_v16 }
0x11f4   : > { %v4309_v3 = vmul.f32 %v8063_v25, %v8063_v25  ;;  %v4220_v46 = vmul.f32 %v8065_v28, %v8065_v28 }
0x11f6   : > { %4314 = vadd.xlane.f32.xlu2 %v4309_v3  ;;  %4312 = vadd.xlane.f32.xlu0 %v4308_v39  ;;  %v8099_v3 = vld [vmem:[%s8432_s10] ss:$0 sm:$0xff] }
0x11f7   : > { %4224 = vadd.xlane.f32.xlu1 %v4220_v46 }
0x1251   : > { %v4227_v33 = vpop.xlane.xlu0 %4226 }
0x1252   : > { %v4233_v58 = vmul.f32 %v4227_v33, %v6506_v37 }
0x1254   : > { %v4237_v11 = vadd.f32 1e-05, %v4233_v58 }
0x1256   : > { %5727 = vrsqrt.f32 %v4237_v11  ;;  %vm4256_vm11 = vweird.f32 %v4237_v11 }
0x1259   : > { %v4317_v22 = vpop.xlane.xlu1 %4316  ;;  %v4229_v60 = vpop.xlane.xlu2 %4228 }
0x125a   : > { %v4322_v5 = vmul.f32 %v4317_v22, %v6506_v37  ;;  %v4234_v8 = vmul.f32 %v4229_v60, %v6506_v37 }
0x125c   : > { %v5728_v2 = vpop.eup %5727  ;;  %v4326_v20 = vadd.f32 1e-05, %v4322_v5  ;;  %v4238_v43 = vadd.f32 1e-05, %v4234_v8 }
0x125d   : > { %v4251_v63 = vmul.f32 %v5728_v2, %v4237_v11  ;;  %vm4257_vm12 = vweird.f32 %v5728_v2 }
0x125e   : > { %5729 = vrsqrt.f32 %v4326_v20  ;;  %vm4258_vm7 = vmor %vm4256_vm11, %vm4257_vm12  ;;  %vm4354_vm15 = vweird.f32 %v4326_v20  ;;  %vm4266_vm10 = vweird.f32 %v4238_v43 }
0x125f   : > { %v4252_v19 = vmul.f32 %v5728_v2, %v4251_v63  ;;  %5731 = vrsqrt.f32 %v4238_v43 }
0x1261   : > { %v4253_v36 = vmul.f32 0.5, %v4252_v19  ;;  %v4231_v55 = vpop.xlane.xlu1 %4230  ;;  %v4319_v57 = vpop.xlane.xlu0 %4318 }
0x1262   : > { %v4235_v51 = vmul.f32 %v4231_v55, %v6506_v37  ;;  %v4323_v47 = vmul.f32 %v4319_v57, %v6506_v37 }
0x1263   : > { %v4254_v10 = vsub.f32 1.5, %v4253_v36 }
0x1264   : > { %v5730_v32 = vpop.eup %5729  ;;  %v8078_v62 = vadd.f32 1e-05, %v4235_v51  ;;  %v8080_v56 = vadd.f32 1e-05, %v4323_v47 }
0x1265   : > { %v5732_v35 = vpop.eup %5731  ;;  %v4255_v45 = vmul.f32 %v5728_v2, %v4254_v10  ;;  %v4349_v4 = vmul.f32 %v5730_v32, %v4326_v20  ;;  %vm4355_vm8 = vweird.f32 %v5730_v32 }
0x1266   : > { %v4261_v29 = vmul.f32 %v5732_v35, %v4238_v43  ;;  %5733 = vrsqrt.f32 %v8078_v62  ;;  %vm4267_vm9 = vweird.f32 %v5732_v35  ;;  %vm4356_vm0 = vmor %vm4354_vm15, %vm4355_vm8  ;;  %vm4364_vm8 = vweird.f32 %v8080_v56 }
0x1267   : > { %v4259_v42 = vsel %vm4258_vm7, %v5728_v2, %v4255_v45  ;;  %v4350_v40 = vmul.f32 %v5730_v32, %v4349_v4  ;;  %5735 = vrsqrt.f32 %v8080_v56  ;;  %vm4268_vm13 = vmor %vm4266_vm10, %vm4267_vm9  ;;  %vm4276_vm7 = vweird.f32 %v8078_v62 }
0x1268   : > { %v4281_v24 = vmul.f32 %v4259_v42, %v8034_v1  ;;  %v4262_v41 = vmul.f32 %v5732_v35, %v4261_v29 }
0x1269   : > { %v4351_v23 = vmul.f32 0.5, %v4350_v40  ;;  %v4315_v14 = vpop.xlane.xlu2 %4314  ;;  %v4313_v17 = vpop.xlane.xlu0 %4312 }
0x126a   : > { %v4263_v13 = vmul.f32 0.5, %v4262_v41  ;;  %v4321_v0 = vmul.f32 %v4315_v14, %v6506_v37  ;;  %v4225_v21 = vpop.xlane.xlu1 %4224  ;;  %v4320_v6 = vmul.f32 %v4313_v17, %v6506_v37  ;;  %v4285_v50 = vmul.f32 %v8090_v34, %v4281_v24 }
0x126b   : > { %v4352_v9 = vsub.f32 1.5, %v4351_v23  ;;  %v4232_v1 = vmul.f32 %v4225_v21, %v6506_v37 }
0x126c   : > { %v5734_v7 = vpop.eup %5733  ;;  %v4264_v48 = vsub.f32 1.5, %v4263_v13  ;;  %v8094_v16 = vadd.f32 1e-05, %v4321_v0  ;;  %v8102_v39 = vadd.f32 %v8099_v3, %v4285_v50  ;;  %v8107_v37 = vadd.f32 1e-05, %v4320_v6 }
0x126d   : > { %v5736_v46 = vpop.eup %5735  ;;  %v4353_v33 = vmul.f32 %v5730_v32, %v4352_v9  ;;  %v4271_v58 = vmul.f32 %v5734_v7, %v8078_v62  ;;  %v8105_v11 = vadd.f32 1e-05, %v4232_v1  ;;  %vm4277_vm12 = vweird.f32 %v5734_v7 }
0x126e   : > { %v4265_v22 = vmul.f32 %v5732_v35, %v4264_v48  ;;  %v4359_v60 = vmul.f32 %v5736_v46, %v8080_v56  ;;  %5737 = vrsqrt.f32 %v8094_v16  ;;  %4382 = vrot.lane.b32.xlu0 %v8102_v39, %s6061_s19  ;;  %vm4365_vm11 = vweird.f32 %v5736_v46  ;;  %vm4278_vm15 = vmor %vm4276_vm7, %vm4277_vm12 }
0x126f   : > { %v4357_v5 = vsel %vm4356_vm0, %v5730_v32, %v4353_v33  ;;  %v4272_v8 = vmul.f32 %v5734_v7, %v4271_v58  ;;  %5739 = vrsqrt.f32 %v8105_v11  ;;  %vm4366_vm9 = vmor %vm4364_vm8, %vm4365_vm11  ;;  %vm4246_vm11 = vweird.f32 %v8105_v11 }
0x1270   : > { %v4370_v2 = vmul.f32 %v4357_v5, %v8040_v53  ;;  %v4269_v20 = vsel %vm4268_vm13, %v5732_v35, %v4265_v22  ;;  %v4360_v63 = vmul.f32 %v5736_v46, %v4359_v60  ;;  %5741 = vrsqrt.f32 %v8107_v37 }
0x1271   : > { %v4282_v19 = vmul.f32 %v4269_v20, %v8042_v15  ;;  %v4273_v43 = vmul.f32 0.5, %v4272_v8  ;;  %vm4344_vm13 = vweird.f32 %v8094_v16  ;;  %vm4334_vm8 = vweird.f32 %v8107_v37 }
0x1272   : > { %v4361_v36 = vmul.f32 0.5, %v4360_v63  ;;  %v4374_v55 = vmul.f32 %v8090_v34, %v4370_v2  ;;  %v5833_v63 = vld [vmem:[#allocation7 + $0x20] sm:$0xff] }
0x1273   : > { %v4274_v57 = vsub.f32 1.5, %v4273_v43  ;;  %v4286_v51 = vmul.f32 %v8090_v34, %v4282_v19 }
0x1274   : > { %v5738_v47 = vpop.eup %5737  ;;  %v4362_v10 = vsub.f32 1.5, %v4361_v36  ;;  %v8121_v32 = vadd.f32 %v8099_v3, %v4374_v55 }
0x1275   : > { %v5740_v53 = vpop.eup %5739  ;;  %v4275_v35 = vmul.f32 %v5734_v7, %v4274_v57  ;;  %v4339_v15 = vmul.f32 %v5738_v47, %v8094_v16  ;;  %v8126_v45 = vadd.f32 %v8099_v3, %v4286_v51  ;;  %vm4345_vm0 = vweird.f32 %v5738_v47 }
0x1276   : > { %v4363_v4 = vmul.f32 %v5736_v46, %v4362_v10  ;;  %v4241_v29 = vmul.f32 %v5740_v53, %v8105_v11  ;;  %4392 = vrot.lane.b32.xlu2 %v8121_v32, %s6061_s19  ;;  %v5742_v42 = vpop.eup %5741  ;;  %vm4247_vm10 = vweird.f32 %v5740_v53  ;;  %vm4346_vm12 = vmor %vm4344_vm13, %vm4345_vm0 }
0x1277   : > { %v4279_v40 = vsel %vm4278_vm15, %v5734_v7, %v4275_v35  ;;  %v4340_v24 = vmul.f32 %v5738_v47, %v4339_v15  ;;  %4384 = vrot.lane.b32.xlu0 %v8126_v45, %s6061_s19  ;;  %v4329_v14 = vmul.f32 %v5742_v42, %v8107_v37  ;;  %vm4335_vm7 = vweird.f32 %v5742_v42  ;;  %vm4248_vm15 = vmor %vm4246_vm11, %vm4247_vm10 }
0x1278   : > { %v4283_v62 = vmul.f32 %v4279_v40, %v8052_v54  ;;  %v4367_v41 = vsel %vm4366_vm9, %v5736_v46, %v4363_v4  ;;  %v4242_v23 = vmul.f32 %v5740_v53, %v4241_v29  ;;  %vm4336_vm9 = vmor %vm4334_vm8, %vm4335_vm7  ;;  %v5837_v40 = vld [vmem:[#allocation7] sm:$0xff]  ;;  %vm8519_vm7 = vcmp.lt.s32.totalorder %v6366_v52, 126 }
0x1279   : > { %v4371_v56 = vmul.f32 %v4367_v41, %v8050_v27  ;;  %v4341_v17 = vmul.f32 0.5, %v4340_v24  ;;  %v4330_v0 = vmul.f32 %v5742_v42, %v4329_v14  ;;  %v5838_v41 = vld [vmem:[#allocation7 + $0x8] sm:$0xff] }
0x127a   : > { %v4243_v13 = vmul.f32 0.5, %v4242_v23  ;;  %v4287_v21 = vmul.f32 %v8090_v34, %v4283_v62 }
0x127b   : > { %v4342_v6 = vsub.f32 1.5, %v4341_v17  ;;  %v4375_v50 = vmul.f32 %v8090_v34, %v4371_v56  ;;  %v4331_v1 = vmul.f32 0.5, %v4330_v0 }
0x127c   : > { %v4244_v9 = vsub.f32 1.5, %v4243_v13  ;;  %v4291_v54 = vadd.f32 %v8099_v3, %v4287_v21 }
0x127d   : > { %v4343_v7 = vmul.f32 %v5738_v47, %v4342_v6  ;;  %v4379_v48 = vadd.f32 %v8099_v3, %v4375_v50  ;;  %v4332_v46 = vsub.f32 1.5, %v4331_v1 }
0x127e   : > { %v4245_v27 = vmul.f32 %v5740_v53, %v4244_v9  ;;  %4482 = vmatpush.msra.mxu2 %v4291_v54  ;;  %4386 = vrot.lane.b32.xlu2 %v4291_v54, %s6061_s19  ;;  %v5839_v9 = vld [vmem:[#allocation7 + $0x10] sm:$0xff] }
0x127f   : > { %v4347_v33 = vsel %vm4346_vm12, %v5738_v47, %v4343_v7  ;;  %4394 = vrot.lane.b32.xlu1 %v4379_v48, %s6061_s19  ;;  %4511 = vmatpush.msra.mxu3 %v4379_v48  ;;  %v4333_v16 = vmul.f32 %v5742_v42, %v4332_v46  ;;  %v5841_v46 = vld [vmem:[#allocation7 + $0x40] sm:$0xff] }
0x1280   : > { %v4369_v58 = vmul.f32 %v4347_v33, %v8063_v25  ;;  %v4249_v22 = vsel %vm4248_vm15, %v5740_v53, %v4245_v27  ;;  %4483 = vmatpush.msra.mxu2 %v8126_v45  ;;  %v5840_v27 = vld [vmem:[#allocation7 + $0x18] sm:$0xff]  ;;  %v5842_v33 = vld [vmem:[#allocation7 + $0x48] sm:$0xff] }
0x1281   : > { %v4280_v11 = vmul.f32 %v4249_v22, %v8065_v28  ;;  %4512 = vmatpush.msra.mxu3 %v8121_v32  ;;  %v4337_v60 = vsel %vm4336_vm9, %v5742_v42, %v4333_v16  ;;  %v5844_v22 = vld [vmem:[#allocation7 + $0x58] sm:$0xff] }
0x1282   : > { %4484 = vmatpush.msra.mxu2 %v8102_v39  ;;  %v4373_v5 = vmul.f32 %v8090_v34, %v4369_v58  ;;  %v4368_v8 = vmul.f32 %v4337_v60, %v8059_v26  ;;  %v5834_v26 = vld [vmem:[#allocation7 + $0x28] sm:$0xff]  ;;  %v5843_v58 = vld [vmem:[#allocation7 + $0x50] sm:$0xff] }
0x1283   : > { %v4284_v25 = vmul.f32 %v8090_v34, %v4280_v11 }
0x1284   : > { %v4377_v2 = vadd.f32 %v8099_v3, %v4373_v5  ;;  %v4372_v20 = vmul.f32 %v8090_v34, %v4368_v8  ;;  %v5835_v34 = vld [vmem:[#allocation7 + $0x30] sm:$0xff] }
0x1285   : > { %v4288_v37 = vadd.f32 %v8099_v3, %v4284_v25 }
0x1286   : > { %4513 = vmatpush.msra.mxu3 %v4377_v2  ;;  %v4376_v28 = vadd.f32 %v8099_v3, %v4372_v20  ;;  %v5836_v3 = vld [vmem:[#allocation7 + $0x38] sm:$0xff] }
0x1287   : > { %4380 = vrot.lane.b32.xlu2 %v4288_v37, %s6061_s19  ;;  %4485 = vmatpush.msra.mxu2 %v4288_v37 }
0x1288   : > { %4390 = vrot.lane.b32.xlu1 %v4377_v2, %s6061_s19  ;;  %5488 = vmatmul.msk.f32.vlgmr.msra.gmra.mxu2 %vm815_vm4, %v5833_v63 }
0x1289   : > { %4388 = vrot.lane.b32.xlu0 %v4376_v28, %s6061_s19  ;;  %4514 = vmatpush.msra.mxu3 %v4376_v28 }
0x128a   : > { %5492 = vmatmul.msk.f32.vlgmr.msra.gmra.mxu3 %vm815_vm4, %v5833_v63 }
0x128f   : > { %4530 = vrot.lane.b32.xlu2 %v8102_v39, %s6062_s17 }
0x1290   : > { %4540 = vrot.lane.b32.xlu1 %v8121_v32, %s6062_s17  ;;  %5489 = vmatmul.msk.f32.gmra.mxu2 %vm815_vm4, %v5834_v26 }
0x1291   : > { %4532 = vrot.lane.b32.xlu0 %v8126_v45, %s6062_s17 }
0x1292   : > { %5493 = vmatmul.msk.f32.gmra.mxu3 %vm815_vm4, %v5834_v26 }
0x1297   : > { %4542 = vrot.lane.b32.xlu2 %v4379_v48, %s6062_s17 }
0x1298   : > { %4534 = vrot.lane.b32.xlu1 %v4291_v54, %s6062_s17  ;;  %5490 = vmatmul.msk.f32.gmra.mxu2 %vm815_vm4, %v5835_v34 }
0x1299   : > { %4538 = vrot.lane.b32.xlu0 %v4377_v2, %s6062_s17 }
0x129a   : > { %5494 = vmatmul.msk.f32.gmra.mxu3 %vm815_vm4, %v5835_v34 }
0x129f   : > { %4536 = vrot.lane.b32.xlu2 %v4376_v28, %s6062_s17 }
0x12a0   : > { %4528 = vrot.lane.b32.xlu1 %v4288_v37, %s6062_s17  ;;  %5491 = vmatmul.msk.f32.gmra.mxu2 %vm815_vm4, %v5836_v3 }
0x12a2   : > { %5495 = vmatmul.msk.f32.gmra.mxu3 %vm815_vm4, %v5836_v3 }
0x12d0   : > { %v4393_v39 = vpop.permute.xlu2 %4392 }
0x12d8   : > { %v4387_v43 = vpop.permute.xlu2 %4386 }
0x12e0   : > { %v4383_v19 = vpop.permute.xlu0 %4382 }
0x12e1   : > { %v4381_v47 = vpop.permute.xlu2 %4380 }
0x12e9   : > { %v4385_v36 = vpop.permute.xlu0 %4384  ;;  %v4531_v42 = vpop.permute.xlu2 %4530 }
0x12ea   : > { %v4398_v10 = vsel %vm794_vm1, %v4385_v36, %v4393_v39  ;;  %v4402_v32 = vsel %vm794_vm1, %v4393_v39, %v4385_v36 }
0x12f1   : > { %v4395_v55 = vpop.permute.xlu1 %4394  ;;  %v4543_v23 = vpop.permute.xlu2 %4542 }
0x12f2   : > { %v4399_v57 = vsel %vm794_vm1, %v4387_v43, %v4395_v55  ;;  %v4403_v51 = vsel %vm794_vm1, %v4395_v55, %v4387_v43 }
0x12f3   : > { %5472 = vmatpush.msk.msra.mxu0 %vm538_vm2, %v4403_v51  ;;  %5480 = vmatpush.msk.msra.mxu1 %vm539_vm3, %v4399_v57 }
0x12f5   : > { %5473 = vmatpush.msk.msra.mxu0 %vm538_vm2, %v4402_v32  ;;  %5481 = vmatpush.msk.msra.mxu1 %vm539_vm3, %v4398_v10 }
0x12f9   : > { %v4537_v1 = vpop.permute.xlu2 %4536 }
0x12fa   : > { %v4391_v53 = vpop.permute.xlu1 %4390 }
0x12fb   : > { %v4397_v35 = vsel %vm794_vm1, %v4383_v19, %v4391_v53  ;;  %v4401_v15 = vsel %vm794_vm1, %v4391_v53, %v4383_v19  ;;  %v4389_v45 = vpop.permute.xlu0 %4388 }
0x12fc   : > { %5474 = vmatpush.msk.msra.mxu0 %vm538_vm2, %v4401_v15  ;;  %5482 = vmatpush.msk.msra.mxu1 %vm539_vm3, %v4397_v35  ;;  %v4396_v4 = vsel %vm794_vm1, %v4381_v47, %v4389_v45  ;;  %v4400_v29 = vsel %vm794_vm1, %v4389_v45, %v4381_v47  ;;  %vm8508_vm1 = vcmp.ge.s32.totalorder %v6363_v49, 2 }
0x12fd   : > { %vm8514_vm10 = vmmov %vm8508_vm1 }
0x12fe   : > { %5475 = vmatpush.msk.msra.mxu0 %vm538_vm2, %v4400_v29  ;;  %5483 = vmatpush.msk.msra.mxu1 %vm539_vm3, %v4396_v4  ;;  %vm8509_vm2 = vcmp.ge.s32.totalorder %v6366_v52, 2  ;;  %vm8510_vm3 = vmmov %vm8508_vm1  ;;  %v5856_v52 = vld [vmem:[#allocation8 + $0x58] sm:$0xff] }
0x12ff   : > { %5476 = vmatmul.msk.f32.vlgmr.msra.gmra.mxu0 %vm815_vm4, %v5837_v40  ;;  %5484 = vmatmul.msk.f32.vlgmr.msra.gmra.mxu1 %vm815_vm4, %v5837_v40  ;;  %vm8513_vm0 = vmmov %vm8509_vm2 }
0x1300   : > { %vm8515_vm13 = vmmov %vm8513_vm0 }
0x1302   : > { %v4541_v24 = vpop.permute.xlu1 %4540 }
0x1303   : > { %v4533_v62 = vpop.permute.xlu0 %4532 }
0x1304   : > { %v4546_v0 = vsel %vm540_vm6, %v4533_v62, %v4541_v24  ;;  %v4550_v21 = vsel %vm540_vm6, %v4541_v24, %v4533_v62 }
0x1307   : > { %5477 = vmatmul.msk.f32.gmra.mxu0 %vm815_vm4, %v5838_v41  ;;  %5485 = vmatmul.msk.f32.gmra.mxu1 %vm815_vm4, %v5838_v41 }
0x130a   : > { %v4535_v14 = vpop.permute.xlu1 %4534 }
0x130b   : > { %v4547_v56 = vsel %vm540_vm6, %v4535_v14, %v4543_v23  ;;  %v4551_v17 = vsel %vm540_vm6, %v4543_v23, %v4535_v14  ;;  %v4539_v13 = vpop.permute.xlu0 %4538  ;;  %v4487_v2 = vpop.f32.mrf.mxu2 }
0x130c   : > { %5496 = vmatpush.msk.msrb.mxu0 %vm540_vm6, %v4547_v56  ;;  %5504 = vmatpush.msk.msrb.mxu1 %vm541_vm5, %v4551_v17  ;;  %v4545_v6 = vsel %vm540_vm6, %v4531_v42, %v4539_v13  ;;  %v4549_v50 = vsel %vm540_vm6, %v4539_v13, %v4531_v42 }
0x130d   : > { %v4516_v37 = vpop.f32.mrf.mxu3 }
0x130e   : > { %5497 = vmatpush.msk.msrb.mxu0 %vm540_vm6, %v4546_v0  ;;  %5505 = vmatpush.msk.msrb.mxu1 %vm541_vm5, %v4550_v21 }
0x130f   : > { %5478 = vmatmul.msk.f32.gmra.mxu0 %vm815_vm4, %v5839_v9  ;;  %5486 = vmatmul.msk.f32.gmra.mxu1 %vm815_vm4, %v5839_v9 }
0x1310   : > { %5498 = vmatpush.msk.msrb.mxu0 %vm540_vm6, %v4545_v6  ;;  %5506 = vmatpush.msk.msrb.mxu1 %vm541_vm5, %v4549_v50 }
0x1312   : > { %v4529_v54 = vpop.permute.xlu1 %4528 }
0x1313   : > { %v4544_v7 = vsel %vm540_vm6, %v4529_v54, %v4537_v1  ;;  %v4548_v48 = vsel %vm540_vm6, %v4537_v1, %v4529_v54  ;;  %v4490_v63 = vpop.f32.mrf.mxu2  ;;  %v5846_v54 = vld [vmem:[#allocation8 + $0x28] sm:$0xff] }
0x1314   : > { %5499 = vmatpush.msk.msrb.mxu0 %vm540_vm6, %v4544_v7  ;;  %5507 = vmatpush.msk.msrb.mxu1 %vm541_vm5, %v4548_v48  ;;  %v683_v7 = vld [vmem:[%s8434_s12] sm:$0xff]  ;;  %v5848_v48 = vld [vmem:[#allocation8 + $0x38] sm:$0xff]  ;;  %vm8511_vm5 = vmmov %vm8509_vm2 }
0x1315   : > { %v4519_v26 = vpop.f32.mrf.mxu3  ;;  %vm8512_vm6 = vmmov %vm8508_vm1 }
0x1317   : > { %5479 = vmatmul.msk.f32.gmra.mxu0 %vm815_vm4, %v5840_v27  ;;  %5487 = vmatmul.msk.f32.gmra.mxu1 %vm815_vm4, %v5840_v27 }
0x131b   : > { %v4493_v55 = vpop.f32.mrf.mxu2 }
0x131d   : > { %v4522_v57 = vpop.f32.mrf.mxu3 }
0x131f   : > { %5500 = vmatmul.msk.f32.vlgmr.msrb.gmra.mxu0 %vm815_vm4, %v5841_v46  ;;  %5508 = vmatmul.msk.f32.vlgmr.msrb.gmra.mxu1 %vm815_vm4, %v5841_v46 }
0x1323   : > { %v4496_v29 = vpop.f32.mrf.mxu2 }
0x1325   : > { %v4525_v42 = vpop.f32.mrf.mxu3 }
0x1327   : > { %5501 = vmatmul.msk.f32.gmra.mxu0 %vm815_vm4, %v5842_v33  ;;  %5509 = vmatmul.msk.f32.gmra.mxu1 %vm815_vm4, %v5842_v33 }
0x132f   : > { %5502 = vmatmul.msk.f32.gmra.mxu0 %vm815_vm4, %v5843_v58  ;;  %5510 = vmatmul.msk.f32.gmra.mxu1 %vm815_vm4, %v5843_v58 }
0x1337   : > { %5503 = vmatmul.msk.f32.gmra.mxu0 %vm815_vm4, %v5844_v22  ;;  %5511 = vmatmul.msk.f32.gmra.mxu1 %vm815_vm4, %v5844_v22 }
0x137c   : > { %v4429_v16 = vpop.f32.mrf.mxu0  ;;  %v4458_v11 = vpop.f32.mrf.mxu1 }
0x137d   : > { %v4517_v13 = vadd.f32 %v4516_v37, %v4458_v11  ;;  %v4488_v6 = vadd.f32 %v4487_v2, %v4429_v16 }
0x1384   : > { %v4432_v60 = vpop.f32.mrf.mxu0  ;;  %v4461_v5 = vpop.f32.mrf.mxu1 }
0x1385   : > { %v4491_v39 = vadd.f32 %v4490_v63, %v4432_v60  ;;  %v4520_v40 = vadd.f32 %v4519_v26, %v4461_v5  ;;  %v5849_v26 = vld [vmem:[#allocation8] sm:$0xff] }
0x138c   : > { %v4435_v8 = vpop.f32.mrf.mxu0  ;;  %v4464_v25 = vpop.f32.mrf.mxu1 }
0x138d   : > { %v4494_v47 = vadd.f32 %v4493_v55, %v4435_v8  ;;  %v4523_v10 = vadd.f32 %v4522_v57, %v4464_v25 }
0x1394   : > { %v4438_v20 = vpop.f32.mrf.mxu0  ;;  %v4467_v28 = vpop.f32.mrf.mxu1 }
0x1395   : > { %v4497_v24 = vadd.f32 %v4496_v29, %v4438_v20  ;;  %v4526_v62 = vadd.f32 %v4525_v42, %v4467_v28  ;;  %v5852_v42 = vld [vmem:[#allocation8 + $0x18] sm:$0xff] }
0x139c   : > { %v4577_v34 = vpop.f32.mrf.mxu0  ;;  %v4606_v3 = vpop.f32.mrf.mxu1 }
0x139d   : > { %v4619_v50 = vadd.f32 %v4606_v3, %v4517_v13  ;;  %v4618_v9 = vadd.f32 %v4577_v34, %v4488_v6 }
0x139f   : > { %v4627_v1 = vadd.f32 %v4619_v50, %v6760_v59 }
0x13a4   : > { %v4580_v19 = vpop.f32.mrf.mxu0  ;;  %v4609_v43 = vpop.f32.mrf.mxu1 }
0x13a5   : > { %v4620_v36 = vadd.f32 %v4580_v19, %v4491_v39  ;;  %v4621_v41 = vadd.f32 %v4609_v43, %v4520_v40  ;;  %v5850_v19 = vld [vmem:[#allocation8 + $0x8] sm:$0xff]  ;;  %v5853_v40 = vld [vmem:[#allocation8 + $0x40] sm:$0xff] }
0x13a7   : > { %v4628_v51 = vadd.f32 %v4620_v36, %v6742_v18 }
0x13a9   : > { %4636 = vrot.lane.b32.xlu1 %v4628_v51, %s6064_s25 }
0x13ac   : > { %v4583_v32 = vpop.f32.mrf.mxu0  ;;  %v4612_v53 = vpop.f32.mrf.mxu1 }
0x13ad   : > { %v4622_v35 = vadd.f32 %v4583_v32, %v4494_v47  ;;  %v4623_v15 = vadd.f32 %v4612_v53, %v4523_v10  ;;  %v5851_v32 = vld [vmem:[#allocation8 + $0x10] sm:$0xff] }
0x13af   : > { %v4630_v45 = vadd.f32 %v4622_v35, %v6746_v30  ;;  %v4631_v4 = vadd.f32 %v4623_v15, %v6746_v30  ;;  %v4629_v30 = vadd.f32 %v4621_v41, %v6742_v18  ;;  %v5845_v18 = vld [vmem:[#allocation8 + $0x20] sm:$0xff] }
0x13b1   : > { %4646 = vrot.lane.b32.xlu0 %v4631_v4, %s6064_s25  ;;  %4638 = vrot.lane.b32.xlu2 %v4630_v45, %s6064_s25 }
0x13b4   : > { %v4586_v23 = vpop.f32.mrf.mxu0  ;;  %v4615_v14 = vpop.f32.mrf.mxu1 }
0x13b5   : > { %v4624_v56 = vadd.f32 %v4586_v23, %v4497_v24  ;;  %v4625_v17 = vadd.f32 %v4615_v14, %v4526_v62  ;;  %v5854_v24 = vld [vmem:[#allocation8 + $0x48] sm:$0xff] }
0x13b7   : > { %v4632_v0 = vadd.f32 %v4624_v56, %v6752_v38  ;;  %v4633_v21 = vadd.f32 %v4625_v17, %v6752_v38  ;;  %v4626_v38 = vadd.f32 %v4618_v9, %v6760_v59  ;;  %v5847_v59 = vld [vmem:[#allocation8 + $0x30] sm:$0xff] }
0x13b9   : > { %4765 = vmatpush.msra.mxu1 %v4633_v21  ;;  %4648 = vrot.lane.b32.xlu1 %v4633_v21, %s6064_s25 }
0x13ba   : > { %4644 = vrot.lane.b32.xlu2 %v4629_v30, %s6064_s25  ;;  %4640 = vrot.lane.b32.xlu0 %v4632_v0, %s6064_s25 }
0x13bb   : > { %4736 = vmatpush.msra.mxu0 %v4632_v0  ;;  %4766 = vmatpush.msra.mxu1 %v4631_v4 }
0x13bd   : > { %4737 = vmatpush.msra.mxu0 %v4630_v45  ;;  %4767 = vmatpush.msra.mxu1 %v4629_v30 }
0x13bf   : > { %4738 = vmatpush.msra.mxu0 %v4628_v51  ;;  %4768 = vmatpush.msra.mxu1 %v4627_v1 }
0x13c0   : > { %5532 = vmatmul.msk.f32.vlgmr.msra.gmra.mxu1 %vm815_vm4, %v5845_v18 }
0x13c1   : > { %4739 = vmatpush.msra.mxu0 %v4626_v38  ;;  %4642 = vrot.lane.b32.xlu1 %v4627_v1, %s6064_s25 }
0x13c2   : > { %4794 = vrot.lane.b32.xlu2 %v4631_v4, %s6065_s27  ;;  %4634 = vrot.lane.b32.xlu0 %v4626_v38, %s6064_s25  ;;  %s5997_s25 = scalar_lea.hbm %s8435_s13, 32 }
0x13c3   : > { %5528 = vmatmul.msk.f32.vlgmr.msra.gmra.mxu0 %vm815_vm4, %v5845_v18  ;;  %p5999_p9 = scmp.lt.s32.totalorder %s5997_s25, %s5993_s29 }
0x13c5   : > { %p6000_p2 = por %p5999_p9, %p5998_p11 }
0x13c7   : > { %p6001_p10 = pnand %p6000_p2, %p5996_p8 }
0x13c8   : > { %5533 = vmatmul.msk.f32.gmra.mxu1 %vm815_vm4, %v5846_v54 }
0x13c9   : > { %4786 = vrot.lane.b32.xlu1 %v4630_v45, %s6065_s27 }
0x13ca   : > { %4788 = vrot.lane.b32.xlu2 %v4632_v0, %s6065_s27  ;;  %4784 = vrot.lane.b32.xlu0 %v4628_v51, %s6065_s27 }
0x13cb   : > { %5529 = vmatmul.msk.f32.gmra.mxu0 %vm815_vm4, %v5846_v54 }
0x13d0   : > { %5534 = vmatmul.msk.f32.gmra.mxu1 %vm815_vm4, %v5847_v59 }
0x13d1   : > { %4792 = vrot.lane.b32.xlu1 %v4629_v30, %s6065_s27 }
0x13d2   : > { %4782 = vrot.lane.b32.xlu2 %v4626_v38, %s6065_s27  ;;  %4796 = vrot.lane.b32.xlu0 %v4633_v21, %s6065_s27 }
0x13d3   : > { %5530 = vmatmul.msk.f32.gmra.mxu0 %vm815_vm4, %v5847_v59 }
0x13d8   : > { %5535 = vmatmul.msk.f32.gmra.mxu1 %vm815_vm4, %v5848_v48 }
0x13d9   : > { %686 = vperm.xlu1 %5657, %v683_v7  }
0x13da   : > { %4790 = vrot.lane.b32.xlu0 %v4627_v1, %s6065_s27 }
0x13db   : > { %5531 = vmatmul.msk.f32.gmra.mxu0 %vm815_vm4, %v5848_v48 }
0x140b   : > { %v4639_v33 = vpop.permute.xlu2 %4638 }
0x1414   : > { %v4645_v60 = vpop.permute.xlu2 %4644 }
0x141b   : > { %v4637_v27 = vpop.permute.xlu1 %4636 }
0x141c   : > { %v4651_v25 = vsel %vm1582_vm14, %v4637_v27, %v4645_v60  ;;  %v4655_v2 = vsel %vm1582_vm14, %v4645_v60, %v4637_v27  ;;  %v4795_v34 = vpop.permute.xlu2 %4794 }
0x1423   : > { %v4647_v46 = vpop.permute.xlu0 %4646 }
0x1424   : > { %v4652_v5 = vsel %vm1582_vm14, %v4639_v33, %v4647_v46  ;;  %v4656_v8 = vsel %vm1582_vm14, %v4647_v46, %v4639_v33  ;;  %v4789_v43 = vpop.permute.xlu2 %4788 }
0x142b   : > { %v4649_v58 = vpop.permute.xlu1 %4648 }
0x142c   : > { %v4641_v22 = vpop.permute.xlu0 %4640  ;;  %v4783_v15 = vpop.permute.xlu2 %4782 }
0x142d   : > { %v4653_v16 = vsel %vm1582_vm14, %v4641_v22, %v4649_v58  ;;  %v4657_v11 = vsel %vm1582_vm14, %v4649_v58, %v4641_v22 }
0x142e   : > { %5512 = vmatpush.msk.msrb.mxu2 %vm8508_vm1, %v4657_v11  ;;  %5520 = vmatpush.msk.msrb.mxu3 %vm8509_vm2, %v4653_v16  ;;  %vm8523_vm1 = vmmov %vm8519_vm7 }
0x1430   : > { %5513 = vmatpush.msk.msrb.mxu2 %vm8510_vm3, %v4656_v8  ;;  %5521 = vmatpush.msk.msrb.mxu3 %vm8511_vm5, %v4652_v5 }
0x1432   : > { %5514 = vmatpush.msk.msrb.mxu2 %vm8512_vm6, %v4655_v2  ;;  %5522 = vmatpush.msk.msrb.mxu3 %vm8513_vm0, %v4651_v25  ;;  %vm8527_vm6 = vmmov %vm8523_vm1 }
0x1433   : > { %v4643_v37 = vpop.permute.xlu1 %4642 }
0x1434   : > { %v4635_v20 = vpop.permute.xlu0 %4634 }
0x1435   : > { %v4650_v28 = vsel %vm1582_vm14, %v4635_v20, %v4643_v37  ;;  %v4654_v63 = vsel %vm1582_vm14, %v4643_v37, %v4635_v20  ;;  %vm8516_vm14 = vcmp.lt.s32.totalorder %v6363_v49, 126  ;;  %v5855_v49 = vld [vmem:[#allocation8 + $0x50] sm:$0xff] }
0x1436   : > { %5515 = vmatpush.msk.msrb.mxu2 %vm8514_vm10, %v4654_v63  ;;  %5523 = vmatpush.msk.msrb.mxu3 %vm8515_vm13, %v4650_v28  ;;  %vm8517_vm12 = vmmov %vm8516_vm14 }
0x1437   : > { %5516 = vmatmul.msk.f32.vlgmr.msrb.gmra.mxu2 %vm815_vm4, %v5849_v26  ;;  %5524 = vmatmul.msk.f32.vlgmr.msrb.gmra.mxu3 %vm815_vm4, %v5849_v26  ;;  %vm8518_vm11 = vmmov %vm8517_vm12 }
0x1438   : > { %vm8520_vm15 = vmmov %vm8518_vm11 }
0x1439   : > { %vm8521_vm8 = vmmov %vm8518_vm11 }
0x143a   : > { %vm8522_vm9 = vmmov %vm8521_vm8 }
0x143b   : > { %v4787_v3 = vpop.permute.xlu1 %4786  ;;  %vm8524_vm2 = vmmov %vm8521_vm8 }
0x143c   : > { %v4785_v39 = vpop.permute.xlu0 %4784  ;;  %v4800_v47 = vsel %vm8520_vm15, %v4787_v3, %v4795_v34  ;;  %v4804_v10 = vsel %vm8521_vm8, %v4795_v34, %v4787_v3  ;;  %vm8525_vm3 = vmmov %vm8524_vm2 }
0x143d   : > { %vm8526_vm5 = vmmov %vm8524_vm2  ;;  %v4770_v0 = vpop.f32.mrf.mxu1 }
0x143e   : > { %vm8528_vm0 = vmmov %vm8524_vm2 }
0x143f   : > { %5517 = vmatmul.msk.f32.gmra.mxu2 %vm815_vm4, %v5850_v19  ;;  %5525 = vmatmul.msk.f32.gmra.mxu3 %vm815_vm4, %v5850_v19  ;;  %vm8529_vm10 = vmmov %vm8528_vm0 }
0x1440   : > { %vm8530_vm13 = vmmov %vm8528_vm0  ;;  %v4741_v13 = vpop.f32.mrf.mxu0 }
0x1443   : > { %v4793_v51 = vpop.permute.xlu1 %4792 }
0x1444   : > { %v4797_v36 = vpop.permute.xlu0 %4796  ;;  %v4799_v53 = vsel %vm8524_vm2, %v4785_v39, %v4793_v51  ;;  %v4803_v35 = vsel %vm8525_vm3, %v4793_v51, %v4785_v39 }
0x1445   : > { %v4801_v55 = vsel %vm8516_vm14, %v4789_v43, %v4797_v36  ;;  %v4805_v57 = vsel %vm8517_vm12, %v4797_v36, %v4789_v43  ;;  %vm8531_vm14 = vmmov %vm8523_vm1  ;;  %v4773_v50 = vpop.f32.mrf.mxu1 }
0x1446   : > { %5536 = vmatpush.msk.msra.mxu2 %vm8518_vm11, %v4801_v55  ;;  %5544 = vmatpush.msk.msra.mxu3 %vm8519_vm7, %v4805_v57 }
0x1447   : > { %5518 = vmatmul.msk.f32.gmra.mxu2 %vm815_vm4, %v5851_v32  ;;  %5526 = vmatmul.msk.f32.gmra.mxu3 %vm815_vm4, %v5851_v32 }
0x1448   : > { %5537 = vmatpush.msk.msra.mxu2 %vm8522_vm9, %v4800_v47  ;;  %5545 = vmatpush.msk.msra.mxu3 %vm8523_vm1, %v4804_v10  ;;  %v4744_v6 = vpop.f32.mrf.mxu0 }
0x144a   : > { %5538 = vmatpush.msk.msra.mxu2 %vm8526_vm5, %v4799_v53  ;;  %5546 = vmatpush.msk.msra.mxu3 %vm8527_vm6, %v4803_v35 }
0x144c   : > { %v4791_v45 = vpop.permute.xlu0 %4790 }
0x144d   : > { %v4798_v4 = vsel %vm8528_vm0, %v4783_v15, %v4791_v45  ;;  %v4802_v29 = vsel %vm8529_vm10, %v4791_v45, %v4783_v15  ;;  %v4776_v59 = vpop.f32.mrf.mxu1 }
0x144e   : > { %5539 = vmatpush.msk.msra.mxu2 %vm8530_vm13, %v4798_v4  ;;  %5547 = vmatpush.msk.msra.mxu3 %vm8531_vm14, %v4802_v29 }
0x144f   : > { %5519 = vmatmul.msk.f32.gmra.mxu2 %vm815_vm4, %v5852_v42  ;;  %5527 = vmatmul.msk.f32.gmra.mxu3 %vm815_vm4, %v5852_v42 }
0x1450   : > { %v4747_v54 = vpop.f32.mrf.mxu0 }
0x1455   : > { %v4779_v46 = vpop.f32.mrf.mxu1 }
0x1457   : > { %5540 = vmatmul.msk.f32.vlgmr.msra.gmra.mxu2 %vm815_vm4, %v5853_v40  ;;  %5548 = vmatmul.msk.f32.vlgmr.msra.gmra.mxu3 %vm815_vm4, %v5853_v40 }
0x1458   : > { %v4750_v27 = vpop.f32.mrf.mxu0 }
0x145f   : > { %5541 = vmatmul.msk.f32.gmra.mxu2 %vm815_vm4, %v5854_v24  ;;  %5549 = vmatmul.msk.f32.gmra.mxu3 %vm815_vm4, %v5854_v24 }
0x1467   : > { %5542 = vmatmul.msk.f32.gmra.mxu2 %vm815_vm4, %v5855_v49  ;;  %5550 = vmatmul.msk.f32.gmra.mxu3 %vm815_vm4, %v5855_v49 }
0x146f   : > { %5543 = vmatmul.msk.f32.gmra.mxu2 %vm815_vm4, %v5856_v52  ;;  %5551 = vmatmul.msk.f32.gmra.mxu3 %vm815_vm4, %v5856_v52 }
0x14ba   : > { %v4683_v62 = vpop.f32.mrf.mxu2  ;;  %v4712_v41 = vpop.f32.mrf.mxu3 }
0x14bb   : > { %v4742_v28 = vadd.f32 %v4741_v13, %v4683_v62  ;;  %v4771_v63 = vadd.f32 %v4770_v0, %v4712_v41 }
0x14c2   : > { %v4686_v23 = vpop.f32.mrf.mxu2  ;;  %v4715_v14 = vpop.f32.mrf.mxu3 }
0x14c3   : > { %v4745_v11 = vadd.f32 %v4744_v6, %v4686_v23  ;;  %v4774_v60 = vadd.f32 %v4773_v50, %v4715_v14 }
0x14ca   : > { %v4689_v56 = vpop.f32.mrf.mxu2  ;;  %v4718_v17 = vpop.f32.mrf.mxu3 }
0x14cb   : > { %v4748_v33 = vadd.f32 %v4747_v54, %v4689_v56  ;;  %v4777_v58 = vadd.f32 %v4776_v59, %v4718_v17 }
0x14d2   : > { %v4692_v21 = vpop.f32.mrf.mxu2  ;;  %v4721_v30 = vpop.f32.mrf.mxu3 }
0x14d3   : > { %v4751_v22 = vadd.f32 %v4750_v27, %v4692_v21  ;;  %v4780_v16 = vadd.f32 %v4779_v46, %v4721_v30 }
0x14da   : > { %v4831_v9 = vpop.f32.mrf.mxu2  ;;  %v4860_v1 = vpop.f32.mrf.mxu3 }
0x14db   : > { %v4872_v19 = vadd.f32 %v4831_v9, %v4742_v28  ;;  %v4873_v43 = vadd.f32 %v4860_v1, %v4771_v63 }
0x14dd   : > { %v4880_v47 = vadd.f32 %v4872_v19, %v6891_v61 }
0x14e2   : > { %v4834_v38 = vpop.f32.mrf.mxu2  ;;  %v4863_v18 = vpop.f32.mrf.mxu3 }
0x14e3   : > { %v4874_v26 = vadd.f32 %v4834_v38, %v4745_v11  ;;  %v4875_v34 = vadd.f32 %v4863_v18, %v4774_v60 }
0x14e5   : > { %v4882_v57 = vadd.f32 %v4874_v26, %v6879_v12  ;;  %v4883_v51 = vadd.f32 %v4875_v34, %v6879_v12  ;;  %v687_v12 = vpop.permute.xlu1 %686 }
0x14ea   : > { %v4837_v7 = vpop.f32.mrf.mxu2  ;;  %v4866_v48 = vpop.f32.mrf.mxu3 }
0x14eb   : > { %v4876_v25 = vadd.f32 %v4837_v7, %v4748_v33  ;;  %v4877_v2 = vadd.f32 %v4866_v48, %v4777_v58 }
0x14ed   : > { %v4884_v36 = vadd.f32 %v4876_v25, %v6882_v44  ;;  %v4885_v55 = vadd.f32 %v4877_v2, %v6882_v44  ;;  %v586_v44 = vld [vmem:[%s8433_s11] sm:$0xff] }
0x14f2   : > { %v4840_v5 = vpop.f32.mrf.mxu2  ;;  %v4869_v8 = vpop.f32.mrf.mxu3 }
0x14f3   : > { %v4878_v37 = vadd.f32 %v4840_v5, %v4751_v22  ;;  %v4879_v20 = vadd.f32 %v4869_v8, %v4780_v16 }
0x14f5   : > { %v4886_v3 = vadd.f32 %v4878_v37, %v6886_v31  ;;  %v4887_v39 = vadd.f32 %v4879_v20, %v6886_v31  ;;  %v4881_v31 = vadd.f32 %v4873_v43, %v6891_v61 }
0x14f7   : > { %4903 = vmatpush.msrb.mxu0 %v4886_v3  ;;  %4923 = vmatpush.msrb.mxu1 %v4887_v39 }
0x14f9   : > { %4904 = vmatpush.msrb.mxu0 %v4884_v36  ;;  %4924 = vmatpush.msrb.mxu1 %v4885_v55 }
0x14fb   : > { %4905 = vmatpush.msrb.mxu0 %v4882_v57  ;;  %4925 = vmatpush.msrb.mxu1 %v4883_v51 }
0x14fd   : > { %4906 = vmatpush.msrb.mxu0 %v4880_v47  ;;  %4926 = vmatpush.msrb.mxu1 %v4881_v31 }
0x14fe   : > { %5552 = vmatmul.msk.f32.vlgmr.msrb.gmra.mxu0 %vm815_vm4, %v586_v44  ;;  %5553 = vmatmul.msk.f32.vlgmr.msrb.gmra.mxu1 %vm815_vm4, %v586_v44 }
0x157b   : > { %v4908_v61 = vpop.f32.mrf.mxu0  ;;  %v4928_v10 = vpop.f32.mrf.mxu1 }
0x157c   : > { %v4909_v32 = vadd.f32 %v4908_v61, %v687_v12  ;;  %v4929_v53 = vadd.f32 %v4928_v10, %v687_v12 }
0x157e   : > { %4931 = vst [vmem:[%s510_s5] sm:$0xff] %v4909_v32 }
0x157f   : > { %4932 = vst [vmem:[%s510_s5 + $0x8] sm:$0xff] %v4929_v53 }
0x1580   : > { %6004 = shalt.err (!%p6001_p10)
}
0x1581   : > { %5583 = dma.vmem_to_hbm [thread:$0]  (%p6219_p7), %s4948_s16, 256, %s4950_s15, %s4934_s23  }
0x1582 PF: > { %s8532_s30 = sld [smem:[#allocation15_spill]]  ;;  %p8534_p12 = scmp.ge.s32.totalorder %s6051_s28, 2 }
0x1584   : > { %p5600_p13 = pnand %p8534_p12, %p6171_p6 }
0x1586   : > { %p5601_p0 = pneg %p5600_p13 }
0x1588   : > { %s4961_s21 = sand.u32 1, %s8532_s30  }
0x1589   : > { %s4962_s20 = scalar_lea.sflag [#allocation4], %s4961_s21 }
0x158a   : > { %6034 = dma.done.wait (%p5601_p0), %s4962_s20, 256  }
0x158b   : > { %6036 = vsyncadd (%p5601_p0), %s4962_s20, 4294967040  ;;  %s8535_s24 = sld [smem:[#allocation16_spill]]  ;;  %p28_p3 = scmp.ge.s32.totalorder %s6203_s18, 4  }
0x158c   : > { %s8536_s27 = sld [smem:[#allocation18_spill]]  ;;  %s8537_s25 = smov %s6043_s26 }
0x158d   : > { %s8539_s28 = smov %s6203_s18  ;;  %30 = sbr.rel (!%p28_p3) target bundleno = 11 (0xb), region = 129 }
0x1591   : > { %s8538_s26 = smov %s8535_s24 }
0x1592   :  { %4968 = vsyncpa [#allocation3], 1 }
0x1593   :  { %4970 = vsyncpa [#allocation3 + $0x1], 1 }
0x1594   :  { %4971 = vsyncpa [#allocation6], 1 }
0x1595   :  { %4972 = vsyncpa [#allocation9], 1 }
0x1596   :  { %4973 = vsyncpa [#allocation4], 1 }
0x1597   :  { %4975 = vsyncpa [#allocation4 + $0x1], 1 }

</bundles_post_ra>
